<compile_context>
chip_gen: v5e
topology: v5e:2x2
jax: 0.10.0
libtpu: 0.0.40
codegen_flags: <defaults>
</compile_context>

<pallas_src>
import functools

import jax
import jax.numpy as jnp
from jax import lax
from jax.experimental import pallas as pl
from jax.experimental.pallas import tpu as pltpu


# --------------------------------------------------------------------------- #
# In-kernel helpers
# --------------------------------------------------------------------------- #
def _layernorm(x, w, b, eps=1e-5):
    mu = jnp.mean(x, axis=-1, keepdims=True)
    var = jnp.mean((x - mu) ** 2, axis=-1, keepdims=True)
    return (x - mu) * lax.rsqrt(var + eps) * w + b


def _mm(a, w_bf16):
    # MXU matmul: bf16 inputs (weights are already stored bf16), f32 accumulation.
    return jnp.dot(a.astype(jnp.bfloat16), w_bf16, preferred_element_type=jnp.float32)


# Row order inside the packed f32 vector slab (all rows zero-padded to VW lanes).
_VEC_ROWS = ('ni_w', 'ni_b', 'ns_w', 'ns_b', 'np_w', 'np_b',
             'bq', 'b_kv', 'b_i', 'b_h',
             'mlp_b1', 'mlp_b2', 'fc1_b', 'fc2_b',
             'sa_ln_w', 'sa_ln_b', 'ff_ln_w', 'ff_ln_b')


# --------------------------------------------------------------------------- #
# Fused kernel: whole Encoder stack, batch folded into matmul rows
# --------------------------------------------------------------------------- #
def encoder_stack_kernel(src_ref, scale_keep_ref, fill_ref, slots0_ref,
                         mat_a_ref, mat_b_ref, vec_ref, out_ref,
                         *, n_layers, iters, scale, eps, D, H, PF):
    BP, N0, _ = src_ref.shape           # batch elements handled by this grid step
    S = slots0_ref.shape[2]

    x2 = src_ref[...].reshape(BP * N0, D)        # (BP*N, D) f32 activations
    scale_keep = scale_keep_ref[...]             # (BP, 1, N): scale where kept, 0 masked
    fill = fill_ref[...]                         # (BP, 1, N): 0 where kept, -1e10 masked

    n_cur = N0
    for l in range(n_layers):                    # static unroll (small n_layers)
        # ---- per-layer weights: static slices of the packed slabs (hoisted) ----
        wq     = mat_a_ref[l, 0, :, 0:D]                 # bf16
        w_kv   = mat_a_ref[l, 1, :, 0:2 * D]             # [wk | wv]
        w_i    = mat_a_ref[l, 2, :, 0:3 * D]             # [w_ir | w_iz | w_in]
        w_h    = mat_a_ref[l, 3, :, 0:3 * D]             # [w_hr | w_hz | w_hn]
        mlp_w1 = mat_a_ref[l, 4, :, 0:H]
        fc1_w  = mat_a_ref[l, 5, :, 0:PF]
        mlp_w2 = mat_b_ref[l, 0:H, :]
        fc2_w  = mat_b_ref[l, H:H + PF, :]

        def vrow(i, w=D, _l=l):
            return vec_ref[_l, i:i + 1, 0:w]             # (1, w) f32

        ni_w, ni_b = vrow(0), vrow(1)
        ns_w, ns_b = vrow(2), vrow(3)
        np_w, np_b = vrow(4), vrow(5)
        bq = vrow(6)
        b_kv = vrow(7, 2 * D)
        b_i = vrow(8, 3 * D)
        b_h = vrow(9, 3 * D)
        mlp_b1 = vrow(10, H)
        mlp_b2 = vrow(11)
        fc1_b = vrow(12, PF)
        fc2_b = vrow(13)
        sa_ln_w, sa_ln_b = vrow(14), vrow(15)
        ff_ln_w, ff_ln_b = vrow(16), vrow(17)

        # ---- SlotAttention: fused K|V projection, K^T hoisted out of iters ----
        xn = _layernorm(x2, ni_w, ni_b)
        kv = _mm(xn, w_kv) + b_kv                                  # (BP*n_cur, 2D) f32
        k3 = kv[:, 0:D].reshape(BP, n_cur, D)
        v3_b = kv[:, D:2 * D].astype(jnp.bfloat16).reshape(BP, n_cur, D)
        kt3_b = jnp.transpose(k3, (0, 2, 1)).astype(jnp.bfloat16)  # (BP, D, n_cur)

        slots2 = slots0_ref[l].reshape(BP * S, D)                  # (BP*S, D) f32

        # iters=3, D=32 -> full unroll is fine at these sizes.
        for _ in range(iters):
            sn = _layernorm(slots2, ns_w, ns_b)
            q2 = _mm(sn, wq) + bq                                  # (BP*S, D)
            q3_b = q2.astype(jnp.bfloat16).reshape(BP, S, D)

            # dots[b, i, j] = <q_bi, k_bj>   (RHS already (contract, cols): no vxpose)
            dots = jnp.einsum('bsd,bdn->bsn', q3_b, kt3_b,
                              preferred_element_type=jnp.float32)
            if l == 0:
                # exact masked_fill(mask==0, -1e10) semantics, loop-invariant terms
                dots = dots * scale_keep + fill
            else:
                dots = dots * scale

            # softmax over the SLOT axis (torch softmax(dim=1))
            m = jnp.max(dots, axis=1, keepdims=True)
            e = jnp.exp(dots - m)
            attn = e * pl.reciprocal(jnp.sum(e, axis=1, keepdims=True),
                                     approx=True) + eps
            attn = attn / jnp.sum(attn, axis=-1, keepdims=True)    # exact renorm

            upd = jnp.einsum('bsn,bnd->bsd', attn.astype(jnp.bfloat16), v3_b,
                             preferred_element_type=jnp.float32)
            u2 = upd.reshape(BP * S, D)

            # GRUCell(updates, slots) with packed gates: 2 MXU pushes, 1 sigmoid slab
            gi = _mm(u2, w_i) + b_i                                # (BP*S, 3D)
            gh = _mm(slots2, w_h) + b_h
            rz = jax.nn.sigmoid(gi[:, 0:2 * D] + gh[:, 0:2 * D])
            r = rz[:, 0:D]
            z = rz[:, D:2 * D]
            n_gate = jnp.tanh(gi[:, 2 * D:3 * D] + r * gh[:, 2 * D:3 * D])
            slots2 = (1.0 - z) * n_gate + z * slots2

            # slots = slots + mlp(norm_pre_ff(slots))
            pre = _layernorm(slots2, np_w, np_b)
            hh = jnp.maximum(_mm(pre, mlp_w1) + mlp_b1, 0.0)
            slots2 = slots2 + _mm(hh, mlp_w2) + mlp_b2

        # ---- residual + self_attn_layer_norm (only for layers > 1, as in ref) --
        if l == 0:
            x2 = slots2                      # src becomes the S slots after layer 0
            n_cur = S
        else:
            x2 = _layernorm(x2 + slots2, sa_ln_w, sa_ln_b)

        # ---- positionwise FFN + residual + ff_layer_norm ------------------------
        hh = jnp.maximum(_mm(x2, fc1_w) + fc1_b, 0.0)
        f = _mm(hh, fc2_w) + fc2_b
        x2 = _layernorm(x2 + f, ff_ln_w, ff_ln_b)

    out_ref[...] = x2.reshape(BP, S, D).astype(out_ref.dtype)


# --------------------------------------------------------------------------- #
# One-time parameter packing (bf16 weight slabs, f32 vector slab)
# --------------------------------------------------------------------------- #
def pack_encoder_params(params):
    L, D, _ = params['wq'].shape
    H = params['mlp_w1'].shape[-1]
    PF = params['fc1_w'].shape[-1]

    w_kv = jnp.concatenate([params['wk'], params['wv']], axis=-1)
    w_i = jnp.concatenate([params['w_ir'], params['w_iz'], params['w_in']], axis=-1)
    w_h = jnp.concatenate([params['w_hr'], params['w_hz'], params['w_hn']], axis=-1)

    mats = [params['wq'], w_kv, w_i, w_h, params['mlp_w1'], params['fc1_w']]
    MC = max(m.shape[-1] for m in mats)
    mat_a = jnp.stack(
        [jnp.pad(m, ((0, 0), (0, 0), (0, MC - m.shape[-1]))) for m in mats],
        axis=1).astype(jnp.bfloat16)                              # (L, 6, D, MC)

    mat_b = jnp.concatenate([params['mlp_w2'], params['fc2_w']],
                            axis=1).astype(jnp.bfloat16)          # (L, H+PF, D)

    b_kv = jnp.concatenate([params['bk'], params['bv']], axis=-1)
    b_i = jnp.concatenate([params['b_ir'], params['b_iz'], params['b_in']], axis=-1)
    b_h = jnp.concatenate([params['b_hr'], params['b_hz'], params['b_hn']], axis=-1)
    vec_src = dict(params, b_kv=b_kv, b_i=b_i, b_h=b_h)
    vec_list = [vec_src[name] for name in _VEC_ROWS]
    VW = max(v.shape[-1] for v in vec_list)
    vecs = jnp.concatenate(
        [jnp.pad(v, ((0, 0), (0, 0), (0, VW - v.shape[-1]))) for v in vec_list],
        axis=1).astype(jnp.float32)                               # (L, 18, VW)

    return dict(mat_a=mat_a, mat_b=mat_b, vecs=vecs,
                slots_mu=params['slots_mu'], slots_logsigma=params['slots_logsigma'],
                dims=dict(L=L, D=D, H=H, PF=PF))


def _auto_batch_grid(B):
    # v7x has 2 TensorCores/chip -> shard the batch across them with grid=(B,).
    # v5e / v6e are single-TC: grid is just a serial loop, so fold the whole
    # batch into the matmul rows instead (grid=(1,)).
    try:
        kind = jax.devices()[0].device_kind.lower()
    except Exception:
        return 1
    if "v7" in kind or "7x" in kind:
        return B
    return 1


# --------------------------------------------------------------------------- #
# pallas_call wrapper (single call for the whole encoder forward)
# --------------------------------------------------------------------------- #
def encoder_forward(packed, src, noise_key, num_slots, num_iters,
                    pad_id=-100.0, batch_grid=None):
    B, N, D = src.shape
    dims = packed['dims']
    L, H, PF = dims['L'], dims['H'], dims['PF']
    assert D == dims['D']
    S = num_slots
    scale = float(D) ** -0.5

    G = _auto_batch_grid(B) if batch_grid is None else batch_grid
    assert B % G == 0
    BP = B // G

    # loop-invariant mask terms (make_src_mask semantics, hoisted out of the kernel loop)
    keep = (src[:, :, 0] != pad_id).astype(jnp.float32)          # (B, N)
    scale_keep = (scale * keep)[:, None, :]                      # (B, 1, N)
    fill = ((1.0 - keep) * (-1e10))[:, None, :]                  # (B, 1, N)

    # per-layer slot init: mu + exp(logsigma) * N(0,1)
    noise = jax.random.normal(noise_key, (L, B, S, D), jnp.float32)
    slots0 = (packed['slots_mu'][:, None, :, :]
              + jnp.exp(packed['slots_logsigma'])[:, None, :, :] * noise)

    mat_a, mat_b, vecs = packed['mat_a'], packed['mat_b'], packed['vecs']

    kern = functools.partial(encoder_stack_kernel, n_layers=L, iters=num_iters,
                             scale=scale, eps=1e-8, D=D, H=H, PF=PF)

    return pl.pallas_call(
        kern,
        out_shape=jax.ShapeDtypeStruct((B, S, D), src.dtype),
        grid=(G,),
        in_specs=[
            pl.BlockSpec((BP, N, D), lambda g: (g, 0, 0)),
            pl.BlockSpec((BP, 1, N), lambda g: (g, 0, 0)),
            pl.BlockSpec((BP, 1, N), lambda g: (g, 0, 0)),
            pl.BlockSpec((L, BP, S, D), lambda g: (0, g, 0, 0)),
            pl.BlockSpec(mat_a.shape, lambda g: (0, 0, 0, 0)),
            pl.BlockSpec(mat_b.shape, lambda g: (0, 0, 0)),
            pl.BlockSpec(vecs.shape, lambda g: (0, 0, 0)),
        ],
        out_specs=pl.BlockSpec((BP, S, D), lambda g: (g, 0, 0)),
        compiler_params=pltpu.CompilerParams(dimension_semantics=("parallel",)),
    )(src, scale_keep, fill, slots0, mat_a, mat_b, vecs)


# --------------------------------------------------------------------------- #
# Parameter init (deterministic, synthetic; stacked along a leading layer axis)
# --------------------------------------------------------------------------- #
def init_encoder_params(key, hid_dim, pf_dim, n_layers):
    D = hid_dim
    H = max(hid_dim, 128)      # SlotAttention mlp hidden_dim = max(dim, 128)
    keys = iter(jax.random.split(key, 32))

    def rnd(shape, s=0.1):
        return jax.random.normal(next(keys), (n_layers,) + shape, jnp.float32) * s

    ones = lambda shape: jnp.ones((n_layers,) + shape, jnp.float32)
    zeros = lambda shape: jnp.zeros((n_layers,) + shape, jnp.float32)

    return dict(
        slots_mu=rnd((1, D), 1.0), slots_logsigma=rnd((1, D), 0.05),
        ni_w=ones((1, D)), ni_b=zeros((1, D)),
        ns_w=ones((1, D)), ns_b=zeros((1, D)),
        np_w=ones((1, D)), np_b=zeros((1, D)),
        wq=rnd((D, D)), bq=rnd((1, D), 0.01),
        wk=rnd((D, D)), bk=rnd((1, D), 0.01),
        wv=rnd((D, D)), bv=rnd((1, D), 0.01),
        # GRU gates stored per-gate; packed to [r|z|n] slabs in pack_encoder_params
        w_ir=rnd((D, D)), w_iz=rnd((D, D)), w_in=rnd((D, D)),
        w_hr=rnd((D, D)), w_hz=rnd((D, D)), w_hn=rnd((D, D)),
        b_ir=rnd((1, D), 0.01), b_iz=rnd((1, D), 0.01), b_in=rnd((1, D), 0.01),
        b_hr=rnd((1, D), 0.01), b_hz=rnd((1, D), 0.01), b_hn=rnd((1, D), 0.01),
        mlp_w1=rnd((D, H)), mlp_b1=rnd((1, H), 0.01),
        mlp_w2=rnd((H, D)), mlp_b2=rnd((1, D), 0.01),
        fc1_w=rnd((D, pf_dim)), fc1_b=rnd((1, pf_dim), 0.01),
        fc2_w=rnd((pf_dim, D)), fc2_b=zeros((1, D)),
        sa_ln_w=ones((1, D)), sa_ln_b=zeros((1, D)),
        ff_ln_w=ones((1, D)), ff_ln_b=zeros((1, D)),
    )


# --------------------------------------------------------------------------- #
# Demo
# --------------------------------------------------------------------------- #
if __name__ == "__main__":
    key = jax.random.PRNGKey(0)
    B, N, D = 2, 8, 32        # batch, seq_len, hid_dim
    pf_dim = 64
    n_layers = 2
    num_slots = 4             # num_labels
    num_iters = 3

    k_src, k_params, k_noise = jax.random.split(key, 3)
    src = jax.random.normal(k_src, (B, N, D), jnp.float32)
    params = init_encoder_params(k_params, D, pf_dim, n_layers)
    packed = pack_encoder_params(params)       # bf16 cast + slab packing done ONCE

    out = encoder_forward(packed, src, k_noise, num_slots, num_iters)
    out = jax.block_until_ready(out)
    assert out.shape == (B, num_slots, D), out.shape
    assert bool(jnp.all(jnp.isfinite(out)))
    print("KERNEL_OK")
</pallas_src>

<mosaic_0001>
module attributes {stable_mosaic.version = 11 : i64} {
  func.func @encoder_stack_kernel(%arg0: i32, %arg1: memref<2x8x32xf32, #tpu.memory_space<vmem>>, %arg2: memref<2x1x8xf32, #tpu.memory_space<vmem>>, %arg3: memref<2x1x8xf32, #tpu.memory_space<vmem>>, %arg4: memref<2x2x4x32xf32, #tpu.memory_space<vmem>>, %arg5: memref<2x6x32x128xbf16, #tpu.memory_space<vmem>>, %arg6: memref<2x192x32xbf16, #tpu.memory_space<vmem>>, %arg7: memref<2x18x128xf32, #tpu.memory_space<vmem>>, %arg8: memref<2x4x32xf32, #tpu.memory_space<vmem>>) attributes {dimension_semantics = [#tpu.dimension_semantics<parallel>], iteration_bounds = array<i64: 1>, scalar_prefetch = 0 : i64, scratch_operands = 0 : i64, tpu.core_type = #tpu.core_type<tc>, window_params = [{transform_indices = @transform_0, window_bounds = array<i64: 2, 8, 32>}, {transform_indices = @transform_1, window_bounds = array<i64: 2, 1, 8>}, {transform_indices = @transform_2, window_bounds = array<i64: 2, 1, 8>}, {transform_indices = @transform_3, window_bounds = array<i64: 2, 2, 4, 32>}, {pipeline_mode = #tpu.pipeline_mode<synchronous>, transform_indices = @transform_4, window_bounds = array<i64: 2, 6, 32, 128>}, {pipeline_mode = #tpu.pipeline_mode<synchronous>, transform_indices = @transform_5, window_bounds = array<i64: 2, 192, 32>}, {pipeline_mode = #tpu.pipeline_mode<synchronous>, transform_indices = @transform_6, window_bounds = array<i64: 2, 18, 128>}, {transform_indices = @transform_7, window_bounds = array<i64: 2, 4, 32>}]} {
    %c0 = arith.constant 0 : index
    %c0_0 = arith.constant 0 : index
    %c0_1 = arith.constant 0 : index
    %0 = vector.load %arg1[%c0, %c0_0, %c0_1] : memref<2x8x32xf32, #tpu.memory_space<vmem>>, vector<2x8x32xf32>
    %1 = vector.shape_cast %0 : vector<2x8x32xf32> to vector<16x32xf32>
    %c0_2 = arith.constant 0 : index
    %c0_3 = arith.constant 0 : index
    %c0_4 = arith.constant 0 : index
    %2 = vector.load %arg2[%c0_2, %c0_3, %c0_4] : memref<2x1x8xf32, #tpu.memory_space<vmem>>, vector<2x1x8xf32>
    %c0_5 = arith.constant 0 : index
    %c0_6 = arith.constant 0 : index
    %c0_7 = arith.constant 0 : index
    %3 = vector.load %arg3[%c0_5, %c0_6, %c0_7] : memref<2x1x8xf32, #tpu.memory_space<vmem>>, vector<2x1x8xf32>
    %c0_8 = arith.constant 0 : index
    %c0_9 = arith.constant 0 : index
    %c0_10 = arith.constant 0 : index
    %c0_11 = arith.constant 0 : index
    %4 = vector.load %arg5[%c0_8, %c0_9, %c0_10, %c0_11] : memref<2x6x32x128xbf16, #tpu.memory_space<vmem>>, vector<1x1x32x32xbf16>
    %5 = vector.shape_cast %4 : vector<1x1x32x32xbf16> to vector<32x32xbf16>
    %c0_12 = arith.constant 0 : index
    %c1 = arith.constant 1 : index
    %c0_13 = arith.constant 0 : index
    %c0_14 = arith.constant 0 : index
    %6 = vector.load %arg5[%c0_12, %c1, %c0_13, %c0_14] : memref<2x6x32x128xbf16, #tpu.memory_space<vmem>>, vector<1x1x32x64xbf16>
    %7 = vector.shape_cast %6 : vector<1x1x32x64xbf16> to vector<32x64xbf16>
    %c0_15 = arith.constant 0 : index
    %c2 = arith.constant 2 : index
    %c0_16 = arith.constant 0 : index
    %c0_17 = arith.constant 0 : index
    %8 = vector.load %arg5[%c0_15, %c2, %c0_16, %c0_17] : memref<2x6x32x128xbf16, #tpu.memory_space<vmem>>, vector<1x1x32x96xbf16>
    %9 = vector.shape_cast %8 : vector<1x1x32x96xbf16> to vector<32x96xbf16>
    %c0_18 = arith.constant 0 : index
    %c3 = arith.constant 3 : index
    %c0_19 = arith.constant 0 : index
    %c0_20 = arith.constant 0 : index
    %10 = vector.load %arg5[%c0_18, %c3, %c0_19, %c0_20] : memref<2x6x32x128xbf16, #tpu.memory_space<vmem>>, vector<1x1x32x96xbf16>
    %11 = vector.shape_cast %10 : vector<1x1x32x96xbf16> to vector<32x96xbf16>
    %c0_21 = arith.constant 0 : index
    %c4 = arith.constant 4 : index
    %c0_22 = arith.constant 0 : index
    %c0_23 = arith.constant 0 : index
    %12 = vector.load %arg5[%c0_21, %c4, %c0_22, %c0_23] : memref<2x6x32x128xbf16, #tpu.memory_space<vmem>>, vector<1x1x32x128xbf16>
    %13 = vector.shape_cast %12 : vector<1x1x32x128xbf16> to vector<32x128xbf16>
    %c0_24 = arith.constant 0 : index
    %c5 = arith.constant 5 : index
    %c0_25 = arith.constant 0 : index
    %c0_26 = arith.constant 0 : index
    %14 = vector.load %arg5[%c0_24, %c5, %c0_25, %c0_26] : memref<2x6x32x128xbf16, #tpu.memory_space<vmem>>, vector<1x1x32x64xbf16>
    %15 = vector.shape_cast %14 : vector<1x1x32x64xbf16> to vector<32x64xbf16>
    %c0_27 = arith.constant 0 : index
    %c0_28 = arith.constant 0 : index
    %c0_29 = arith.constant 0 : index
    %16 = vector.load %arg6[%c0_27, %c0_28, %c0_29] : memref<2x192x32xbf16, #tpu.memory_space<vmem>>, vector<1x128x32xbf16>
    %17 = vector.shape_cast %16 : vector<1x128x32xbf16> to vector<128x32xbf16>
    %c0_30 = arith.constant 0 : index
    %c128 = arith.constant 128 : index
    %c0_31 = arith.constant 0 : index
    %18 = vector.load %arg6[%c0_30, %c128, %c0_31] : memref<2x192x32xbf16, #tpu.memory_space<vmem>>, vector<1x64x32xbf16>
    %19 = vector.shape_cast %18 : vector<1x64x32xbf16> to vector<64x32xbf16>
    %c0_32 = arith.constant 0 : index
    %c0_33 = arith.constant 0 : index
    %c0_34 = arith.constant 0 : index
    %20 = vector.load %arg7[%c0_32, %c0_33, %c0_34] : memref<2x18x128xf32, #tpu.memory_space<vmem>>, vector<1x1x32xf32>
    %21 = vector.shape_cast %20 : vector<1x1x32xf32> to vector<1x32xf32>
    %c0_35 = arith.constant 0 : index
    %c1_36 = arith.constant 1 : index
    %c0_37 = arith.constant 0 : index
    %22 = vector.load %arg7[%c0_35, %c1_36, %c0_37] : memref<2x18x128xf32, #tpu.memory_space<vmem>>, vector<1x1x32xf32>
    %23 = vector.shape_cast %22 : vector<1x1x32xf32> to vector<1x32xf32>
    %c0_38 = arith.constant 0 : index
    %c2_39 = arith.constant 2 : index
    %c0_40 = arith.constant 0 : index
    %24 = vector.load %arg7[%c0_38, %c2_39, %c0_40] : memref<2x18x128xf32, #tpu.memory_space<vmem>>, vector<1x1x32xf32>
    %25 = vector.shape_cast %24 : vector<1x1x32xf32> to vector<1x32xf32>
    %c0_41 = arith.constant 0 : index
    %c3_42 = arith.constant 3 : index
    %c0_43 = arith.constant 0 : index
    %26 = vector.load %arg7[%c0_41, %c3_42, %c0_43] : memref<2x18x128xf32, #tpu.memory_space<vmem>>, vector<1x1x32xf32>
    %27 = vector.shape_cast %26 : vector<1x1x32xf32> to vector<1x32xf32>
    %c0_44 = arith.constant 0 : index
    %c4_45 = arith.constant 4 : index
    %c0_46 = arith.constant 0 : index
    %28 = vector.load %arg7[%c0_44, %c4_45, %c0_46] : memref<2x18x128xf32, #tpu.memory_space<vmem>>, vector<1x1x32xf32>
    %29 = vector.shape_cast %28 : vector<1x1x32xf32> to vector<1x32xf32>
    %c0_47 = arith.constant 0 : index
    %c5_48 = arith.constant 5 : index
    %c0_49 = arith.constant 0 : index
    %30 = vector.load %arg7[%c0_47, %c5_48, %c0_49] : memref<2x18x128xf32, #tpu.memory_space<vmem>>, vector<1x1x32xf32>
    %31 = vector.shape_cast %30 : vector<1x1x32xf32> to vector<1x32xf32>
    %c0_50 = arith.constant 0 : index
    %c6 = arith.constant 6 : index
    %c0_51 = arith.constant 0 : index
    %32 = vector.load %arg7[%c0_50, %c6, %c0_51] : memref<2x18x128xf32, #tpu.memory_space<vmem>>, vector<1x1x32xf32>
    %33 = vector.shape_cast %32 : vector<1x1x32xf32> to vector<1x32xf32>
    %c0_52 = arith.constant 0 : index
    %c7 = arith.constant 7 : index
    %c0_53 = arith.constant 0 : index
    %34 = vector.load %arg7[%c0_52, %c7, %c0_53] : memref<2x18x128xf32, #tpu.memory_space<vmem>>, vector<1x1x64xf32>
    %35 = vector.shape_cast %34 : vector<1x1x64xf32> to vector<1x64xf32>
    %c0_54 = arith.constant 0 : index
    %c8 = arith.constant 8 : index
    %c0_55 = arith.constant 0 : index
    %36 = vector.load %arg7[%c0_54, %c8, %c0_55] : memref<2x18x128xf32, #tpu.memory_space<vmem>>, vector<1x1x96xf32>
    %37 = vector.shape_cast %36 : vector<1x1x96xf32> to vector<1x96xf32>
    %c0_56 = arith.constant 0 : index
    %c9 = arith.constant 9 : index
    %c0_57 = arith.constant 0 : index
    %38 = vector.load %arg7[%c0_56, %c9, %c0_57] : memref<2x18x128xf32, #tpu.memory_space<vmem>>, vector<1x1x96xf32>
    %39 = vector.shape_cast %38 : vector<1x1x96xf32> to vector<1x96xf32>
    %c0_58 = arith.constant 0 : index
    %c10 = arith.constant 10 : index
    %c0_59 = arith.constant 0 : index
    %40 = vector.load %arg7[%c0_58, %c10, %c0_59] : memref<2x18x128xf32, #tpu.memory_space<vmem>>, vector<1x1x128xf32>
    %41 = vector.shape_cast %40 : vector<1x1x128xf32> to vector<1x128xf32>
    %c0_60 = arith.constant 0 : index
    %c11 = arith.constant 11 : index
    %c0_61 = arith.constant 0 : index
    %42 = vector.load %arg7[%c0_60, %c11, %c0_61] : memref<2x18x128xf32, #tpu.memory_space<vmem>>, vector<1x1x32xf32>
    %43 = vector.shape_cast %42 : vector<1x1x32xf32> to vector<1x32xf32>
    %c0_62 = arith.constant 0 : index
    %c12 = arith.constant 12 : index
    %c0_63 = arith.constant 0 : index
    %44 = vector.load %arg7[%c0_62, %c12, %c0_63] : memref<2x18x128xf32, #tpu.memory_space<vmem>>, vector<1x1x64xf32>
    %45 = vector.shape_cast %44 : vector<1x1x64xf32> to vector<1x64xf32>
    %c0_64 = arith.constant 0 : index
    %c13 = arith.constant 13 : index
    %c0_65 = arith.constant 0 : index
    %46 = vector.load %arg7[%c0_64, %c13, %c0_65] : memref<2x18x128xf32, #tpu.memory_space<vmem>>, vector<1x1x32xf32>
    %47 = vector.shape_cast %46 : vector<1x1x32xf32> to vector<1x32xf32>
    %c0_66 = arith.constant 0 : index
    %c16 = arith.constant 16 : index
    %c0_67 = arith.constant 0 : index
    %48 = vector.load %arg7[%c0_66, %c16, %c0_67] : memref<2x18x128xf32, #tpu.memory_space<vmem>>, vector<1x1x32xf32>
    %49 = vector.shape_cast %48 : vector<1x1x32xf32> to vector<1x32xf32>
    %c0_68 = arith.constant 0 : index
    %c17 = arith.constant 17 : index
    %c0_69 = arith.constant 0 : index
    %50 = vector.load %arg7[%c0_68, %c17, %c0_69] : memref<2x18x128xf32, #tpu.memory_space<vmem>>, vector<1x1x32xf32>
    %51 = vector.shape_cast %50 : vector<1x1x32xf32> to vector<1x32xf32>
    %cst = arith.constant dense<0.000000e+00> : vector<16xf32>
    %52 = vector.multi_reduction <add>, %1, %cst [1] : vector<16x32xf32> to vector<16xf32>
    %53 = vector.shape_cast %52 : vector<16xf32> to vector<16x1xf32>
    %cst_70 = arith.constant 3.200000e+01 : f32
    %54 = vector.broadcast %cst_70 : f32 to vector<16x1xf32>
    %55 = arith.divf %53, %54 : vector<16x1xf32>
    %56 = vector.broadcast %55 : vector<16x1xf32> to vector<16x32xf32>
    %57 = arith.subf %1, %56 : vector<16x32xf32>
    %58 = arith.mulf %57, %57 : vector<16x32xf32>
    %cst_71 = arith.constant dense<0.000000e+00> : vector<16xf32>
    %59 = vector.multi_reduction <add>, %58, %cst_71 [1] : vector<16x32xf32> to vector<16xf32>
    %60 = vector.shape_cast %59 : vector<16xf32> to vector<16x1xf32>
    %cst_72 = arith.constant 3.200000e+01 : f32
    %61 = vector.broadcast %cst_72 : f32 to vector<16x1xf32>
    %62 = arith.divf %60, %61 : vector<16x1xf32>
    %63 = vector.broadcast %55 : vector<16x1xf32> to vector<16x32xf32>
    %64 = arith.subf %1, %63 : vector<16x32xf32>
    %cst_73 = arith.constant 9.99999974E-6 : f32
    %65 = vector.broadcast %cst_73 : f32 to vector<16x1xf32>
    %66 = arith.addf %62, %65 : vector<16x1xf32>
    %67 = math.rsqrt %66 : vector<16x1xf32>
    %68 = vector.broadcast %67 : vector<16x1xf32> to vector<16x32xf32>
    %69 = arith.mulf %64, %68 : vector<16x32xf32>
    %70 = vector.broadcast %21 : vector<1x32xf32> to vector<16x32xf32>
    %71 = arith.mulf %69, %70 : vector<16x32xf32>
    %72 = vector.broadcast %23 : vector<1x32xf32> to vector<16x32xf32>
    %73 = arith.addf %71, %72 : vector<16x32xf32>
    %74 = arith.truncf %73 : vector<16x32xf32> to vector<16x32xbf16>
    %cst_74 = arith.constant dense<0.000000e+00> : vector<16x64xf32>
    %75 = tpu.matmul %74, %7, %cst_74 {dimension_numbers = #tpu.dot_dimension_numbers<[1], [0], [0], [1], [0, 0, 1, 1], [], []>} : vector<16x32xbf16>, vector<32x64xbf16>, vector<16x64xf32> -> vector<16x64xf32>
    %76 = vector.broadcast %35 : vector<1x64xf32> to vector<16x64xf32>
    %77 = arith.addf %75, %76 : vector<16x64xf32>
    %78 = vector.extract_strided_slice %77 {offsets = [0, 0], sizes = [16, 32], strides = [1, 1]} : vector<16x64xf32> to vector<16x32xf32>
    %79 = vector.shape_cast %78 : vector<16x32xf32> to vector<2x8x32xf32>
    %80 = vector.extract_strided_slice %77 {offsets = [0, 32], sizes = [16, 32], strides = [1, 1]} : vector<16x64xf32> to vector<16x32xf32>
    %81 = arith.truncf %80 : vector<16x32xf32> to vector<16x32xbf16>
    %82 = vector.shape_cast %81 : vector<16x32xbf16> to vector<2x8x32xbf16>
    %83 = tpu.transpose %79, [0, 2, 1] : vector<2x8x32xf32> -> vector<2x32x8xf32>
    %84 = arith.truncf %83 : vector<2x32x8xf32> to vector<2x32x8xbf16>
    %c0_75 = arith.constant 0 : index
    %c0_76 = arith.constant 0 : index
    %c0_77 = arith.constant 0 : index
    %c0_78 = arith.constant 0 : index
    %85 = vector.load %arg4[%c0_75, %c0_76, %c0_77, %c0_78] : memref<2x2x4x32xf32, #tpu.memory_space<vmem>>, vector<1x2x4x32xf32>
    %86 = vector.shape_cast %85 : vector<1x2x4x32xf32> to vector<2x4x32xf32>
    %87 = vector.shape_cast %86 : vector<2x4x32xf32> to vector<8x32xf32>
    %cst_79 = arith.constant dense<0.000000e+00> : vector<8xf32>
    %88 = vector.multi_reduction <add>, %87, %cst_79 [1] : vector<8x32xf32> to vector<8xf32>
    %89 = vector.shape_cast %88 : vector<8xf32> to vector<8x1xf32>
    %cst_80 = arith.constant 3.200000e+01 : f32
    %90 = vector.broadcast %cst_80 : f32 to vector<8x1xf32>
    %91 = arith.divf %89, %90 : vector<8x1xf32>
    %92 = vector.broadcast %91 : vector<8x1xf32> to vector<8x32xf32>
    %93 = arith.subf %87, %92 : vector<8x32xf32>
    %94 = arith.mulf %93, %93 : vector<8x32xf32>
    %cst_81 = arith.constant dense<0.000000e+00> : vector<8xf32>
    %95 = vector.multi_reduction <add>, %94, %cst_81 [1] : vector<8x32xf32> to vector<8xf32>
    %96 = vector.shape_cast %95 : vector<8xf32> to vector<8x1xf32>
    %cst_82 = arith.constant 3.200000e+01 : f32
    %97 = vector.broadcast %cst_82 : f32 to vector<8x1xf32>
    %98 = arith.divf %96, %97 : vector<8x1xf32>
    %99 = vector.broadcast %91 : vector<8x1xf32> to vector<8x32xf32>
    %100 = arith.subf %87, %99 : vector<8x32xf32>
    %cst_83 = arith.constant 9.99999974E-6 : f32
    %101 = vector.broadcast %cst_83 : f32 to vector<8x1xf32>
    %102 = arith.addf %98, %101 : vector<8x1xf32>
    %103 = math.rsqrt %102 : vector<8x1xf32>
    %104 = vector.broadcast %103 : vector<8x1xf32> to vector<8x32xf32>
    %105 = arith.mulf %100, %104 : vector<8x32xf32>
    %106 = vector.broadcast %25 : vector<1x32xf32> to vector<8x32xf32>
    %107 = arith.mulf %105, %106 : vector<8x32xf32>
    %108 = vector.broadcast %27 : vector<1x32xf32> to vector<8x32xf32>
    %109 = arith.addf %107, %108 : vector<8x32xf32>
    %110 = arith.truncf %109 : vector<8x32xf32> to vector<8x32xbf16>
    %cst_84 = arith.constant dense<0.000000e+00> : vector<8x32xf32>
    %111 = tpu.matmul %110, %5, %cst_84 {dimension_numbers = #tpu.dot_dimension_numbers<[1], [0], [0], [1], [0, 0, 1, 1], [], []>} : vector<8x32xbf16>, vector<32x32xbf16>, vector<8x32xf32> -> vector<8x32xf32>
    %112 = vector.broadcast %33 : vector<1x32xf32> to vector<8x32xf32>
    %113 = arith.addf %111, %112 : vector<8x32xf32>
    %114 = arith.truncf %113 : vector<8x32xf32> to vector<8x32xbf16>
    %115 = vector.shape_cast %114 : vector<8x32xbf16> to vector<2x4x32xbf16>
    "tpu.trace_start"() <{level = 10 : i32, message = "bsd,bdn->bsn"}> : () -> ()
    %cst_85 = arith.constant dense<0.000000e+00> : vector<2x4x8xf32>
    %116 = tpu.matmul %115, %84, %cst_85 {dimension_numbers = #tpu.dot_dimension_numbers<[2], [1], [1], [2], [0, 0, 0, 1, 1, 2], [0], [0]>} : vector<2x4x32xbf16>, vector<2x32x8xbf16>, vector<2x4x8xf32> -> vector<2x4x8xf32>
    "tpu.trace_stop"() : () -> ()
    %117 = vector.broadcast %2 : vector<2x1x8xf32> to vector<2x4x8xf32>
    %118 = arith.mulf %116, %117 : vector<2x4x8xf32>
    %119 = vector.broadcast %3 : vector<2x1x8xf32> to vector<2x4x8xf32>
    %120 = arith.addf %118, %119 : vector<2x4x8xf32>
    %cst_86 = arith.constant dense<0xFF800000> : vector<2x8xf32>
    %121 = vector.multi_reduction <maximumf>, %120, %cst_86 [1] : vector<2x4x8xf32> to vector<2x8xf32>
    %122 = vector.shape_cast %121 : vector<2x8xf32> to vector<2x1x8xf32>
    %123 = vector.broadcast %122 : vector<2x1x8xf32> to vector<2x4x8xf32>
    %124 = arith.subf %120, %123 : vector<2x4x8xf32>
    %125 = math.exp %124 : vector<2x4x8xf32>
    %cst_87 = arith.constant dense<0.000000e+00> : vector<2x8xf32>
    %126 = vector.multi_reduction <add>, %125, %cst_87 [1] : vector<2x4x8xf32> to vector<2x8xf32>
    %127 = vector.shape_cast %126 : vector<2x8xf32> to vector<2x1x8xf32>
    %128 = tpu.reciprocal %127 {approx = true} : vector<2x1x8xf32> -> vector<2x1x8xf32>
    %129 = vector.broadcast %128 : vector<2x1x8xf32> to vector<2x4x8xf32>
    %130 = arith.mulf %125, %129 : vector<2x4x8xf32>
    %cst_88 = arith.constant 9.99999993E-9 : f32
    %131 = vector.broadcast %cst_88 : f32 to vector<2x4x8xf32>
    %132 = arith.addf %130, %131 : vector<2x4x8xf32>
    %cst_89 = arith.constant dense<0.000000e+00> : vector<2x4xf32>
    %133 = vector.multi_reduction <add>, %132, %cst_89 [2] : vector<2x4x8xf32> to vector<2x4xf32>
    %134 = vector.shape_cast %133 : vector<2x4xf32> to vector<2x4x1xf32>
    %135 = vector.broadcast %134 : vector<2x4x1xf32> to vector<2x4x8xf32>
    %136 = arith.divf %132, %135 : vector<2x4x8xf32>
    %137 = arith.truncf %136 : vector<2x4x8xf32> to vector<2x4x8xbf16>
    "tpu.trace_start"() <{level = 10 : i32, message = "bsn,bnd->bsd"}> : () -> ()
    %cst_90 = arith.constant dense<0.000000e+00> : vector<2x4x32xf32>
    %138 = tpu.matmul %137, %82, %cst_90 {dimension_numbers = #tpu.dot_dimension_numbers<[2], [1], [1], [2], [0, 0, 0, 1, 1, 2], [0], [0]>} : vector<2x4x8xbf16>, vector<2x8x32xbf16>, vector<2x4x32xf32> -> vector<2x4x32xf32>
    "tpu.trace_stop"() : () -> ()
    %139 = vector.shape_cast %138 : vector<2x4x32xf32> to vector<8x32xf32>
    %140 = arith.truncf %139 : vector<8x32xf32> to vector<8x32xbf16>
    %cst_91 = arith.constant dense<0.000000e+00> : vector<8x96xf32>
    %141 = tpu.matmul %140, %9, %cst_91 {dimension_numbers = #tpu.dot_dimension_numbers<[1], [0], [0], [1], [0, 0, 1, 1], [], []>} : vector<8x32xbf16>, vector<32x96xbf16>, vector<8x96xf32> -> vector<8x96xf32>
    %142 = vector.broadcast %37 : vector<1x96xf32> to vector<8x96xf32>
    %143 = arith.addf %141, %142 : vector<8x96xf32>
    %144 = arith.truncf %87 : vector<8x32xf32> to vector<8x32xbf16>
    %cst_92 = arith.constant dense<0.000000e+00> : vector<8x96xf32>
    %145 = tpu.matmul %144, %11, %cst_92 {dimension_numbers = #tpu.dot_dimension_numbers<[1], [0], [0], [1], [0, 0, 1, 1], [], []>} : vector<8x32xbf16>, vector<32x96xbf16>, vector<8x96xf32> -> vector<8x96xf32>
    %146 = vector.broadcast %39 : vector<1x96xf32> to vector<8x96xf32>
    %147 = arith.addf %145, %146 : vector<8x96xf32>
    %148 = vector.extract_strided_slice %143 {offsets = [0, 0], sizes = [8, 64], strides = [1, 1]} : vector<8x96xf32> to vector<8x64xf32>
    %149 = vector.extract_strided_slice %147 {offsets = [0, 0], sizes = [8, 64], strides = [1, 1]} : vector<8x96xf32> to vector<8x64xf32>
    %150 = arith.addf %148, %149 : vector<8x64xf32>
    %151 = arith.negf %150 : vector<8x64xf32>
    %152 = math.exp %151 : vector<8x64xf32>
    %cst_93 = arith.constant 1.000000e+00 : f32
    %153 = vector.broadcast %cst_93 : f32 to vector<8x64xf32>
    %154 = arith.addf %153, %152 : vector<8x64xf32>
    %155 = arith.divf %153, %154 : vector<8x64xf32>
    %156 = vector.extract_strided_slice %155 {offsets = [0, 0], sizes = [8, 32], strides = [1, 1]} : vector<8x64xf32> to vector<8x32xf32>
    %157 = vector.extract_strided_slice %155 {offsets = [0, 32], sizes = [8, 32], strides = [1, 1]} : vector<8x64xf32> to vector<8x32xf32>
    %158 = vector.extract_strided_slice %143 {offsets = [0, 64], sizes = [8, 32], strides = [1, 1]} : vector<8x96xf32> to vector<8x32xf32>
    %159 = vector.extract_strided_slice %147 {offsets = [0, 64], sizes = [8, 32], strides = [1, 1]} : vector<8x96xf32> to vector<8x32xf32>
    %160 = arith.mulf %156, %159 : vector<8x32xf32>
    %161 = arith.addf %158, %160 : vector<8x32xf32>
    %162 = math.tanh %161 : vector<8x32xf32>
    %cst_94 = arith.constant 1.000000e+00 : f32
    %163 = vector.broadcast %cst_94 : f32 to vector<8x32xf32>
    %164 = arith.subf %163, %157 : vector<8x32xf32>
    %165 = arith.mulf %164, %162 : vector<8x32xf32>
    %166 = arith.mulf %157, %87 : vector<8x32xf32>
    %167 = arith.addf %165, %166 : vector<8x32xf32>
    %cst_95 = arith.constant dense<0.000000e+00> : vector<8xf32>
    %168 = vector.multi_reduction <add>, %167, %cst_95 [1] : vector<8x32xf32> to vector<8xf32>
    %169 = vector.shape_cast %168 : vector<8xf32> to vector<8x1xf32>
    %cst_96 = arith.constant 3.200000e+01 : f32
    %170 = vector.broadcast %cst_96 : f32 to vector<8x1xf32>
    %171 = arith.divf %169, %170 : vector<8x1xf32>
    %172 = vector.broadcast %171 : vector<8x1xf32> to vector<8x32xf32>
    %173 = arith.subf %167, %172 : vector<8x32xf32>
    %174 = arith.mulf %173, %173 : vector<8x32xf32>
    %cst_97 = arith.constant dense<0.000000e+00> : vector<8xf32>
    %175 = vector.multi_reduction <add>, %174, %cst_97 [1] : vector<8x32xf32> to vector<8xf32>
    %176 = vector.shape_cast %175 : vector<8xf32> to vector<8x1xf32>
    %cst_98 = arith.constant 3.200000e+01 : f32
    %177 = vector.broadcast %cst_98 : f32 to vector<8x1xf32>
    %178 = arith.divf %176, %177 : vector<8x1xf32>
    %179 = vector.broadcast %171 : vector<8x1xf32> to vector<8x32xf32>
    %180 = arith.subf %167, %179 : vector<8x32xf32>
    %cst_99 = arith.constant 9.99999974E-6 : f32
    %181 = vector.broadcast %cst_99 : f32 to vector<8x1xf32>
    %182 = arith.addf %178, %181 : vector<8x1xf32>
    %183 = math.rsqrt %182 : vector<8x1xf32>
    %184 = vector.broadcast %183 : vector<8x1xf32> to vector<8x32xf32>
    %185 = arith.mulf %180, %184 : vector<8x32xf32>
    %186 = vector.broadcast %29 : vector<1x32xf32> to vector<8x32xf32>
    %187 = arith.mulf %185, %186 : vector<8x32xf32>
    %188 = vector.broadcast %31 : vector<1x32xf32> to vector<8x32xf32>
    %189 = arith.addf %187, %188 : vector<8x32xf32>
    %190 = arith.truncf %189 : vector<8x32xf32> to vector<8x32xbf16>
    %cst_100 = arith.constant dense<0.000000e+00> : vector<8x128xf32>
    %191 = tpu.matmul %190, %13, %cst_100 {dimension_numbers = #tpu.dot_dimension_numbers<[1], [0], [0], [1], [0, 0, 1, 1], [], []>} : vector<8x32xbf16>, vector<32x128xbf16>, vector<8x128xf32> -> vector<8x128xf32>
    %192 = vector.broadcast %41 : vector<1x128xf32> to vector<8x128xf32>
    %193 = arith.addf %191, %192 : vector<8x128xf32>
    %cst_101 = arith.constant 0.000000e+00 : f32
    %194 = vector.broadcast %cst_101 : f32 to vector<8x128xf32>
    %195 = arith.maximumf %193, %194 : vector<8x128xf32>
    %196 = arith.truncf %195 : vector<8x128xf32> to vector<8x128xbf16>
    %cst_102 = arith.constant dense<0.000000e+00> : vector<8x32xf32>
    %197 = tpu.matmul %196, %17, %cst_102 {dimension_numbers = #tpu.dot_dimension_numbers<[1], [0], [0], [1], [0, 0, 1, 1], [], []>} : vector<8x128xbf16>, vector<128x32xbf16>, vector<8x32xf32> -> vector<8x32xf32>
    %198 = arith.addf %167, %197 : vector<8x32xf32>
    %199 = vector.broadcast %43 : vector<1x32xf32> to vector<8x32xf32>
    %200 = arith.addf %198, %199 : vector<8x32xf32>
    %cst_103 = arith.constant dense<0.000000e+00> : vector<8xf32>
    %201 = vector.multi_reduction <add>, %200, %cst_103 [1] : vector<8x32xf32> to vector<8xf32>
    %202 = vector.shape_cast %201 : vector<8xf32> to vector<8x1xf32>
    %cst_104 = arith.constant 3.200000e+01 : f32
    %203 = vector.broadcast %cst_104 : f32 to vector<8x1xf32>
    %204 = arith.divf %202, %203 : vector<8x1xf32>
    %205 = vector.broadcast %204 : vector<8x1xf32> to vector<8x32xf32>
    %206 = arith.subf %200, %205 : vector<8x32xf32>
    %207 = arith.mulf %206, %206 : vector<8x32xf32>
    %cst_105 = arith.constant dense<0.000000e+00> : vector<8xf32>
    %208 = vector.multi_reduction <add>, %207, %cst_105 [1] : vector<8x32xf32> to vector<8xf32>
    %209 = vector.shape_cast %208 : vector<8xf32> to vector<8x1xf32>
    %cst_106 = arith.constant 3.200000e+01 : f32
    %210 = vector.broadcast %cst_106 : f32 to vector<8x1xf32>
    %211 = arith.divf %209, %210 : vector<8x1xf32>
    %212 = vector.broadcast %204 : vector<8x1xf32> to vector<8x32xf32>
    %213 = arith.subf %200, %212 : vector<8x32xf32>
    %cst_107 = arith.constant 9.99999974E-6 : f32
    %214 = vector.broadcast %cst_107 : f32 to vector<8x1xf32>
    %215 = arith.addf %211, %214 : vector<8x1xf32>
    %216 = math.rsqrt %215 : vector<8x1xf32>
    %217 = vector.broadcast %216 : vector<8x1xf32> to vector<8x32xf32>
    %218 = arith.mulf %213, %217 : vector<8x32xf32>
    %219 = vector.broadcast %25 : vector<1x32xf32> to vector<8x32xf32>
    %220 = arith.mulf %218, %219 : vector<8x32xf32>
    %221 = vector.broadcast %27 : vector<1x32xf32> to vector<8x32xf32>
    %222 = arith.addf %220, %221 : vector<8x32xf32>
    %223 = arith.truncf %222 : vector<8x32xf32> to vector<8x32xbf16>
    %cst_108 = arith.constant dense<0.000000e+00> : vector<8x32xf32>
    %224 = tpu.matmul %223, %5, %cst_108 {dimension_numbers = #tpu.dot_dimension_numbers<[1], [0], [0], [1], [0, 0, 1, 1], [], []>} : vector<8x32xbf16>, vector<32x32xbf16>, vector<8x32xf32> -> vector<8x32xf32>
    %225 = vector.broadcast %33 : vector<1x32xf32> to vector<8x32xf32>
    %226 = arith.addf %224, %225 : vector<8x32xf32>
    %227 = arith.truncf %226 : vector<8x32xf32> to vector<8x32xbf16>
    %228 = vector.shape_cast %227 : vector<8x32xbf16> to vector<2x4x32xbf16>
    "tpu.trace_start"() <{level = 10 : i32, message = "bsd,bdn->bsn"}> : () -> ()
    %cst_109 = arith.constant dense<0.000000e+00> : vector<2x4x8xf32>
    %229 = tpu.matmul %228, %84, %cst_109 {dimension_numbers = #tpu.dot_dimension_numbers<[2], [1], [1], [2], [0, 0, 0, 1, 1, 2], [0], [0]>} : vector<2x4x32xbf16>, vector<2x32x8xbf16>, vector<2x4x8xf32> -> vector<2x4x8xf32>
    "tpu.trace_stop"() : () -> ()
    %230 = vector.broadcast %2 : vector<2x1x8xf32> to vector<2x4x8xf32>
    %231 = arith.mulf %229, %230 : vector<2x4x8xf32>
    %232 = vector.broadcast %3 : vector<2x1x8xf32> to vector<2x4x8xf32>
    %233 = arith.addf %231, %232 : vector<2x4x8xf32>
    %cst_110 = arith.constant dense<0xFF800000> : vector<2x8xf32>
    %234 = vector.multi_reduction <maximumf>, %233, %cst_110 [1] : vector<2x4x8xf32> to vector<2x8xf32>
    %235 = vector.shape_cast %234 : vector<2x8xf32> to vector<2x1x8xf32>
    %236 = vector.broadcast %235 : vector<2x1x8xf32> to vector<2x4x8xf32>
    %237 = arith.subf %233, %236 : vector<2x4x8xf32>
    %238 = math.exp %237 : vector<2x4x8xf32>
    %cst_111 = arith.constant dense<0.000000e+00> : vector<2x8xf32>
    %239 = vector.multi_reduction <add>, %238, %cst_111 [1] : vector<2x4x8xf32> to vector<2x8xf32>
    %240 = vector.shape_cast %239 : vector<2x8xf32> to vector<2x1x8xf32>
    %241 = tpu.reciprocal %240 {approx = true} : vector<2x1x8xf32> -> vector<2x1x8xf32>
    %242 = vector.broadcast %241 : vector<2x1x8xf32> to vector<2x4x8xf32>
    %243 = arith.mulf %238, %242 : vector<2x4x8xf32>
    %cst_112 = arith.constant 9.99999993E-9 : f32
    %244 = vector.broadcast %cst_112 : f32 to vector<2x4x8xf32>
    %245 = arith.addf %243, %244 : vector<2x4x8xf32>
    %cst_113 = arith.constant dense<0.000000e+00> : vector<2x4xf32>
    %246 = vector.multi_reduction <add>, %245, %cst_113 [2] : vector<2x4x8xf32> to vector<2x4xf32>
    %247 = vector.shape_cast %246 : vector<2x4xf32> to vector<2x4x1xf32>
    %248 = vector.broadcast %247 : vector<2x4x1xf32> to vector<2x4x8xf32>
    %249 = arith.divf %245, %248 : vector<2x4x8xf32>
    %250 = arith.truncf %249 : vector<2x4x8xf32> to vector<2x4x8xbf16>
    "tpu.trace_start"() <{level = 10 : i32, message = "bsn,bnd->bsd"}> : () -> ()
    %cst_114 = arith.constant dense<0.000000e+00> : vector<2x4x32xf32>
    %251 = tpu.matmul %250, %82, %cst_114 {dimension_numbers = #tpu.dot_dimension_numbers<[2], [1], [1], [2], [0, 0, 0, 1, 1, 2], [0], [0]>} : vector<2x4x8xbf16>, vector<2x8x32xbf16>, vector<2x4x32xf32> -> vector<2x4x32xf32>
    "tpu.trace_stop"() : () -> ()
    %252 = vector.shape_cast %251 : vector<2x4x32xf32> to vector<8x32xf32>
    %253 = arith.truncf %252 : vector<8x32xf32> to vector<8x32xbf16>
    %cst_115 = arith.constant dense<0.000000e+00> : vector<8x96xf32>
    %254 = tpu.matmul %253, %9, %cst_115 {dimension_numbers = #tpu.dot_dimension_numbers<[1], [0], [0], [1], [0, 0, 1, 1], [], []>} : vector<8x32xbf16>, vector<32x96xbf16>, vector<8x96xf32> -> vector<8x96xf32>
    %255 = vector.broadcast %37 : vector<1x96xf32> to vector<8x96xf32>
    %256 = arith.addf %254, %255 : vector<8x96xf32>
    %257 = arith.truncf %200 : vector<8x32xf32> to vector<8x32xbf16>
    %cst_116 = arith.constant dense<0.000000e+00> : vector<8x96xf32>
    %258 = tpu.matmul %257, %11, %cst_116 {dimension_numbers = #tpu.dot_dimension_numbers<[1], [0], [0], [1], [0, 0, 1, 1], [], []>} : vector<8x32xbf16>, vector<32x96xbf16>, vector<8x96xf32> -> vector<8x96xf32>
    %259 = vector.broadcast %39 : vector<1x96xf32> to vector<8x96xf32>
    %260 = arith.addf %258, %259 : vector<8x96xf32>
    %261 = vector.extract_strided_slice %256 {offsets = [0, 0], sizes = [8, 64], strides = [1, 1]} : vector<8x96xf32> to vector<8x64xf32>
    %262 = vector.extract_strided_slice %260 {offsets = [0, 0], sizes = [8, 64], strides = [1, 1]} : vector<8x96xf32> to vector<8x64xf32>
    %263 = arith.addf %261, %262 : vector<8x64xf32>
    %264 = arith.negf %263 : vector<8x64xf32>
    %265 = math.exp %264 : vector<8x64xf32>
    %cst_117 = arith.constant 1.000000e+00 : f32
    %266 = vector.broadcast %cst_117 : f32 to vector<8x64xf32>
    %267 = arith.addf %266, %265 : vector<8x64xf32>
    %268 = arith.divf %266, %267 : vector<8x64xf32>
    %269 = vector.extract_strided_slice %268 {offsets = [0, 0], sizes = [8, 32], strides = [1, 1]} : vector<8x64xf32> to vector<8x32xf32>
    %270 = vector.extract_strided_slice %268 {offsets = [0, 32], sizes = [8, 32], strides = [1, 1]} : vector<8x64xf32> to vector<8x32xf32>
    %271 = vector.extract_strided_slice %256 {offsets = [0, 64], sizes = [8, 32], strides = [1, 1]} : vector<8x96xf32> to vector<8x32xf32>
    %272 = vector.extract_strided_slice %260 {offsets = [0, 64], sizes = [8, 32], strides = [1, 1]} : vector<8x96xf32> to vector<8x32xf32>
    %273 = arith.mulf %269, %272 : vector<8x32xf32>
    %274 = arith.addf %271, %273 : vector<8x32xf32>
    %275 = math.tanh %274 : vector<8x32xf32>
    %cst_118 = arith.constant 1.000000e+00 : f32
    %276 = vector.broadcast %cst_118 : f32 to vector<8x32xf32>
    %277 = arith.subf %276, %270 : vector<8x32xf32>
    %278 = arith.mulf %277, %275 : vector<8x32xf32>
    %279 = arith.mulf %270, %200 : vector<8x32xf32>
    %280 = arith.addf %278, %279 : vector<8x32xf32>
    %cst_119 = arith.constant dense<0.000000e+00> : vector<8xf32>
    %281 = vector.multi_reduction <add>, %280, %cst_119 [1] : vector<8x32xf32> to vector<8xf32>
    %282 = vector.shape_cast %281 : vector<8xf32> to vector<8x1xf32>
    %cst_120 = arith.constant 3.200000e+01 : f32
    %283 = vector.broadcast %cst_120 : f32 to vector<8x1xf32>
    %284 = arith.divf %282, %283 : vector<8x1xf32>
    %285 = vector.broadcast %284 : vector<8x1xf32> to vector<8x32xf32>
    %286 = arith.subf %280, %285 : vector<8x32xf32>
    %287 = arith.mulf %286, %286 : vector<8x32xf32>
    %cst_121 = arith.constant dense<0.000000e+00> : vector<8xf32>
    %288 = vector.multi_reduction <add>, %287, %cst_121 [1] : vector<8x32xf32> to vector<8xf32>
    %289 = vector.shape_cast %288 : vector<8xf32> to vector<8x1xf32>
    %cst_122 = arith.constant 3.200000e+01 : f32
    %290 = vector.broadcast %cst_122 : f32 to vector<8x1xf32>
    %291 = arith.divf %289, %290 : vector<8x1xf32>
    %292 = vector.broadcast %284 : vector<8x1xf32> to vector<8x32xf32>
    %293 = arith.subf %280, %292 : vector<8x32xf32>
    %cst_123 = arith.constant 9.99999974E-6 : f32
    %294 = vector.broadcast %cst_123 : f32 to vector<8x1xf32>
    %295 = arith.addf %291, %294 : vector<8x1xf32>
    %296 = math.rsqrt %295 : vector<8x1xf32>
    %297 = vector.broadcast %296 : vector<8x1xf32> to vector<8x32xf32>
    %298 = arith.mulf %293, %297 : vector<8x32xf32>
    %299 = vector.broadcast %29 : vector<1x32xf32> to vector<8x32xf32>
    %300 = arith.mulf %298, %299 : vector<8x32xf32>
    %301 = vector.broadcast %31 : vector<1x32xf32> to vector<8x32xf32>
    %302 = arith.addf %300, %301 : vector<8x32xf32>
    %303 = arith.truncf %302 : vector<8x32xf32> to vector<8x32xbf16>
    %cst_124 = arith.constant dense<0.000000e+00> : vector<8x128xf32>
    %304 = tpu.matmul %303, %13, %cst_124 {dimension_numbers = #tpu.dot_dimension_numbers<[1], [0], [0], [1], [0, 0, 1, 1], [], []>} : vector<8x32xbf16>, vector<32x128xbf16>, vector<8x128xf32> -> vector<8x128xf32>
    %305 = vector.broadcast %41 : vector<1x128xf32> to vector<8x128xf32>
    %306 = arith.addf %304, %305 : vector<8x128xf32>
    %cst_125 = arith.constant 0.000000e+00 : f32
    %307 = vector.broadcast %cst_125 : f32 to vector<8x128xf32>
    %308 = arith.maximumf %306, %307 : vector<8x128xf32>
    %309 = arith.truncf %308 : vector<8x128xf32> to vector<8x128xbf16>
    %cst_126 = arith.constant dense<0.000000e+00> : vector<8x32xf32>
    %310 = tpu.matmul %309, %17, %cst_126 {dimension_numbers = #tpu.dot_dimension_numbers<[1], [0], [0], [1], [0, 0, 1, 1], [], []>} : vector<8x128xbf16>, vector<128x32xbf16>, vector<8x32xf32> -> vector<8x32xf32>
    %311 = arith.addf %280, %310 : vector<8x32xf32>
    %312 = vector.broadcast %43 : vector<1x32xf32> to vector<8x32xf32>
    %313 = arith.addf %311, %312 : vector<8x32xf32>
    %cst_127 = arith.constant dense<0.000000e+00> : vector<8xf32>
    %314 = vector.multi_reduction <add>, %313, %cst_127 [1] : vector<8x32xf32> to vector<8xf32>
    %315 = vector.shape_cast %314 : vector<8xf32> to vector<8x1xf32>
    %cst_128 = arith.constant 3.200000e+01 : f32
    %316 = vector.broadcast %cst_128 : f32 to vector<8x1xf32>
    %317 = arith.divf %315, %316 : vector<8x1xf32>
    %318 = vector.broadcast %317 : vector<8x1xf32> to vector<8x32xf32>
    %319 = arith.subf %313, %318 : vector<8x32xf32>
    %320 = arith.mulf %319, %319 : vector<8x32xf32>
    %cst_129 = arith.constant dense<0.000000e+00> : vector<8xf32>
    %321 = vector.multi_reduction <add>, %320, %cst_129 [1] : vector<8x32xf32> to vector<8xf32>
    %322 = vector.shape_cast %321 : vector<8xf32> to vector<8x1xf32>
    %cst_130 = arith.constant 3.200000e+01 : f32
    %323 = vector.broadcast %cst_130 : f32 to vector<8x1xf32>
    %324 = arith.divf %322, %323 : vector<8x1xf32>
    %325 = vector.broadcast %317 : vector<8x1xf32> to vector<8x32xf32>
    %326 = arith.subf %313, %325 : vector<8x32xf32>
    %cst_131 = arith.constant 9.99999974E-6 : f32
    %327 = vector.broadcast %cst_131 : f32 to vector<8x1xf32>
    %328 = arith.addf %324, %327 : vector<8x1xf32>
    %329 = math.rsqrt %328 : vector<8x1xf32>
    %330 = vector.broadcast %329 : vector<8x1xf32> to vector<8x32xf32>
    %331 = arith.mulf %326, %330 : vector<8x32xf32>
    %332 = vector.broadcast %25 : vector<1x32xf32> to vector<8x32xf32>
    %333 = arith.mulf %331, %332 : vector<8x32xf32>
    %334 = vector.broadcast %27 : vector<1x32xf32> to vector<8x32xf32>
    %335 = arith.addf %333, %334 : vector<8x32xf32>
    %336 = arith.truncf %335 : vector<8x32xf32> to vector<8x32xbf16>
    %cst_132 = arith.constant dense<0.000000e+00> : vector<8x32xf32>
    %337 = tpu.matmul %336, %5, %cst_132 {dimension_numbers = #tpu.dot_dimension_numbers<[1], [0], [0], [1], [0, 0, 1, 1], [], []>} : vector<8x32xbf16>, vector<32x32xbf16>, vector<8x32xf32> -> vector<8x32xf32>
    %338 = vector.broadcast %33 : vector<1x32xf32> to vector<8x32xf32>
    %339 = arith.addf %337, %338 : vector<8x32xf32>
    %340 = arith.truncf %339 : vector<8x32xf32> to vector<8x32xbf16>
    %341 = vector.shape_cast %340 : vector<8x32xbf16> to vector<2x4x32xbf16>
    "tpu.trace_start"() <{level = 10 : i32, message = "bsd,bdn->bsn"}> : () -> ()
    %cst_133 = arith.constant dense<0.000000e+00> : vector<2x4x8xf32>
    %342 = tpu.matmul %341, %84, %cst_133 {dimension_numbers = #tpu.dot_dimension_numbers<[2], [1], [1], [2], [0, 0, 0, 1, 1, 2], [0], [0]>} : vector<2x4x32xbf16>, vector<2x32x8xbf16>, vector<2x4x8xf32> -> vector<2x4x8xf32>
    "tpu.trace_stop"() : () -> ()
    %343 = vector.broadcast %2 : vector<2x1x8xf32> to vector<2x4x8xf32>
    %344 = arith.mulf %342, %343 : vector<2x4x8xf32>
    %345 = vector.broadcast %3 : vector<2x1x8xf32> to vector<2x4x8xf32>
    %346 = arith.addf %344, %345 : vector<2x4x8xf32>
    %cst_134 = arith.constant dense<0xFF800000> : vector<2x8xf32>
    %347 = vector.multi_reduction <maximumf>, %346, %cst_134 [1] : vector<2x4x8xf32> to vector<2x8xf32>
    %348 = vector.shape_cast %347 : vector<2x8xf32> to vector<2x1x8xf32>
    %349 = vector.broadcast %348 : vector<2x1x8xf32> to vector<2x4x8xf32>
    %350 = arith.subf %346, %349 : vector<2x4x8xf32>
    %351 = math.exp %350 : vector<2x4x8xf32>
    %cst_135 = arith.constant dense<0.000000e+00> : vector<2x8xf32>
    %352 = vector.multi_reduction <add>, %351, %cst_135 [1] : vector<2x4x8xf32> to vector<2x8xf32>
    %353 = vector.shape_cast %352 : vector<2x8xf32> to vector<2x1x8xf32>
    %354 = tpu.reciprocal %353 {approx = true} : vector<2x1x8xf32> -> vector<2x1x8xf32>
    %355 = vector.broadcast %354 : vector<2x1x8xf32> to vector<2x4x8xf32>
    %356 = arith.mulf %351, %355 : vector<2x4x8xf32>
    %cst_136 = arith.constant 9.99999993E-9 : f32
    %357 = vector.broadcast %cst_136 : f32 to vector<2x4x8xf32>
    %358 = arith.addf %356, %357 : vector<2x4x8xf32>
    %cst_137 = arith.constant dense<0.000000e+00> : vector<2x4xf32>
    %359 = vector.multi_reduction <add>, %358, %cst_137 [2] : vector<2x4x8xf32> to vector<2x4xf32>
    %360 = vector.shape_cast %359 : vector<2x4xf32> to vector<2x4x1xf32>
    %361 = vector.broadcast %360 : vector<2x4x1xf32> to vector<2x4x8xf32>
    %362 = arith.divf %358, %361 : vector<2x4x8xf32>
    %363 = arith.truncf %362 : vector<2x4x8xf32> to vector<2x4x8xbf16>
    "tpu.trace_start"() <{level = 10 : i32, message = "bsn,bnd->bsd"}> : () -> ()
    %cst_138 = arith.constant dense<0.000000e+00> : vector<2x4x32xf32>
    %364 = tpu.matmul %363, %82, %cst_138 {dimension_numbers = #tpu.dot_dimension_numbers<[2], [1], [1], [2], [0, 0, 0, 1, 1, 2], [0], [0]>} : vector<2x4x8xbf16>, vector<2x8x32xbf16>, vector<2x4x32xf32> -> vector<2x4x32xf32>
    "tpu.trace_stop"() : () -> ()
    %365 = vector.shape_cast %364 : vector<2x4x32xf32> to vector<8x32xf32>
    %366 = arith.truncf %365 : vector<8x32xf32> to vector<8x32xbf16>
    %cst_139 = arith.constant dense<0.000000e+00> : vector<8x96xf32>
    %367 = tpu.matmul %366, %9, %cst_139 {dimension_numbers = #tpu.dot_dimension_numbers<[1], [0], [0], [1], [0, 0, 1, 1], [], []>} : vector<8x32xbf16>, vector<32x96xbf16>, vector<8x96xf32> -> vector<8x96xf32>
    %368 = vector.broadcast %37 : vector<1x96xf32> to vector<8x96xf32>
    %369 = arith.addf %367, %368 : vector<8x96xf32>
    %370 = arith.truncf %313 : vector<8x32xf32> to vector<8x32xbf16>
    %cst_140 = arith.constant dense<0.000000e+00> : vector<8x96xf32>
    %371 = tpu.matmul %370, %11, %cst_140 {dimension_numbers = #tpu.dot_dimension_numbers<[1], [0], [0], [1], [0, 0, 1, 1], [], []>} : vector<8x32xbf16>, vector<32x96xbf16>, vector<8x96xf32> -> vector<8x96xf32>
    %372 = vector.broadcast %39 : vector<1x96xf32> to vector<8x96xf32>
    %373 = arith.addf %371, %372 : vector<8x96xf32>
    %374 = vector.extract_strided_slice %369 {offsets = [0, 0], sizes = [8, 64], strides = [1, 1]} : vector<8x96xf32> to vector<8x64xf32>
    %375 = vector.extract_strided_slice %373 {offsets = [0, 0], sizes = [8, 64], strides = [1, 1]} : vector<8x96xf32> to vector<8x64xf32>
    %376 = arith.addf %374, %375 : vector<8x64xf32>
    %377 = arith.negf %376 : vector<8x64xf32>
    %378 = math.exp %377 : vector<8x64xf32>
    %cst_141 = arith.constant 1.000000e+00 : f32
    %379 = vector.broadcast %cst_141 : f32 to vector<8x64xf32>
    %380 = arith.addf %379, %378 : vector<8x64xf32>
    %381 = arith.divf %379, %380 : vector<8x64xf32>
    %382 = vector.extract_strided_slice %381 {offsets = [0, 0], sizes = [8, 32], strides = [1, 1]} : vector<8x64xf32> to vector<8x32xf32>
    %383 = vector.extract_strided_slice %381 {offsets = [0, 32], sizes = [8, 32], strides = [1, 1]} : vector<8x64xf32> to vector<8x32xf32>
    %384 = vector.extract_strided_slice %369 {offsets = [0, 64], sizes = [8, 32], strides = [1, 1]} : vector<8x96xf32> to vector<8x32xf32>
    %385 = vector.extract_strided_slice %373 {offsets = [0, 64], sizes = [8, 32], strides = [1, 1]} : vector<8x96xf32> to vector<8x32xf32>
    %386 = arith.mulf %382, %385 : vector<8x32xf32>
    %387 = arith.addf %384, %386 : vector<8x32xf32>
    %388 = math.tanh %387 : vector<8x32xf32>
    %cst_142 = arith.constant 1.000000e+00 : f32
    %389 = vector.broadcast %cst_142 : f32 to vector<8x32xf32>
    %390 = arith.subf %389, %383 : vector<8x32xf32>
    %391 = arith.mulf %390, %388 : vector<8x32xf32>
    %392 = arith.mulf %383, %313 : vector<8x32xf32>
    %393 = arith.addf %391, %392 : vector<8x32xf32>
    %cst_143 = arith.constant dense<0.000000e+00> : vector<8xf32>
    %394 = vector.multi_reduction <add>, %393, %cst_143 [1] : vector<8x32xf32> to vector<8xf32>
    %395 = vector.shape_cast %394 : vector<8xf32> to vector<8x1xf32>
    %cst_144 = arith.constant 3.200000e+01 : f32
    %396 = vector.broadcast %cst_144 : f32 to vector<8x1xf32>
    %397 = arith.divf %395, %396 : vector<8x1xf32>
    %398 = vector.broadcast %397 : vector<8x1xf32> to vector<8x32xf32>
    %399 = arith.subf %393, %398 : vector<8x32xf32>
    %400 = arith.mulf %399, %399 : vector<8x32xf32>
    %cst_145 = arith.constant dense<0.000000e+00> : vector<8xf32>
    %401 = vector.multi_reduction <add>, %400, %cst_145 [1] : vector<8x32xf32> to vector<8xf32>
    %402 = vector.shape_cast %401 : vector<8xf32> to vector<8x1xf32>
    %cst_146 = arith.constant 3.200000e+01 : f32
    %403 = vector.broadcast %cst_146 : f32 to vector<8x1xf32>
    %404 = arith.divf %402, %403 : vector<8x1xf32>
    %405 = vector.broadcast %397 : vector<8x1xf32> to vector<8x32xf32>
    %406 = arith.subf %393, %405 : vector<8x32xf32>
    %cst_147 = arith.constant 9.99999974E-6 : f32
    %407 = vector.broadcast %cst_147 : f32 to vector<8x1xf32>
    %408 = arith.addf %404, %407 : vector<8x1xf32>
    %409 = math.rsqrt %408 : vector<8x1xf32>
    %410 = vector.broadcast %409 : vector<8x1xf32> to vector<8x32xf32>
    %411 = arith.mulf %406, %410 : vector<8x32xf32>
    %412 = vector.broadcast %29 : vector<1x32xf32> to vector<8x32xf32>
    %413 = arith.mulf %411, %412 : vector<8x32xf32>
    %414 = vector.broadcast %31 : vector<1x32xf32> to vector<8x32xf32>
    %415 = arith.addf %413, %414 : vector<8x32xf32>
    %416 = arith.truncf %415 : vector<8x32xf32> to vector<8x32xbf16>
    %cst_148 = arith.constant dense<0.000000e+00> : vector<8x128xf32>
    %417 = tpu.matmul %416, %13, %cst_148 {dimension_numbers = #tpu.dot_dimension_numbers<[1], [0], [0], [1], [0, 0, 1, 1], [], []>} : vector<8x32xbf16>, vector<32x128xbf16>, vector<8x128xf32> -> vector<8x128xf32>
    %418 = vector.broadcast %41 : vector<1x128xf32> to vector<8x128xf32>
    %419 = arith.addf %417, %418 : vector<8x128xf32>
    %cst_149 = arith.constant 0.000000e+00 : f32
    %420 = vector.broadcast %cst_149 : f32 to vector<8x128xf32>
    %421 = arith.maximumf %419, %420 : vector<8x128xf32>
    %422 = arith.truncf %421 : vector<8x128xf32> to vector<8x128xbf16>
    %cst_150 = arith.constant dense<0.000000e+00> : vector<8x32xf32>
    %423 = tpu.matmul %422, %17, %cst_150 {dimension_numbers = #tpu.dot_dimension_numbers<[1], [0], [0], [1], [0, 0, 1, 1], [], []>} : vector<8x128xbf16>, vector<128x32xbf16>, vector<8x32xf32> -> vector<8x32xf32>
    %424 = arith.addf %393, %423 : vector<8x32xf32>
    %425 = vector.broadcast %43 : vector<1x32xf32> to vector<8x32xf32>
    %426 = arith.addf %424, %425 : vector<8x32xf32>
    %427 = arith.truncf %426 : vector<8x32xf32> to vector<8x32xbf16>
    %cst_151 = arith.constant dense<0.000000e+00> : vector<8x64xf32>
    %428 = tpu.matmul %427, %15, %cst_151 {dimension_numbers = #tpu.dot_dimension_numbers<[1], [0], [0], [1], [0, 0, 1, 1], [], []>} : vector<8x32xbf16>, vector<32x64xbf16>, vector<8x64xf32> -> vector<8x64xf32>
    %429 = vector.broadcast %45 : vector<1x64xf32> to vector<8x64xf32>
    %430 = arith.addf %428, %429 : vector<8x64xf32>
    %cst_152 = arith.constant 0.000000e+00 : f32
    %431 = vector.broadcast %cst_152 : f32 to vector<8x64xf32>
    %432 = arith.maximumf %430, %431 : vector<8x64xf32>
    %433 = arith.truncf %432 : vector<8x64xf32> to vector<8x64xbf16>
    %cst_153 = arith.constant dense<0.000000e+00> : vector<8x32xf32>
    %434 = tpu.matmul %433, %19, %cst_153 {dimension_numbers = #tpu.dot_dimension_numbers<[1], [0], [0], [1], [0, 0, 1, 1], [], []>} : vector<8x64xbf16>, vector<64x32xbf16>, vector<8x32xf32> -> vector<8x32xf32>
    %435 = vector.broadcast %47 : vector<1x32xf32> to vector<8x32xf32>
    %436 = arith.addf %434, %435 : vector<8x32xf32>
    %437 = arith.addf %426, %436 : vector<8x32xf32>
    %cst_154 = arith.constant dense<0.000000e+00> : vector<8xf32>
    %438 = vector.multi_reduction <add>, %437, %cst_154 [1] : vector<8x32xf32> to vector<8xf32>
    %439 = vector.shape_cast %438 : vector<8xf32> to vector<8x1xf32>
    %cst_155 = arith.constant 3.200000e+01 : f32
    %440 = vector.broadcast %cst_155 : f32 to vector<8x1xf32>
    %441 = arith.divf %439, %440 : vector<8x1xf32>
    %442 = vector.broadcast %441 : vector<8x1xf32> to vector<8x32xf32>
    %443 = arith.subf %437, %442 : vector<8x32xf32>
    %444 = arith.mulf %443, %443 : vector<8x32xf32>
    %cst_156 = arith.constant dense<0.000000e+00> : vector<8xf32>
    %445 = vector.multi_reduction <add>, %444, %cst_156 [1] : vector<8x32xf32> to vector<8xf32>
    %446 = vector.shape_cast %445 : vector<8xf32> to vector<8x1xf32>
    %cst_157 = arith.constant 3.200000e+01 : f32
    %447 = vector.broadcast %cst_157 : f32 to vector<8x1xf32>
    %448 = arith.divf %446, %447 : vector<8x1xf32>
    %449 = vector.broadcast %441 : vector<8x1xf32> to vector<8x32xf32>
    %450 = arith.subf %437, %449 : vector<8x32xf32>
    %cst_158 = arith.constant 9.99999974E-6 : f32
    %451 = vector.broadcast %cst_158 : f32 to vector<8x1xf32>
    %452 = arith.addf %448, %451 : vector<8x1xf32>
    %453 = math.rsqrt %452 : vector<8x1xf32>
    %454 = vector.broadcast %453 : vector<8x1xf32> to vector<8x32xf32>
    %455 = arith.mulf %450, %454 : vector<8x32xf32>
    %456 = vector.broadcast %49 : vector<1x32xf32> to vector<8x32xf32>
    %457 = arith.mulf %455, %456 : vector<8x32xf32>
    %458 = vector.broadcast %51 : vector<1x32xf32> to vector<8x32xf32>
    %459 = arith.addf %457, %458 : vector<8x32xf32>
    %c1_159 = arith.constant 1 : index
    %c0_160 = arith.constant 0 : index
    %c0_161 = arith.constant 0 : index
    %c0_162 = arith.constant 0 : index
    %460 = vector.load %arg5[%c1_159, %c0_160, %c0_161, %c0_162] : memref<2x6x32x128xbf16, #tpu.memory_space<vmem>>, vector<1x1x32x32xbf16>
    %461 = vector.shape_cast %460 : vector<1x1x32x32xbf16> to vector<32x32xbf16>
    %c1_163 = arith.constant 1 : index
    %c1_164 = arith.constant 1 : index
    %c0_165 = arith.constant 0 : index
    %c0_166 = arith.constant 0 : index
    %462 = vector.load %arg5[%c1_163, %c1_164, %c0_165, %c0_166] : memref<2x6x32x128xbf16, #tpu.memory_space<vmem>>, vector<1x1x32x64xbf16>
    %463 = vector.shape_cast %462 : vector<1x1x32x64xbf16> to vector<32x64xbf16>
    %c1_167 = arith.constant 1 : index
    %c2_168 = arith.constant 2 : index
    %c0_169 = arith.constant 0 : index
    %c0_170 = arith.constant 0 : index
    %464 = vector.load %arg5[%c1_167, %c2_168, %c0_169, %c0_170] : memref<2x6x32x128xbf16, #tpu.memory_space<vmem>>, vector<1x1x32x96xbf16>
    %465 = vector.shape_cast %464 : vector<1x1x32x96xbf16> to vector<32x96xbf16>
    %c1_171 = arith.constant 1 : index
    %c3_172 = arith.constant 3 : index
    %c0_173 = arith.constant 0 : index
    %c0_174 = arith.constant 0 : index
    %466 = vector.load %arg5[%c1_171, %c3_172, %c0_173, %c0_174] : memref<2x6x32x128xbf16, #tpu.memory_space<vmem>>, vector<1x1x32x96xbf16>
    %467 = vector.shape_cast %466 : vector<1x1x32x96xbf16> to vector<32x96xbf16>
    %c1_175 = arith.constant 1 : index
    %c4_176 = arith.constant 4 : index
    %c0_177 = arith.constant 0 : index
    %c0_178 = arith.constant 0 : index
    %468 = vector.load %arg5[%c1_175, %c4_176, %c0_177, %c0_178] : memref<2x6x32x128xbf16, #tpu.memory_space<vmem>>, vector<1x1x32x128xbf16>
    %469 = vector.shape_cast %468 : vector<1x1x32x128xbf16> to vector<32x128xbf16>
    %c1_179 = arith.constant 1 : index
    %c5_180 = arith.constant 5 : index
    %c0_181 = arith.constant 0 : index
    %c0_182 = arith.constant 0 : index
    %470 = vector.load %arg5[%c1_179, %c5_180, %c0_181, %c0_182] : memref<2x6x32x128xbf16, #tpu.memory_space<vmem>>, vector<1x1x32x64xbf16>
    %471 = vector.shape_cast %470 : vector<1x1x32x64xbf16> to vector<32x64xbf16>
    %c1_183 = arith.constant 1 : index
    %c0_184 = arith.constant 0 : index
    %c0_185 = arith.constant 0 : index
    %472 = vector.load %arg6[%c1_183, %c0_184, %c0_185] : memref<2x192x32xbf16, #tpu.memory_space<vmem>>, vector<1x128x32xbf16>
    %473 = vector.shape_cast %472 : vector<1x128x32xbf16> to vector<128x32xbf16>
    %c1_186 = arith.constant 1 : index
    %c128_187 = arith.constant 128 : index
    %c0_188 = arith.constant 0 : index
    %474 = vector.load %arg6[%c1_186, %c128_187, %c0_188] : memref<2x192x32xbf16, #tpu.memory_space<vmem>>, vector<1x64x32xbf16>
    %475 = vector.shape_cast %474 : vector<1x64x32xbf16> to vector<64x32xbf16>
    %c1_189 = arith.constant 1 : index
    %c0_190 = arith.constant 0 : index
    %c0_191 = arith.constant 0 : index
    %476 = vector.load %arg7[%c1_189, %c0_190, %c0_191] : memref<2x18x128xf32, #tpu.memory_space<vmem>>, vector<1x1x32xf32>
    %477 = vector.shape_cast %476 : vector<1x1x32xf32> to vector<1x32xf32>
    %c1_192 = arith.constant 1 : index
    %c1_193 = arith.constant 1 : index
    %c0_194 = arith.constant 0 : index
    %478 = vector.load %arg7[%c1_192, %c1_193, %c0_194] : memref<2x18x128xf32, #tpu.memory_space<vmem>>, vector<1x1x32xf32>
    %479 = vector.shape_cast %478 : vector<1x1x32xf32> to vector<1x32xf32>
    %c1_195 = arith.constant 1 : index
    %c2_196 = arith.constant 2 : index
    %c0_197 = arith.constant 0 : index
    %480 = vector.load %arg7[%c1_195, %c2_196, %c0_197] : memref<2x18x128xf32, #tpu.memory_space<vmem>>, vector<1x1x32xf32>
    %481 = vector.shape_cast %480 : vector<1x1x32xf32> to vector<1x32xf32>
    %c1_198 = arith.constant 1 : index
    %c3_199 = arith.constant 3 : index
    %c0_200 = arith.constant 0 : index
    %482 = vector.load %arg7[%c1_198, %c3_199, %c0_200] : memref<2x18x128xf32, #tpu.memory_space<vmem>>, vector<1x1x32xf32>
    %483 = vector.shape_cast %482 : vector<1x1x32xf32> to vector<1x32xf32>
    %c1_201 = arith.constant 1 : index
    %c4_202 = arith.constant 4 : index
    %c0_203 = arith.constant 0 : index
    %484 = vector.load %arg7[%c1_201, %c4_202, %c0_203] : memref<2x18x128xf32, #tpu.memory_space<vmem>>, vector<1x1x32xf32>
    %485 = vector.shape_cast %484 : vector<1x1x32xf32> to vector<1x32xf32>
    %c1_204 = arith.constant 1 : index
    %c5_205 = arith.constant 5 : index
    %c0_206 = arith.constant 0 : index
    %486 = vector.load %arg7[%c1_204, %c5_205, %c0_206] : memref<2x18x128xf32, #tpu.memory_space<vmem>>, vector<1x1x32xf32>
    %487 = vector.shape_cast %486 : vector<1x1x32xf32> to vector<1x32xf32>
    %c1_207 = arith.constant 1 : index
    %c6_208 = arith.constant 6 : index
    %c0_209 = arith.constant 0 : index
    %488 = vector.load %arg7[%c1_207, %c6_208, %c0_209] : memref<2x18x128xf32, #tpu.memory_space<vmem>>, vector<1x1x32xf32>
    %489 = vector.shape_cast %488 : vector<1x1x32xf32> to vector<1x32xf32>
    %c1_210 = arith.constant 1 : index
    %c7_211 = arith.constant 7 : index
    %c0_212 = arith.constant 0 : index
    %490 = vector.load %arg7[%c1_210, %c7_211, %c0_212] : memref<2x18x128xf32, #tpu.memory_space<vmem>>, vector<1x1x64xf32>
    %491 = vector.shape_cast %490 : vector<1x1x64xf32> to vector<1x64xf32>
    %c1_213 = arith.constant 1 : index
    %c8_214 = arith.constant 8 : index
    %c0_215 = arith.constant 0 : index
    %492 = vector.load %arg7[%c1_213, %c8_214, %c0_215] : memref<2x18x128xf32, #tpu.memory_space<vmem>>, vector<1x1x96xf32>
    %493 = vector.shape_cast %492 : vector<1x1x96xf32> to vector<1x96xf32>
    %c1_216 = arith.constant 1 : index
    %c9_217 = arith.constant 9 : index
    %c0_218 = arith.constant 0 : index
    %494 = vector.load %arg7[%c1_216, %c9_217, %c0_218] : memref<2x18x128xf32, #tpu.memory_space<vmem>>, vector<1x1x96xf32>
    %495 = vector.shape_cast %494 : vector<1x1x96xf32> to vector<1x96xf32>
    %c1_219 = arith.constant 1 : index
    %c10_220 = arith.constant 10 : index
    %c0_221 = arith.constant 0 : index
    %496 = vector.load %arg7[%c1_219, %c10_220, %c0_221] : memref<2x18x128xf32, #tpu.memory_space<vmem>>, vector<1x1x128xf32>
    %497 = vector.shape_cast %496 : vector<1x1x128xf32> to vector<1x128xf32>
    %c1_222 = arith.constant 1 : index
    %c11_223 = arith.constant 11 : index
    %c0_224 = arith.constant 0 : index
    %498 = vector.load %arg7[%c1_222, %c11_223, %c0_224] : memref<2x18x128xf32, #tpu.memory_space<vmem>>, vector<1x1x32xf32>
    %499 = vector.shape_cast %498 : vector<1x1x32xf32> to vector<1x32xf32>
    %c1_225 = arith.constant 1 : index
    %c12_226 = arith.constant 12 : index
    %c0_227 = arith.constant 0 : index
    %500 = vector.load %arg7[%c1_225, %c12_226, %c0_227] : memref<2x18x128xf32, #tpu.memory_space<vmem>>, vector<1x1x64xf32>
    %501 = vector.shape_cast %500 : vector<1x1x64xf32> to vector<1x64xf32>
    %c1_228 = arith.constant 1 : index
    %c13_229 = arith.constant 13 : index
    %c0_230 = arith.constant 0 : index
    %502 = vector.load %arg7[%c1_228, %c13_229, %c0_230] : memref<2x18x128xf32, #tpu.memory_space<vmem>>, vector<1x1x32xf32>
    %503 = vector.shape_cast %502 : vector<1x1x32xf32> to vector<1x32xf32>
    %c1_231 = arith.constant 1 : index
    %c14 = arith.constant 14 : index
    %c0_232 = arith.constant 0 : index
    %504 = vector.load %arg7[%c1_231, %c14, %c0_232] : memref<2x18x128xf32, #tpu.memory_space<vmem>>, vector<1x1x32xf32>
    %505 = vector.shape_cast %504 : vector<1x1x32xf32> to vector<1x32xf32>
    %c1_233 = arith.constant 1 : index
    %c15 = arith.constant 15 : index
    %c0_234 = arith.constant 0 : index
    %506 = vector.load %arg7[%c1_233, %c15, %c0_234] : memref<2x18x128xf32, #tpu.memory_space<vmem>>, vector<1x1x32xf32>
    %507 = vector.shape_cast %506 : vector<1x1x32xf32> to vector<1x32xf32>
    %c1_235 = arith.constant 1 : index
    %c16_236 = arith.constant 16 : index
    %c0_237 = arith.constant 0 : index
    %508 = vector.load %arg7[%c1_235, %c16_236, %c0_237] : memref<2x18x128xf32, #tpu.memory_space<vmem>>, vector<1x1x32xf32>
    %509 = vector.shape_cast %508 : vector<1x1x32xf32> to vector<1x32xf32>
    %c1_238 = arith.constant 1 : index
    %c17_239 = arith.constant 17 : index
    %c0_240 = arith.constant 0 : index
    %510 = vector.load %arg7[%c1_238, %c17_239, %c0_240] : memref<2x18x128xf32, #tpu.memory_space<vmem>>, vector<1x1x32xf32>
    %511 = vector.shape_cast %510 : vector<1x1x32xf32> to vector<1x32xf32>
    %cst_241 = arith.constant dense<0.000000e+00> : vector<8xf32>
    %512 = vector.multi_reduction <add>, %459, %cst_241 [1] : vector<8x32xf32> to vector<8xf32>
    %513 = vector.shape_cast %512 : vector<8xf32> to vector<8x1xf32>
    %cst_242 = arith.constant 3.200000e+01 : f32
    %514 = vector.broadcast %cst_242 : f32 to vector<8x1xf32>
    %515 = arith.divf %513, %514 : vector<8x1xf32>
    %516 = vector.broadcast %515 : vector<8x1xf32> to vector<8x32xf32>
    %517 = arith.subf %459, %516 : vector<8x32xf32>
    %518 = arith.mulf %517, %517 : vector<8x32xf32>
    %cst_243 = arith.constant dense<0.000000e+00> : vector<8xf32>
    %519 = vector.multi_reduction <add>, %518, %cst_243 [1] : vector<8x32xf32> to vector<8xf32>
    %520 = vector.shape_cast %519 : vector<8xf32> to vector<8x1xf32>
    %cst_244 = arith.constant 3.200000e+01 : f32
    %521 = vector.broadcast %cst_244 : f32 to vector<8x1xf32>
    %522 = arith.divf %520, %521 : vector<8x1xf32>
    %523 = vector.broadcast %515 : vector<8x1xf32> to vector<8x32xf32>
    %524 = arith.subf %459, %523 : vector<8x32xf32>
    %cst_245 = arith.constant 9.99999974E-6 : f32
    %525 = vector.broadcast %cst_245 : f32 to vector<8x1xf32>
    %526 = arith.addf %522, %525 : vector<8x1xf32>
    %527 = math.rsqrt %526 : vector<8x1xf32>
    %528 = vector.broadcast %527 : vector<8x1xf32> to vector<8x32xf32>
    %529 = arith.mulf %524, %528 : vector<8x32xf32>
    %530 = vector.broadcast %477 : vector<1x32xf32> to vector<8x32xf32>
    %531 = arith.mulf %529, %530 : vector<8x32xf32>
    %532 = vector.broadcast %479 : vector<1x32xf32> to vector<8x32xf32>
    %533 = arith.addf %531, %532 : vector<8x32xf32>
    %534 = arith.truncf %533 : vector<8x32xf32> to vector<8x32xbf16>
    %cst_246 = arith.constant dense<0.000000e+00> : vector<8x64xf32>
    %535 = tpu.matmul %534, %463, %cst_246 {dimension_numbers = #tpu.dot_dimension_numbers<[1], [0], [0], [1], [0, 0, 1, 1], [], []>} : vector<8x32xbf16>, vector<32x64xbf16>, vector<8x64xf32> -> vector<8x64xf32>
    %536 = vector.broadcast %491 : vector<1x64xf32> to vector<8x64xf32>
    %537 = arith.addf %535, %536 : vector<8x64xf32>
    %538 = vector.extract_strided_slice %537 {offsets = [0, 0], sizes = [8, 32], strides = [1, 1]} : vector<8x64xf32> to vector<8x32xf32>
    %539 = vector.shape_cast %538 : vector<8x32xf32> to vector<2x4x32xf32>
    %540 = vector.extract_strided_slice %537 {offsets = [0, 32], sizes = [8, 32], strides = [1, 1]} : vector<8x64xf32> to vector<8x32xf32>
    %541 = arith.truncf %540 : vector<8x32xf32> to vector<8x32xbf16>
    %542 = vector.shape_cast %541 : vector<8x32xbf16> to vector<2x4x32xbf16>
    %543 = tpu.transpose %539, [0, 2, 1] : vector<2x4x32xf32> -> vector<2x32x4xf32>
    %544 = arith.truncf %543 : vector<2x32x4xf32> to vector<2x32x4xbf16>
    %c1_247 = arith.constant 1 : index
    %c0_248 = arith.constant 0 : index
    %c0_249 = arith.constant 0 : index
    %c0_250 = arith.constant 0 : index
    %545 = vector.load %arg4[%c1_247, %c0_248, %c0_249, %c0_250] : memref<2x2x4x32xf32, #tpu.memory_space<vmem>>, vector<1x2x4x32xf32>
    %546 = vector.shape_cast %545 : vector<1x2x4x32xf32> to vector<2x4x32xf32>
    %547 = vector.shape_cast %546 : vector<2x4x32xf32> to vector<8x32xf32>
    %cst_251 = arith.constant dense<0.000000e+00> : vector<8xf32>
    %548 = vector.multi_reduction <add>, %547, %cst_251 [1] : vector<8x32xf32> to vector<8xf32>
    %549 = vector.shape_cast %548 : vector<8xf32> to vector<8x1xf32>
    %cst_252 = arith.constant 3.200000e+01 : f32
    %550 = vector.broadcast %cst_252 : f32 to vector<8x1xf32>
    %551 = arith.divf %549, %550 : vector<8x1xf32>
    %552 = vector.broadcast %551 : vector<8x1xf32> to vector<8x32xf32>
    %553 = arith.subf %547, %552 : vector<8x32xf32>
    %554 = arith.mulf %553, %553 : vector<8x32xf32>
    %cst_253 = arith.constant dense<0.000000e+00> : vector<8xf32>
    %555 = vector.multi_reduction <add>, %554, %cst_253 [1] : vector<8x32xf32> to vector<8xf32>
    %556 = vector.shape_cast %555 : vector<8xf32> to vector<8x1xf32>
    %cst_254 = arith.constant 3.200000e+01 : f32
    %557 = vector.broadcast %cst_254 : f32 to vector<8x1xf32>
    %558 = arith.divf %556, %557 : vector<8x1xf32>
    %559 = vector.broadcast %551 : vector<8x1xf32> to vector<8x32xf32>
    %560 = arith.subf %547, %559 : vector<8x32xf32>
    %cst_255 = arith.constant 9.99999974E-6 : f32
    %561 = vector.broadcast %cst_255 : f32 to vector<8x1xf32>
    %562 = arith.addf %558, %561 : vector<8x1xf32>
    %563 = math.rsqrt %562 : vector<8x1xf32>
    %564 = vector.broadcast %563 : vector<8x1xf32> to vector<8x32xf32>
    %565 = arith.mulf %560, %564 : vector<8x32xf32>
    %566 = vector.broadcast %481 : vector<1x32xf32> to vector<8x32xf32>
    %567 = arith.mulf %565, %566 : vector<8x32xf32>
    %568 = vector.broadcast %483 : vector<1x32xf32> to vector<8x32xf32>
    %569 = arith.addf %567, %568 : vector<8x32xf32>
    %570 = arith.truncf %569 : vector<8x32xf32> to vector<8x32xbf16>
    %cst_256 = arith.constant dense<0.000000e+00> : vector<8x32xf32>
    %571 = tpu.matmul %570, %461, %cst_256 {dimension_numbers = #tpu.dot_dimension_numbers<[1], [0], [0], [1], [0, 0, 1, 1], [], []>} : vector<8x32xbf16>, vector<32x32xbf16>, vector<8x32xf32> -> vector<8x32xf32>
    %572 = vector.broadcast %489 : vector<1x32xf32> to vector<8x32xf32>
    %573 = arith.addf %571, %572 : vector<8x32xf32>
    %574 = arith.truncf %573 : vector<8x32xf32> to vector<8x32xbf16>
    %575 = vector.shape_cast %574 : vector<8x32xbf16> to vector<2x4x32xbf16>
    "tpu.trace_start"() <{level = 10 : i32, message = "bsd,bdn->bsn"}> : () -> ()
    %cst_257 = arith.constant dense<0.000000e+00> : vector<2x4x4xf32>
    %576 = tpu.matmul %575, %544, %cst_257 {dimension_numbers = #tpu.dot_dimension_numbers<[2], [1], [1], [2], [0, 0, 0, 1, 1, 2], [0], [0]>} : vector<2x4x32xbf16>, vector<2x32x4xbf16>, vector<2x4x4xf32> -> vector<2x4x4xf32>
    "tpu.trace_stop"() : () -> ()
    %cst_258 = arith.constant 0.176776692 : f32
    %577 = vector.broadcast %cst_258 : f32 to vector<2x4x4xf32>
    %578 = arith.mulf %576, %577 : vector<2x4x4xf32>
    %cst_259 = arith.constant dense<0xFF800000> : vector<2x4xf32>
    %579 = vector.multi_reduction <maximumf>, %578, %cst_259 [1] : vector<2x4x4xf32> to vector<2x4xf32>
    %580 = vector.shape_cast %579 : vector<2x4xf32> to vector<2x1x4xf32>
    %581 = vector.broadcast %580 : vector<2x1x4xf32> to vector<2x4x4xf32>
    %582 = arith.subf %578, %581 : vector<2x4x4xf32>
    %583 = math.exp %582 : vector<2x4x4xf32>
    %cst_260 = arith.constant dense<0.000000e+00> : vector<2x4xf32>
    %584 = vector.multi_reduction <add>, %583, %cst_260 [1] : vector<2x4x4xf32> to vector<2x4xf32>
    %585 = vector.shape_cast %584 : vector<2x4xf32> to vector<2x1x4xf32>
    %586 = tpu.reciprocal %585 {approx = true} : vector<2x1x4xf32> -> vector<2x1x4xf32>
    %587 = vector.broadcast %586 : vector<2x1x4xf32> to vector<2x4x4xf32>
    %588 = arith.mulf %583, %587 : vector<2x4x4xf32>
    %cst_261 = arith.constant 9.99999993E-9 : f32
    %589 = vector.broadcast %cst_261 : f32 to vector<2x4x4xf32>
    %590 = arith.addf %588, %589 : vector<2x4x4xf32>
    %cst_262 = arith.constant dense<0.000000e+00> : vector<2x4xf32>
    %591 = vector.multi_reduction <add>, %590, %cst_262 [2] : vector<2x4x4xf32> to vector<2x4xf32>
    %592 = vector.shape_cast %591 : vector<2x4xf32> to vector<2x4x1xf32>
    %593 = vector.broadcast %592 : vector<2x4x1xf32> to vector<2x4x4xf32>
    %594 = arith.divf %590, %593 : vector<2x4x4xf32>
    %595 = arith.truncf %594 : vector<2x4x4xf32> to vector<2x4x4xbf16>
    "tpu.trace_start"() <{level = 10 : i32, message = "bsn,bnd->bsd"}> : () -> ()
    %cst_263 = arith.constant dense<0.000000e+00> : vector<2x4x32xf32>
    %596 = tpu.matmul %595, %542, %cst_263 {dimension_numbers = #tpu.dot_dimension_numbers<[2], [1], [1], [2], [0, 0, 0, 1, 1, 2], [0], [0]>} : vector<2x4x4xbf16>, vector<2x4x32xbf16>, vector<2x4x32xf32> -> vector<2x4x32xf32>
    "tpu.trace_stop"() : () -> ()
    %597 = vector.shape_cast %596 : vector<2x4x32xf32> to vector<8x32xf32>
    %598 = arith.truncf %597 : vector<8x32xf32> to vector<8x32xbf16>
    %cst_264 = arith.constant dense<0.000000e+00> : vector<8x96xf32>
    %599 = tpu.matmul %598, %465, %cst_264 {dimension_numbers = #tpu.dot_dimension_numbers<[1], [0], [0], [1], [0, 0, 1, 1], [], []>} : vector<8x32xbf16>, vector<32x96xbf16>, vector<8x96xf32> -> vector<8x96xf32>
    %600 = vector.broadcast %493 : vector<1x96xf32> to vector<8x96xf32>
    %601 = arith.addf %599, %600 : vector<8x96xf32>
    %602 = arith.truncf %547 : vector<8x32xf32> to vector<8x32xbf16>
    %cst_265 = arith.constant dense<0.000000e+00> : vector<8x96xf32>
    %603 = tpu.matmul %602, %467, %cst_265 {dimension_numbers = #tpu.dot_dimension_numbers<[1], [0], [0], [1], [0, 0, 1, 1], [], []>} : vector<8x32xbf16>, vector<32x96xbf16>, vector<8x96xf32> -> vector<8x96xf32>
    %604 = vector.broadcast %495 : vector<1x96xf32> to vector<8x96xf32>
    %605 = arith.addf %603, %604 : vector<8x96xf32>
    %606 = vector.extract_strided_slice %601 {offsets = [0, 0], sizes = [8, 64], strides = [1, 1]} : vector<8x96xf32> to vector<8x64xf32>
    %607 = vector.extract_strided_slice %605 {offsets = [0, 0], sizes = [8, 64], strides = [1, 1]} : vector<8x96xf32> to vector<8x64xf32>
    %608 = arith.addf %606, %607 : vector<8x64xf32>
    %609 = arith.negf %608 : vector<8x64xf32>
    %610 = math.exp %609 : vector<8x64xf32>
    %cst_266 = arith.constant 1.000000e+00 : f32
    %611 = vector.broadcast %cst_266 : f32 to vector<8x64xf32>
    %612 = arith.addf %611, %610 : vector<8x64xf32>
    %613 = arith.divf %611, %612 : vector<8x64xf32>
    %614 = vector.extract_strided_slice %613 {offsets = [0, 0], sizes = [8, 32], strides = [1, 1]} : vector<8x64xf32> to vector<8x32xf32>
    %615 = vector.extract_strided_slice %613 {offsets = [0, 32], sizes = [8, 32], strides = [1, 1]} : vector<8x64xf32> to vector<8x32xf32>
    %616 = vector.extract_strided_slice %601 {offsets = [0, 64], sizes = [8, 32], strides = [1, 1]} : vector<8x96xf32> to vector<8x32xf32>
    %617 = vector.extract_strided_slice %605 {offsets = [0, 64], sizes = [8, 32], strides = [1, 1]} : vector<8x96xf32> to vector<8x32xf32>
    %618 = arith.mulf %614, %617 : vector<8x32xf32>
    %619 = arith.addf %616, %618 : vector<8x32xf32>
    %620 = math.tanh %619 : vector<8x32xf32>
    %cst_267 = arith.constant 1.000000e+00 : f32
    %621 = vector.broadcast %cst_267 : f32 to vector<8x32xf32>
    %622 = arith.subf %621, %615 : vector<8x32xf32>
    %623 = arith.mulf %622, %620 : vector<8x32xf32>
    %624 = arith.mulf %615, %547 : vector<8x32xf32>
    %625 = arith.addf %623, %624 : vector<8x32xf32>
    %cst_268 = arith.constant dense<0.000000e+00> : vector<8xf32>
    %626 = vector.multi_reduction <add>, %625, %cst_268 [1] : vector<8x32xf32> to vector<8xf32>
    %627 = vector.shape_cast %626 : vector<8xf32> to vector<8x1xf32>
    %cst_269 = arith.constant 3.200000e+01 : f32
    %628 = vector.broadcast %cst_269 : f32 to vector<8x1xf32>
    %629 = arith.divf %627, %628 : vector<8x1xf32>
    %630 = vector.broadcast %629 : vector<8x1xf32> to vector<8x32xf32>
    %631 = arith.subf %625, %630 : vector<8x32xf32>
    %632 = arith.mulf %631, %631 : vector<8x32xf32>
    %cst_270 = arith.constant dense<0.000000e+00> : vector<8xf32>
    %633 = vector.multi_reduction <add>, %632, %cst_270 [1] : vector<8x32xf32> to vector<8xf32>
    %634 = vector.shape_cast %633 : vector<8xf32> to vector<8x1xf32>
    %cst_271 = arith.constant 3.200000e+01 : f32
    %635 = vector.broadcast %cst_271 : f32 to vector<8x1xf32>
    %636 = arith.divf %634, %635 : vector<8x1xf32>
    %637 = vector.broadcast %629 : vector<8x1xf32> to vector<8x32xf32>
    %638 = arith.subf %625, %637 : vector<8x32xf32>
    %cst_272 = arith.constant 9.99999974E-6 : f32
    %639 = vector.broadcast %cst_272 : f32 to vector<8x1xf32>
    %640 = arith.addf %636, %639 : vector<8x1xf32>
    %641 = math.rsqrt %640 : vector<8x1xf32>
    %642 = vector.broadcast %641 : vector<8x1xf32> to vector<8x32xf32>
    %643 = arith.mulf %638, %642 : vector<8x32xf32>
    %644 = vector.broadcast %485 : vector<1x32xf32> to vector<8x32xf32>
    %645 = arith.mulf %643, %644 : vector<8x32xf32>
    %646 = vector.broadcast %487 : vector<1x32xf32> to vector<8x32xf32>
    %647 = arith.addf %645, %646 : vector<8x32xf32>
    %648 = arith.truncf %647 : vector<8x32xf32> to vector<8x32xbf16>
    %cst_273 = arith.constant dense<0.000000e+00> : vector<8x128xf32>
    %649 = tpu.matmul %648, %469, %cst_273 {dimension_numbers = #tpu.dot_dimension_numbers<[1], [0], [0], [1], [0, 0, 1, 1], [], []>} : vector<8x32xbf16>, vector<32x128xbf16>, vector<8x128xf32> -> vector<8x128xf32>
    %650 = vector.broadcast %497 : vector<1x128xf32> to vector<8x128xf32>
    %651 = arith.addf %649, %650 : vector<8x128xf32>
    %cst_274 = arith.constant 0.000000e+00 : f32
    %652 = vector.broadcast %cst_274 : f32 to vector<8x128xf32>
    %653 = arith.maximumf %651, %652 : vector<8x128xf32>
    %654 = arith.truncf %653 : vector<8x128xf32> to vector<8x128xbf16>
    %cst_275 = arith.constant dense<0.000000e+00> : vector<8x32xf32>
    %655 = tpu.matmul %654, %473, %cst_275 {dimension_numbers = #tpu.dot_dimension_numbers<[1], [0], [0], [1], [0, 0, 1, 1], [], []>} : vector<8x128xbf16>, vector<128x32xbf16>, vector<8x32xf32> -> vector<8x32xf32>
    %656 = arith.addf %625, %655 : vector<8x32xf32>
    %657 = vector.broadcast %499 : vector<1x32xf32> to vector<8x32xf32>
    %658 = arith.addf %656, %657 : vector<8x32xf32>
    %cst_276 = arith.constant dense<0.000000e+00> : vector<8xf32>
    %659 = vector.multi_reduction <add>, %658, %cst_276 [1] : vector<8x32xf32> to vector<8xf32>
    %660 = vector.shape_cast %659 : vector<8xf32> to vector<8x1xf32>
    %cst_277 = arith.constant 3.200000e+01 : f32
    %661 = vector.broadcast %cst_277 : f32 to vector<8x1xf32>
    %662 = arith.divf %660, %661 : vector<8x1xf32>
    %663 = vector.broadcast %662 : vector<8x1xf32> to vector<8x32xf32>
    %664 = arith.subf %658, %663 : vector<8x32xf32>
    %665 = arith.mulf %664, %664 : vector<8x32xf32>
    %cst_278 = arith.constant dense<0.000000e+00> : vector<8xf32>
    %666 = vector.multi_reduction <add>, %665, %cst_278 [1] : vector<8x32xf32> to vector<8xf32>
    %667 = vector.shape_cast %666 : vector<8xf32> to vector<8x1xf32>
    %cst_279 = arith.constant 3.200000e+01 : f32
    %668 = vector.broadcast %cst_279 : f32 to vector<8x1xf32>
    %669 = arith.divf %667, %668 : vector<8x1xf32>
    %670 = vector.broadcast %662 : vector<8x1xf32> to vector<8x32xf32>
    %671 = arith.subf %658, %670 : vector<8x32xf32>
    %cst_280 = arith.constant 9.99999974E-6 : f32
    %672 = vector.broadcast %cst_280 : f32 to vector<8x1xf32>
    %673 = arith.addf %669, %672 : vector<8x1xf32>
    %674 = math.rsqrt %673 : vector<8x1xf32>
    %675 = vector.broadcast %674 : vector<8x1xf32> to vector<8x32xf32>
    %676 = arith.mulf %671, %675 : vector<8x32xf32>
    %677 = vector.broadcast %481 : vector<1x32xf32> to vector<8x32xf32>
    %678 = arith.mulf %676, %677 : vector<8x32xf32>
    %679 = vector.broadcast %483 : vector<1x32xf32> to vector<8x32xf32>
    %680 = arith.addf %678, %679 : vector<8x32xf32>
    %681 = arith.truncf %680 : vector<8x32xf32> to vector<8x32xbf16>
    %cst_281 = arith.constant dense<0.000000e+00> : vector<8x32xf32>
    %682 = tpu.matmul %681, %461, %cst_281 {dimension_numbers = #tpu.dot_dimension_numbers<[1], [0], [0], [1], [0, 0, 1, 1], [], []>} : vector<8x32xbf16>, vector<32x32xbf16>, vector<8x32xf32> -> vector<8x32xf32>
    %683 = vector.broadcast %489 : vector<1x32xf32> to vector<8x32xf32>
    %684 = arith.addf %682, %683 : vector<8x32xf32>
    %685 = arith.truncf %684 : vector<8x32xf32> to vector<8x32xbf16>
    %686 = vector.shape_cast %685 : vector<8x32xbf16> to vector<2x4x32xbf16>
    "tpu.trace_start"() <{level = 10 : i32, message = "bsd,bdn->bsn"}> : () -> ()
    %cst_282 = arith.constant dense<0.000000e+00> : vector<2x4x4xf32>
    %687 = tpu.matmul %686, %544, %cst_282 {dimension_numbers = #tpu.dot_dimension_numbers<[2], [1], [1], [2], [0, 0, 0, 1, 1, 2], [0], [0]>} : vector<2x4x32xbf16>, vector<2x32x4xbf16>, vector<2x4x4xf32> -> vector<2x4x4xf32>
    "tpu.trace_stop"() : () -> ()
    %cst_283 = arith.constant 0.176776692 : f32
    %688 = vector.broadcast %cst_283 : f32 to vector<2x4x4xf32>
    %689 = arith.mulf %687, %688 : vector<2x4x4xf32>
    %cst_284 = arith.constant dense<0xFF800000> : vector<2x4xf32>
    %690 = vector.multi_reduction <maximumf>, %689, %cst_284 [1] : vector<2x4x4xf32> to vector<2x4xf32>
    %691 = vector.shape_cast %690 : vector<2x4xf32> to vector<2x1x4xf32>
    %692 = vector.broadcast %691 : vector<2x1x4xf32> to vector<2x4x4xf32>
    %693 = arith.subf %689, %692 : vector<2x4x4xf32>
    %694 = math.exp %693 : vector<2x4x4xf32>
    %cst_285 = arith.constant dense<0.000000e+00> : vector<2x4xf32>
    %695 = vector.multi_reduction <add>, %694, %cst_285 [1] : vector<2x4x4xf32> to vector<2x4xf32>
    %696 = vector.shape_cast %695 : vector<2x4xf32> to vector<2x1x4xf32>
    %697 = tpu.reciprocal %696 {approx = true} : vector<2x1x4xf32> -> vector<2x1x4xf32>
    %698 = vector.broadcast %697 : vector<2x1x4xf32> to vector<2x4x4xf32>
    %699 = arith.mulf %694, %698 : vector<2x4x4xf32>
    %cst_286 = arith.constant 9.99999993E-9 : f32
    %700 = vector.broadcast %cst_286 : f32 to vector<2x4x4xf32>
    %701 = arith.addf %699, %700 : vector<2x4x4xf32>
    %cst_287 = arith.constant dense<0.000000e+00> : vector<2x4xf32>
    %702 = vector.multi_reduction <add>, %701, %cst_287 [2] : vector<2x4x4xf32> to vector<2x4xf32>
    %703 = vector.shape_cast %702 : vector<2x4xf32> to vector<2x4x1xf32>
    %704 = vector.broadcast %703 : vector<2x4x1xf32> to vector<2x4x4xf32>
    %705 = arith.divf %701, %704 : vector<2x4x4xf32>
    %706 = arith.truncf %705 : vector<2x4x4xf32> to vector<2x4x4xbf16>
    "tpu.trace_start"() <{level = 10 : i32, message = "bsn,bnd->bsd"}> : () -> ()
    %cst_288 = arith.constant dense<0.000000e+00> : vector<2x4x32xf32>
    %707 = tpu.matmul %706, %542, %cst_288 {dimension_numbers = #tpu.dot_dimension_numbers<[2], [1], [1], [2], [0, 0, 0, 1, 1, 2], [0], [0]>} : vector<2x4x4xbf16>, vector<2x4x32xbf16>, vector<2x4x32xf32> -> vector<2x4x32xf32>
    "tpu.trace_stop"() : () -> ()
    %708 = vector.shape_cast %707 : vector<2x4x32xf32> to vector<8x32xf32>
    %709 = arith.truncf %708 : vector<8x32xf32> to vector<8x32xbf16>
    %cst_289 = arith.constant dense<0.000000e+00> : vector<8x96xf32>
    %710 = tpu.matmul %709, %465, %cst_289 {dimension_numbers = #tpu.dot_dimension_numbers<[1], [0], [0], [1], [0, 0, 1, 1], [], []>} : vector<8x32xbf16>, vector<32x96xbf16>, vector<8x96xf32> -> vector<8x96xf32>
    %711 = vector.broadcast %493 : vector<1x96xf32> to vector<8x96xf32>
    %712 = arith.addf %710, %711 : vector<8x96xf32>
    %713 = arith.truncf %658 : vector<8x32xf32> to vector<8x32xbf16>
    %cst_290 = arith.constant dense<0.000000e+00> : vector<8x96xf32>
    %714 = tpu.matmul %713, %467, %cst_290 {dimension_numbers = #tpu.dot_dimension_numbers<[1], [0], [0], [1], [0, 0, 1, 1], [], []>} : vector<8x32xbf16>, vector<32x96xbf16>, vector<8x96xf32> -> vector<8x96xf32>
    %715 = vector.broadcast %495 : vector<1x96xf32> to vector<8x96xf32>
    %716 = arith.addf %714, %715 : vector<8x96xf32>
    %717 = vector.extract_strided_slice %712 {offsets = [0, 0], sizes = [8, 64], strides = [1, 1]} : vector<8x96xf32> to vector<8x64xf32>
    %718 = vector.extract_strided_slice %716 {offsets = [0, 0], sizes = [8, 64], strides = [1, 1]} : vector<8x96xf32> to vector<8x64xf32>
    %719 = arith.addf %717, %718 : vector<8x64xf32>
    %720 = arith.negf %719 : vector<8x64xf32>
    %721 = math.exp %720 : vector<8x64xf32>
    %cst_291 = arith.constant 1.000000e+00 : f32
    %722 = vector.broadcast %cst_291 : f32 to vector<8x64xf32>
    %723 = arith.addf %722, %721 : vector<8x64xf32>
    %724 = arith.divf %722, %723 : vector<8x64xf32>
    %725 = vector.extract_strided_slice %724 {offsets = [0, 0], sizes = [8, 32], strides = [1, 1]} : vector<8x64xf32> to vector<8x32xf32>
    %726 = vector.extract_strided_slice %724 {offsets = [0, 32], sizes = [8, 32], strides = [1, 1]} : vector<8x64xf32> to vector<8x32xf32>
    %727 = vector.extract_strided_slice %712 {offsets = [0, 64], sizes = [8, 32], strides = [1, 1]} : vector<8x96xf32> to vector<8x32xf32>
    %728 = vector.extract_strided_slice %716 {offsets = [0, 64], sizes = [8, 32], strides = [1, 1]} : vector<8x96xf32> to vector<8x32xf32>
    %729 = arith.mulf %725, %728 : vector<8x32xf32>
    %730 = arith.addf %727, %729 : vector<8x32xf32>
    %731 = math.tanh %730 : vector<8x32xf32>
    %cst_292 = arith.constant 1.000000e+00 : f32
    %732 = vector.broadcast %cst_292 : f32 to vector<8x32xf32>
    %733 = arith.subf %732, %726 : vector<8x32xf32>
    %734 = arith.mulf %733, %731 : vector<8x32xf32>
    %735 = arith.mulf %726, %658 : vector<8x32xf32>
    %736 = arith.addf %734, %735 : vector<8x32xf32>
    %cst_293 = arith.constant dense<0.000000e+00> : vector<8xf32>
    %737 = vector.multi_reduction <add>, %736, %cst_293 [1] : vector<8x32xf32> to vector<8xf32>
    %738 = vector.shape_cast %737 : vector<8xf32> to vector<8x1xf32>
    %cst_294 = arith.constant 3.200000e+01 : f32
    %739 = vector.broadcast %cst_294 : f32 to vector<8x1xf32>
    %740 = arith.divf %738, %739 : vector<8x1xf32>
    %741 = vector.broadcast %740 : vector<8x1xf32> to vector<8x32xf32>
    %742 = arith.subf %736, %741 : vector<8x32xf32>
    %743 = arith.mulf %742, %742 : vector<8x32xf32>
    %cst_295 = arith.constant dense<0.000000e+00> : vector<8xf32>
    %744 = vector.multi_reduction <add>, %743, %cst_295 [1] : vector<8x32xf32> to vector<8xf32>
    %745 = vector.shape_cast %744 : vector<8xf32> to vector<8x1xf32>
    %cst_296 = arith.constant 3.200000e+01 : f32
    %746 = vector.broadcast %cst_296 : f32 to vector<8x1xf32>
    %747 = arith.divf %745, %746 : vector<8x1xf32>
    %748 = vector.broadcast %740 : vector<8x1xf32> to vector<8x32xf32>
    %749 = arith.subf %736, %748 : vector<8x32xf32>
    %cst_297 = arith.constant 9.99999974E-6 : f32
    %750 = vector.broadcast %cst_297 : f32 to vector<8x1xf32>
    %751 = arith.addf %747, %750 : vector<8x1xf32>
    %752 = math.rsqrt %751 : vector<8x1xf32>
    %753 = vector.broadcast %752 : vector<8x1xf32> to vector<8x32xf32>
    %754 = arith.mulf %749, %753 : vector<8x32xf32>
    %755 = vector.broadcast %485 : vector<1x32xf32> to vector<8x32xf32>
    %756 = arith.mulf %754, %755 : vector<8x32xf32>
    %757 = vector.broadcast %487 : vector<1x32xf32> to vector<8x32xf32>
    %758 = arith.addf %756, %757 : vector<8x32xf32>
    %759 = arith.truncf %758 : vector<8x32xf32> to vector<8x32xbf16>
    %cst_298 = arith.constant dense<0.000000e+00> : vector<8x128xf32>
    %760 = tpu.matmul %759, %469, %cst_298 {dimension_numbers = #tpu.dot_dimension_numbers<[1], [0], [0], [1], [0, 0, 1, 1], [], []>} : vector<8x32xbf16>, vector<32x128xbf16>, vector<8x128xf32> -> vector<8x128xf32>
    %761 = vector.broadcast %497 : vector<1x128xf32> to vector<8x128xf32>
    %762 = arith.addf %760, %761 : vector<8x128xf32>
    %cst_299 = arith.constant 0.000000e+00 : f32
    %763 = vector.broadcast %cst_299 : f32 to vector<8x128xf32>
    %764 = arith.maximumf %762, %763 : vector<8x128xf32>
    %765 = arith.truncf %764 : vector<8x128xf32> to vector<8x128xbf16>
    %cst_300 = arith.constant dense<0.000000e+00> : vector<8x32xf32>
    %766 = tpu.matmul %765, %473, %cst_300 {dimension_numbers = #tpu.dot_dimension_numbers<[1], [0], [0], [1], [0, 0, 1, 1], [], []>} : vector<8x128xbf16>, vector<128x32xbf16>, vector<8x32xf32> -> vector<8x32xf32>
    %767 = arith.addf %736, %766 : vector<8x32xf32>
    %768 = vector.broadcast %499 : vector<1x32xf32> to vector<8x32xf32>
    %769 = arith.addf %767, %768 : vector<8x32xf32>
    %cst_301 = arith.constant dense<0.000000e+00> : vector<8xf32>
    %770 = vector.multi_reduction <add>, %769, %cst_301 [1] : vector<8x32xf32> to vector<8xf32>
    %771 = vector.shape_cast %770 : vector<8xf32> to vector<8x1xf32>
    %cst_302 = arith.constant 3.200000e+01 : f32
    %772 = vector.broadcast %cst_302 : f32 to vector<8x1xf32>
    %773 = arith.divf %771, %772 : vector<8x1xf32>
    %774 = vector.broadcast %773 : vector<8x1xf32> to vector<8x32xf32>
    %775 = arith.subf %769, %774 : vector<8x32xf32>
    %776 = arith.mulf %775, %775 : vector<8x32xf32>
    %cst_303 = arith.constant dense<0.000000e+00> : vector<8xf32>
    %777 = vector.multi_reduction <add>, %776, %cst_303 [1] : vector<8x32xf32> to vector<8xf32>
    %778 = vector.shape_cast %777 : vector<8xf32> to vector<8x1xf32>
    %cst_304 = arith.constant 3.200000e+01 : f32
    %779 = vector.broadcast %cst_304 : f32 to vector<8x1xf32>
    %780 = arith.divf %778, %779 : vector<8x1xf32>
    %781 = vector.broadcast %773 : vector<8x1xf32> to vector<8x32xf32>
    %782 = arith.subf %769, %781 : vector<8x32xf32>
    %cst_305 = arith.constant 9.99999974E-6 : f32
    %783 = vector.broadcast %cst_305 : f32 to vector<8x1xf32>
    %784 = arith.addf %780, %783 : vector<8x1xf32>
    %785 = math.rsqrt %784 : vector<8x1xf32>
    %786 = vector.broadcast %785 : vector<8x1xf32> to vector<8x32xf32>
    %787 = arith.mulf %782, %786 : vector<8x32xf32>
    %788 = vector.broadcast %481 : vector<1x32xf32> to vector<8x32xf32>
    %789 = arith.mulf %787, %788 : vector<8x32xf32>
    %790 = vector.broadcast %483 : vector<1x32xf32> to vector<8x32xf32>
    %791 = arith.addf %789, %790 : vector<8x32xf32>
    %792 = arith.truncf %791 : vector<8x32xf32> to vector<8x32xbf16>
    %cst_306 = arith.constant dense<0.000000e+00> : vector<8x32xf32>
    %793 = tpu.matmul %792, %461, %cst_306 {dimension_numbers = #tpu.dot_dimension_numbers<[1], [0], [0], [1], [0, 0, 1, 1], [], []>} : vector<8x32xbf16>, vector<32x32xbf16>, vector<8x32xf32> -> vector<8x32xf32>
    %794 = vector.broadcast %489 : vector<1x32xf32> to vector<8x32xf32>
    %795 = arith.addf %793, %794 : vector<8x32xf32>
    %796 = arith.truncf %795 : vector<8x32xf32> to vector<8x32xbf16>
    %797 = vector.shape_cast %796 : vector<8x32xbf16> to vector<2x4x32xbf16>
    "tpu.trace_start"() <{level = 10 : i32, message = "bsd,bdn->bsn"}> : () -> ()
    %cst_307 = arith.constant dense<0.000000e+00> : vector<2x4x4xf32>
    %798 = tpu.matmul %797, %544, %cst_307 {dimension_numbers = #tpu.dot_dimension_numbers<[2], [1], [1], [2], [0, 0, 0, 1, 1, 2], [0], [0]>} : vector<2x4x32xbf16>, vector<2x32x4xbf16>, vector<2x4x4xf32> -> vector<2x4x4xf32>
    "tpu.trace_stop"() : () -> ()
    %cst_308 = arith.constant 0.176776692 : f32
    %799 = vector.broadcast %cst_308 : f32 to vector<2x4x4xf32>
    %800 = arith.mulf %798, %799 : vector<2x4x4xf32>
    %cst_309 = arith.constant dense<0xFF800000> : vector<2x4xf32>
    %801 = vector.multi_reduction <maximumf>, %800, %cst_309 [1] : vector<2x4x4xf32> to vector<2x4xf32>
    %802 = vector.shape_cast %801 : vector<2x4xf32> to vector<2x1x4xf32>
    %803 = vector.broadcast %802 : vector<2x1x4xf32> to vector<2x4x4xf32>
    %804 = arith.subf %800, %803 : vector<2x4x4xf32>
    %805 = math.exp %804 : vector<2x4x4xf32>
    %cst_310 = arith.constant dense<0.000000e+00> : vector<2x4xf32>
    %806 = vector.multi_reduction <add>, %805, %cst_310 [1] : vector<2x4x4xf32> to vector<2x4xf32>
    %807 = vector.shape_cast %806 : vector<2x4xf32> to vector<2x1x4xf32>
    %808 = tpu.reciprocal %807 {approx = true} : vector<2x1x4xf32> -> vector<2x1x4xf32>
    %809 = vector.broadcast %808 : vector<2x1x4xf32> to vector<2x4x4xf32>
    %810 = arith.mulf %805, %809 : vector<2x4x4xf32>
    %cst_311 = arith.constant 9.99999993E-9 : f32
    %811 = vector.broadcast %cst_311 : f32 to vector<2x4x4xf32>
    %812 = arith.addf %810, %811 : vector<2x4x4xf32>
    %cst_312 = arith.constant dense<0.000000e+00> : vector<2x4xf32>
    %813 = vector.multi_reduction <add>, %812, %cst_312 [2] : vector<2x4x4xf32> to vector<2x4xf32>
    %814 = vector.shape_cast %813 : vector<2x4xf32> to vector<2x4x1xf32>
    %815 = vector.broadcast %814 : vector<2x4x1xf32> to vector<2x4x4xf32>
    %816 = arith.divf %812, %815 : vector<2x4x4xf32>
    %817 = arith.truncf %816 : vector<2x4x4xf32> to vector<2x4x4xbf16>
    "tpu.trace_start"() <{level = 10 : i32, message = "bsn,bnd->bsd"}> : () -> ()
    %cst_313 = arith.constant dense<0.000000e+00> : vector<2x4x32xf32>
    %818 = tpu.matmul %817, %542, %cst_313 {dimension_numbers = #tpu.dot_dimension_numbers<[2], [1], [1], [2], [0, 0, 0, 1, 1, 2], [0], [0]>} : vector<2x4x4xbf16>, vector<2x4x32xbf16>, vector<2x4x32xf32> -> vector<2x4x32xf32>
    "tpu.trace_stop"() : () -> ()
    %819 = vector.shape_cast %818 : vector<2x4x32xf32> to vector<8x32xf32>
    %820 = arith.truncf %819 : vector<8x32xf32> to vector<8x32xbf16>
    %cst_314 = arith.constant dense<0.000000e+00> : vector<8x96xf32>
    %821 = tpu.matmul %820, %465, %cst_314 {dimension_numbers = #tpu.dot_dimension_numbers<[1], [0], [0], [1], [0, 0, 1, 1], [], []>} : vector<8x32xbf16>, vector<32x96xbf16>, vector<8x96xf32> -> vector<8x96xf32>
    %822 = vector.broadcast %493 : vector<1x96xf32> to vector<8x96xf32>
    %823 = arith.addf %821, %822 : vector<8x96xf32>
    %824 = arith.truncf %769 : vector<8x32xf32> to vector<8x32xbf16>
    %cst_315 = arith.constant dense<0.000000e+00> : vector<8x96xf32>
    %825 = tpu.matmul %824, %467, %cst_315 {dimension_numbers = #tpu.dot_dimension_numbers<[1], [0], [0], [1], [0, 0, 1, 1], [], []>} : vector<8x32xbf16>, vector<32x96xbf16>, vector<8x96xf32> -> vector<8x96xf32>
    %826 = vector.broadcast %495 : vector<1x96xf32> to vector<8x96xf32>
    %827 = arith.addf %825, %826 : vector<8x96xf32>
    %828 = vector.extract_strided_slice %823 {offsets = [0, 0], sizes = [8, 64], strides = [1, 1]} : vector<8x96xf32> to vector<8x64xf32>
    %829 = vector.extract_strided_slice %827 {offsets = [0, 0], sizes = [8, 64], strides = [1, 1]} : vector<8x96xf32> to vector<8x64xf32>
    %830 = arith.addf %828, %829 : vector<8x64xf32>
    %831 = arith.negf %830 : vector<8x64xf32>
    %832 = math.exp %831 : vector<8x64xf32>
    %cst_316 = arith.constant 1.000000e+00 : f32
    %833 = vector.broadcast %cst_316 : f32 to vector<8x64xf32>
    %834 = arith.addf %833, %832 : vector<8x64xf32>
    %835 = arith.divf %833, %834 : vector<8x64xf32>
    %836 = vector.extract_strided_slice %835 {offsets = [0, 0], sizes = [8, 32], strides = [1, 1]} : vector<8x64xf32> to vector<8x32xf32>
    %837 = vector.extract_strided_slice %835 {offsets = [0, 32], sizes = [8, 32], strides = [1, 1]} : vector<8x64xf32> to vector<8x32xf32>
    %838 = vector.extract_strided_slice %823 {offsets = [0, 64], sizes = [8, 32], strides = [1, 1]} : vector<8x96xf32> to vector<8x32xf32>
    %839 = vector.extract_strided_slice %827 {offsets = [0, 64], sizes = [8, 32], strides = [1, 1]} : vector<8x96xf32> to vector<8x32xf32>
    %840 = arith.mulf %836, %839 : vector<8x32xf32>
    %841 = arith.addf %838, %840 : vector<8x32xf32>
    %842 = math.tanh %841 : vector<8x32xf32>
    %cst_317 = arith.constant 1.000000e+00 : f32
    %843 = vector.broadcast %cst_317 : f32 to vector<8x32xf32>
    %844 = arith.subf %843, %837 : vector<8x32xf32>
    %845 = arith.mulf %844, %842 : vector<8x32xf32>
    %846 = arith.mulf %837, %769 : vector<8x32xf32>
    %847 = arith.addf %845, %846 : vector<8x32xf32>
    %cst_318 = arith.constant dense<0.000000e+00> : vector<8xf32>
    %848 = vector.multi_reduction <add>, %847, %cst_318 [1] : vector<8x32xf32> to vector<8xf32>
    %849 = vector.shape_cast %848 : vector<8xf32> to vector<8x1xf32>
    %cst_319 = arith.constant 3.200000e+01 : f32
    %850 = vector.broadcast %cst_319 : f32 to vector<8x1xf32>
    %851 = arith.divf %849, %850 : vector<8x1xf32>
    %852 = vector.broadcast %851 : vector<8x1xf32> to vector<8x32xf32>
    %853 = arith.subf %847, %852 : vector<8x32xf32>
    %854 = arith.mulf %853, %853 : vector<8x32xf32>
    %cst_320 = arith.constant dense<0.000000e+00> : vector<8xf32>
    %855 = vector.multi_reduction <add>, %854, %cst_320 [1] : vector<8x32xf32> to vector<8xf32>
    %856 = vector.shape_cast %855 : vector<8xf32> to vector<8x1xf32>
    %cst_321 = arith.constant 3.200000e+01 : f32
    %857 = vector.broadcast %cst_321 : f32 to vector<8x1xf32>
    %858 = arith.divf %856, %857 : vector<8x1xf32>
    %859 = vector.broadcast %851 : vector<8x1xf32> to vector<8x32xf32>
    %860 = arith.subf %847, %859 : vector<8x32xf32>
    %cst_322 = arith.constant 9.99999974E-6 : f32
    %861 = vector.broadcast %cst_322 : f32 to vector<8x1xf32>
    %862 = arith.addf %858, %861 : vector<8x1xf32>
    %863 = math.rsqrt %862 : vector<8x1xf32>
    %864 = vector.broadcast %863 : vector<8x1xf32> to vector<8x32xf32>
    %865 = arith.mulf %860, %864 : vector<8x32xf32>
    %866 = vector.broadcast %485 : vector<1x32xf32> to vector<8x32xf32>
    %867 = arith.mulf %865, %866 : vector<8x32xf32>
    %868 = vector.broadcast %487 : vector<1x32xf32> to vector<8x32xf32>
    %869 = arith.addf %867, %868 : vector<8x32xf32>
    %870 = arith.truncf %869 : vector<8x32xf32> to vector<8x32xbf16>
    %cst_323 = arith.constant dense<0.000000e+00> : vector<8x128xf32>
    %871 = tpu.matmul %870, %469, %cst_323 {dimension_numbers = #tpu.dot_dimension_numbers<[1], [0], [0], [1], [0, 0, 1, 1], [], []>} : vector<8x32xbf16>, vector<32x128xbf16>, vector<8x128xf32> -> vector<8x128xf32>
    %872 = vector.broadcast %497 : vector<1x128xf32> to vector<8x128xf32>
    %873 = arith.addf %871, %872 : vector<8x128xf32>
    %cst_324 = arith.constant 0.000000e+00 : f32
    %874 = vector.broadcast %cst_324 : f32 to vector<8x128xf32>
    %875 = arith.maximumf %873, %874 : vector<8x128xf32>
    %876 = arith.truncf %875 : vector<8x128xf32> to vector<8x128xbf16>
    %cst_325 = arith.constant dense<0.000000e+00> : vector<8x32xf32>
    %877 = tpu.matmul %876, %473, %cst_325 {dimension_numbers = #tpu.dot_dimension_numbers<[1], [0], [0], [1], [0, 0, 1, 1], [], []>} : vector<8x128xbf16>, vector<128x32xbf16>, vector<8x32xf32> -> vector<8x32xf32>
    %878 = arith.addf %847, %877 : vector<8x32xf32>
    %879 = vector.broadcast %499 : vector<1x32xf32> to vector<8x32xf32>
    %880 = arith.addf %878, %879 : vector<8x32xf32>
    %881 = arith.addf %459, %880 : vector<8x32xf32>
    %cst_326 = arith.constant dense<0.000000e+00> : vector<8xf32>
    %882 = vector.multi_reduction <add>, %881, %cst_326 [1] : vector<8x32xf32> to vector<8xf32>
    %883 = vector.shape_cast %882 : vector<8xf32> to vector<8x1xf32>
    %cst_327 = arith.constant 3.200000e+01 : f32
    %884 = vector.broadcast %cst_327 : f32 to vector<8x1xf32>
    %885 = arith.divf %883, %884 : vector<8x1xf32>
    %886 = vector.broadcast %885 : vector<8x1xf32> to vector<8x32xf32>
    %887 = arith.subf %881, %886 : vector<8x32xf32>
    %888 = arith.mulf %887, %887 : vector<8x32xf32>
    %cst_328 = arith.constant dense<0.000000e+00> : vector<8xf32>
    %889 = vector.multi_reduction <add>, %888, %cst_328 [1] : vector<8x32xf32> to vector<8xf32>
    %890 = vector.shape_cast %889 : vector<8xf32> to vector<8x1xf32>
    %cst_329 = arith.constant 3.200000e+01 : f32
    %891 = vector.broadcast %cst_329 : f32 to vector<8x1xf32>
    %892 = arith.divf %890, %891 : vector<8x1xf32>
    %893 = vector.broadcast %885 : vector<8x1xf32> to vector<8x32xf32>
    %894 = arith.subf %881, %893 : vector<8x32xf32>
    %cst_330 = arith.constant 9.99999974E-6 : f32
    %895 = vector.broadcast %cst_330 : f32 to vector<8x1xf32>
    %896 = arith.addf %892, %895 : vector<8x1xf32>
    %897 = math.rsqrt %896 : vector<8x1xf32>
    %898 = vector.broadcast %897 : vector<8x1xf32> to vector<8x32xf32>
    %899 = arith.mulf %894, %898 : vector<8x32xf32>
    %900 = vector.broadcast %505 : vector<1x32xf32> to vector<8x32xf32>
    %901 = arith.mulf %899, %900 : vector<8x32xf32>
    %902 = vector.broadcast %507 : vector<1x32xf32> to vector<8x32xf32>
    %903 = arith.addf %901, %902 : vector<8x32xf32>
    %904 = arith.truncf %903 : vector<8x32xf32> to vector<8x32xbf16>
    %cst_331 = arith.constant dense<0.000000e+00> : vector<8x64xf32>
    %905 = tpu.matmul %904, %471, %cst_331 {dimension_numbers = #tpu.dot_dimension_numbers<[1], [0], [0], [1], [0, 0, 1, 1], [], []>} : vector<8x32xbf16>, vector<32x64xbf16>, vector<8x64xf32> -> vector<8x64xf32>
    %906 = vector.broadcast %501 : vector<1x64xf32> to vector<8x64xf32>
    %907 = arith.addf %905, %906 : vector<8x64xf32>
    %cst_332 = arith.constant 0.000000e+00 : f32
    %908 = vector.broadcast %cst_332 : f32 to vector<8x64xf32>
    %909 = arith.maximumf %907, %908 : vector<8x64xf32>
    %910 = arith.truncf %909 : vector<8x64xf32> to vector<8x64xbf16>
    %cst_333 = arith.constant dense<0.000000e+00> : vector<8x32xf32>
    %911 = tpu.matmul %910, %475, %cst_333 {dimension_numbers = #tpu.dot_dimension_numbers<[1], [0], [0], [1], [0, 0, 1, 1], [], []>} : vector<8x64xbf16>, vector<64x32xbf16>, vector<8x32xf32> -> vector<8x32xf32>
    %912 = vector.broadcast %503 : vector<1x32xf32> to vector<8x32xf32>
    %913 = arith.addf %911, %912 : vector<8x32xf32>
    %914 = arith.addf %903, %913 : vector<8x32xf32>
    %cst_334 = arith.constant dense<0.000000e+00> : vector<8xf32>
    %915 = vector.multi_reduction <add>, %914, %cst_334 [1] : vector<8x32xf32> to vector<8xf32>
    %916 = vector.shape_cast %915 : vector<8xf32> to vector<8x1xf32>
    %cst_335 = arith.constant 3.200000e+01 : f32
    %917 = vector.broadcast %cst_335 : f32 to vector<8x1xf32>
    %918 = arith.divf %916, %917 : vector<8x1xf32>
    %919 = vector.broadcast %918 : vector<8x1xf32> to vector<8x32xf32>
    %920 = arith.subf %914, %919 : vector<8x32xf32>
    %921 = arith.mulf %920, %920 : vector<8x32xf32>
    %cst_336 = arith.constant dense<0.000000e+00> : vector<8xf32>
    %922 = vector.multi_reduction <add>, %921, %cst_336 [1] : vector<8x32xf32> to vector<8xf32>
    %923 = vector.shape_cast %922 : vector<8xf32> to vector<8x1xf32>
    %cst_337 = arith.constant 3.200000e+01 : f32
    %924 = vector.broadcast %cst_337 : f32 to vector<8x1xf32>
    %925 = arith.divf %923, %924 : vector<8x1xf32>
    %926 = vector.broadcast %918 : vector<8x1xf32> to vector<8x32xf32>
    %927 = arith.subf %914, %926 : vector<8x32xf32>
    %cst_338 = arith.constant 9.99999974E-6 : f32
    %928 = vector.broadcast %cst_338 : f32 to vector<8x1xf32>
    %929 = arith.addf %925, %928 : vector<8x1xf32>
    %930 = math.rsqrt %929 : vector<8x1xf32>
    %931 = vector.broadcast %930 : vector<8x1xf32> to vector<8x32xf32>
    %932 = arith.mulf %927, %931 : vector<8x32xf32>
    %933 = vector.broadcast %509 : vector<1x32xf32> to vector<8x32xf32>
    %934 = arith.mulf %932, %933 : vector<8x32xf32>
    %935 = vector.broadcast %511 : vector<1x32xf32> to vector<8x32xf32>
    %936 = arith.addf %934, %935 : vector<8x32xf32>
    %937 = vector.shape_cast %936 : vector<8x32xf32> to vector<2x4x32xf32>
    %c0_339 = arith.constant 0 : index
    %c0_340 = arith.constant 0 : index
    %c0_341 = arith.constant 0 : index
    %938 = vector.load %arg8[%c0_339, %c0_340, %c0_341] : memref<2x4x32xf32, #tpu.memory_space<vmem>>, vector<2x4x32xf32>
    tpu.vector_store %arg8[%c0_339, %c0_340, %c0_341], %937 {strides = array<i32>} : memref<2x4x32xf32, #tpu.memory_space<vmem>>, vector<2x4x32xf32>,
    return
  }
  func.func @transform_0(%arg0: i32) -> (i32, i32, i32) {
    %c0_i32 = arith.constant 0 : i32
    %c0_i32_0 = arith.constant 0 : i32
    %c0_i32_1 = arith.constant 0 : i32
    return %arg0, %c0_i32, %c0_i32_0 : i32, i32, i32
  }
  func.func @transform_1(%arg0: i32) -> (i32, i32, i32) {
    %c0_i32 = arith.constant 0 : i32
    %c0_i32_0 = arith.constant 0 : i32
    %c0_i32_1 = arith.constant 0 : i32
    return %arg0, %c0_i32, %c0_i32_0 : i32, i32, i32
  }
  func.func @transform_2(%arg0: i32) -> (i32, i32, i32) {
    %c0_i32 = arith.constant 0 : i32
    %c0_i32_0 = arith.constant 0 : i32
    %c0_i32_1 = arith.constant 0 : i32
    return %arg0, %c0_i32, %c0_i32_0 : i32, i32, i32
  }
  func.func @transform_3(%arg0: i32) -> (i32, i32, i32, i32) {
    %c0_i32 = arith.constant 0 : i32
    %c0_i32_0 = arith.constant 0 : i32
    %c0_i32_1 = arith.constant 0 : i32
    %c0_i32_2 = arith.constant 0 : i32
    return %c0_i32, %arg0, %c0_i32_0, %c0_i32_1 : i32, i32, i32, i32
  }
  func.func @transform_4(%arg0: i32) -> (i32, i32, i32, i32) {
    %c0_i32 = arith.constant 0 : i32
    %c0_i32_0 = arith.constant 0 : i32
    %c0_i32_1 = arith.constant 0 : i32
    %c0_i32_2 = arith.constant 0 : i32
    %c0_i32_3 = arith.constant 0 : i32
    return %c0_i32, %c0_i32_0, %c0_i32_1, %c0_i32_2 : i32, i32, i32, i32
  }
  func.func @transform_5(%arg0: i32) -> (i32, i32, i32) {
    %c0_i32 = arith.constant 0 : i32
    %c0_i32_0 = arith.constant 0 : i32
    %c0_i32_1 = arith.constant 0 : i32
    %c0_i32_2 = arith.constant 0 : i32
    return %c0_i32, %c0_i32_0, %c0_i32_1 : i32, i32, i32
  }
  func.func @transform_6(%arg0: i32) -> (i32, i32, i32) {
    %c0_i32 = arith.constant 0 : i32
    %c0_i32_0 = arith.constant 0 : i32
    %c0_i32_1 = arith.constant 0 : i32
    %c0_i32_2 = arith.constant 0 : i32
    return %c0_i32, %c0_i32_0, %c0_i32_1 : i32, i32, i32
  }
  func.func @transform_7(%arg0: i32) -> (i32, i32, i32) {
    %c0_i32 = arith.constant 0 : i32
    %c0_i32_0 = arith.constant 0 : i32
    %c0_i32_1 = arith.constant 0 : i32
    return %arg0, %c0_i32, %c0_i32_0 : i32, i32, i32
  }
}

</mosaic_0001>

<bundles_post_ra>
// kernel: tpu_custom_call.1
= control target key start
LH: loop header
LB: loop body
LE: loop exit
PB: predicated region body
PF: predicated region fallthrough
CT: control target
= control target key end

     0   :  { %vm103_vm0 = vcmask 261120   ;;  %s5256_s0 = inlined_call_operand.vmem [shape: f32[2,8,32], index: 0, kind: input, shape index: {}]   ;;  %s5257_s1 = inlined_call_operand.vmem [shape: f32[2,1,8], index: 1, kind: input, shape index: {}]   ;;  %s5258_s2 = inlined_call_operand.vmem [shape: f32[2,1,8], index: 2, kind: input, shape index: {}]   ;;  %s5259_s3 = inlined_call_operand.vmem [shape: f32[2,2,4,32], index: 3, kind: input, shape index: {}]   ;;  %s5260_s4 = inlined_call_operand.vmem [shape: bf16[2,6,32,128], index: 4, kind: input, shape index: {}]   ;;  %s5261_s5 = inlined_call_operand.vmem [shape: bf16[2,192,32], index: 5, kind: input, shape index: {}]   ;;  %s5262_s6 = inlined_call_operand.vmem [shape: f32[2,18,128], index: 6, kind: input, shape index: {}]   ;;  %s5263_s7 = inlined_call_operand.hbm [shape: f32[2,4,32], index: 7, kind: output, shape index: {}]  }
   0x1   :  { %v28_v0 = vld [vmem:[%s5256_s0] sm:$0xff]  ;;  %v29_v4 = vld [vmem:[%s5256_s0 + $0x8] sm:$0xff] }
   0x2   :  { %v4192_v1 = vld [vmem:[%s5259_s3] sm:$0xf]  ;;  %v4197_v2 = vld [vmem:[%s5259_s3 + $0x4] sm:$0xf]  ;;  %v104_v3 = vsel %vm103_vm0, %v28_v0, 0.0  ;;  %v107_v5 = vsel %vm103_vm0, %v29_v4, 0.0 }
   0x3   :  { %270 = vst [vmem:[#allocation1] ss:$2 sm:$0xff] %v4192_v1  ;;  %105 = vadd.xlane.f32.xlu0 %v104_v3 }
   0x4   :  { %272 = vst [vmem:[#allocation1 + $0x1] ss:$2 sm:$0xff] %v4197_v2 }
   0xb   :  { %v273_v6 = vld.sshfl [vmem:[#allocation1] sm:$0xff pattern:$0x75316420]  ;;  %108 = vadd.xlane.f32.xlu0 %v107_v5 }
   0xc   :  { %v275_v7 = vsel %vm103_vm0, %v273_v6, 0.0 }
   0xd   :  { %276 = vadd.xlane.f32.xlu1 %v275_v7 }
   0xe   :  { %12 = vsyncpa [#allocation3], 0  ;;  %v4138_v8 = vmov 32.0   ;;  %v4139_v18 = vmov 839922192   ;;  %v3819_v43 = vld [vmem:[%s5260_s4 + $0x18] sm:$0xff] }
   0xf   :  { %3955 = vrcp.f32 %v4138_v8  ;;  %v281_v19 = vunpack.c.l.s4 %v4139_v18  ;;  %v4140_v20 = vmov 1985246804   ;;  %184 = vmatpush.bf16.msra.mxu0 %v3819_v43  ;;  %v3818_v45 = vld [vmem:[%s5260_s4 + $0x10] sm:$0xff]  ;;  %v4247_v59 = vld [vmem:[%s5260_s4 + $0x8] sm:$0xff]  ;;  %v3919_v5 = vld [vmem:[%s5262_s6] ss:$0 sm:$0xff] }
  0x10   :  { %v285_v21 = vunpack.c.l.s4 %v4140_v20  ;;  %371 = vmatpush.bf16.msra.mxu1 %v4247_v59  ;;  %vm385_vm11 = vcmask 1043458   ;;  %vm381_vm12 = vcmask 1041408   ;;  %vm460_vm13 = vcmask 60416   ;;  %s4141_s16 = smov 96   ;;  %s4142_s25 = smov 32  }
  0x11   :  { %v4215_v24 = vunpack.c.0.s8 %v281_v19  ;;  %vm548_vm14 = vcmask 1043456   ;;  %s4143_s28 = smov 64  }
  0x12   :  { %v4217_v25 = vunpack.c.0.s8 %v285_v21  ;;  %v4266_v21 = vld [vmem:[%s5262_s6 + $0x2] ss:$0 sm:$0xff] }
  0x13   :  { %185 = vmatpush.bf16.msra.mxu0 %v3818_v45 }
  0x15   :  { %v3956_v9 = vpop.eup %3955 }
  0x16   :  { %v111_v10 = vmul.f32 32.0, %v3956_v9  ;;  %vm115_vm1 = vweird.f32 %v3956_v9 }
  0x18   :  { %v112_v11 = vsub.f32 1.0, %v111_v10 }
  0x1a   :  { %v113_v12 = vmul.f32 %v3956_v9, %v112_v11  ;;  %v3920_v11 = vld [vmem:[%s5262_s6 + $0x1] ss:$0 sm:$0xff] }
  0x1c   :  { %v114_v13 = vadd.f32 %v3956_v9, %v113_v12 }
  0x1e   :  { %v4207_v14 = vsel %vm115_vm1, %v3956_v9, %v114_v13 }
  0x76   :  { %v106_v15 = vpop.xlane.xlu0 %105 }
  0x77   :  { %v117_v16 = vmul.f32 %v4207_v14, %v106_v15 }
  0x79   :  { %v4210_v17 = vsub.f32 %v28_v0, %v117_v16  ;;  %v4253_v0 = vld [vmem:[%s5260_s4] sm:$0xff] }
  0x7a   :  { %372 = vmatpush.bf16.msra.mxu1 %v4253_v0 }
  0x7b   :  { %v121_v22 = vmul.f32 %v4210_v17, %v4210_v17 }
  0x7d   :  { %v123_v23 = vsel %vm103_vm0, %v121_v22, 0.0 }
  0x7e   :  { %124 = vadd.xlane.f32.xlu1 %v123_v23  ;;  %v109_v26 = vpop.xlane.xlu0 %108  ;;  %v4272_v23 = vld [vmem:[%s5262_s6 + $0x3] ss:$0 sm:$0xff] }
  0x7f   :  { %v118_v28 = vmul.f32 %v4207_v14, %v109_v26 }
  0x80   :  { %v277_v27 = vpop.xlane.xlu1 %276 }
  0x81   :  { %v278_v29 = vmul.f32 %v277_v27, %v4207_v14  ;;  %v120_v30 = vsub.f32 %v29_v4, %v118_v28  ;;  %v331_v27 = vrot.slane %v4266_v21, 4 }
  0x83   :  { %v283_v31 = vperm.slane %v278_v29, %v4215_v24  ;;  %v287_v32 = vperm.slane %v278_v29, %v4217_v25  ;;  %v122_v33 = vmul.f32 %v120_v30, %v120_v30 }
  0x85   :  { %v4224_v34 = vsub.f32 %v4192_v1, %v283_v31  ;;  %v4227_v35 = vsub.f32 %v4197_v2, %v287_v32  ;;  %v126_v36 = vsel %vm103_vm0, %v122_v33, 0.0 }
  0x86   :  { %127 = vadd.xlane.f32.xlu2 %v126_v36 }
  0x87   :  { %v292_v37 = vmul.f32 %v4224_v34, %v4224_v34  ;;  %v293_v38 = vmul.f32 %v4227_v35, %v4227_v35 }
  0x89   :  { %296 = vst [vmem:[#allocation1] ss:$2 sm:$0xff] %v292_v37 }
  0x8a   :  { %298 = vst [vmem:[#allocation1 + $0x1] ss:$2 sm:$0xff] %v293_v38 }
  0x91   :  { %v299_v39 = vld.sshfl [vmem:[#allocation1] sm:$0xff pattern:$0x75316420] }
  0x92   :  { %v301_v40 = vsel %vm103_vm0, %v299_v39, 0.0 }
  0x93   :  { %302 = vadd.xlane.f32.xlu2 %v301_v40 }
  0xf1   :  { %v125_v41 = vpop.xlane.xlu1 %124 }
  0xf2   :  { %v129_v42 = vmul.f32 %v125_v41, %v4207_v14 }
  0xf4   :  { %v131_v44 = vadd.f32 1e-05, %v129_v42  ;;  %v3921_v42 = vld [vmem:[%s5262_s6 + $0x7] ss:$0 sm:$0xff] }
  0xf6   :  { %3957 = vrsqrt.f32 %v131_v44  ;;  %vm139_vm3 = vweird.f32 %v131_v44 }
  0xf9   :  { %v128_v46 = vpop.xlane.xlu2 %127 }
  0xfa   :  { %v130_v47 = vmul.f32 %v128_v46, %v4207_v14 }
  0xfc   :  { %v3958_v48 = vpop.eup %3957  ;;  %v132_v49 = vadd.f32 1e-05, %v130_v47 }
  0xfd   :  { %v134_v50 = vmul.f32 %v3958_v48, %v131_v44  ;;  %vm140_vm2 = vweird.f32 %v3958_v48 }
  0xfe   :  { %3959 = vrsqrt.f32 %v132_v49  ;;  %vm141_vm4 = vmor %vm139_vm3, %vm140_vm2  ;;  %vm149_vm6 = vweird.f32 %v132_v49 }
  0xff   :  { %v135_v51 = vmul.f32 %v3958_v48, %v134_v50  ;;  %v4295_v50 = vld [vmem:[%s5262_s6 + $0x6] ss:$0 sm:$0xff] }
 0x101   :  { %v136_v52 = vmul.f32 0.5, %v135_v51 }
 0x103   :  { %v137_v53 = vsub.f32 1.5, %v136_v52 }
 0x104   :  { %v3960_v54 = vpop.eup %3959 }
 0x105   :  { %v138_v55 = vmul.f32 %v3958_v48, %v137_v53  ;;  %v144_v56 = vmul.f32 %v3960_v54, %v132_v49  ;;  %vm150_vm5 = vweird.f32 %v3960_v54 }
 0x106   :  { %v303_v57 = vpop.xlane.xlu2 %302  ;;  %vm151_vm7 = vmor %vm149_vm6, %vm150_vm5 }
 0x107   :  { %v304_v58 = vmul.f32 %v303_v57, %v4207_v14  ;;  %v145_v60 = vmul.f32 %v3960_v54, %v144_v56  ;;  %v142_v62 = vsel %vm141_vm4, %v3958_v48, %v138_v55 }
 0x108   :  { %v153_v4 = vmul.f32 %v142_v62, %v4210_v17 }
 0x109   :  { %v305_v61 = vadd.f32 1e-05, %v304_v58  ;;  %v146_v63 = vmul.f32 0.5, %v145_v60 }
 0x10a   :  { %v156_v10 = vmul.f32 %v3919_v5, %v153_v4 }
 0x10b   :  { %3961 = vrsqrt.f32 %v305_v61  ;;  %v147_v3 = vsub.f32 1.5, %v146_v63  ;;  %vm312_vm8 = vweird.f32 %v305_v61 }
 0x10c   :  { %v159_v16 = vadd.f32 %v3920_v11, %v156_v10 }
 0x10d   :  { %v148_v6 = vmul.f32 %v3960_v54, %v147_v3 }
 0x10f   :  { %v152_v7 = vsel %vm151_vm7, %v3960_v54, %v148_v6 }
 0x110   :  { %v154_v9 = vmul.f32 %v152_v7, %v120_v30  ;;  %v337_v30 = vrot.slane %v4272_v23, 4 }
 0x111   :  { %v3962_v8 = vpop.eup %3961 }
 0x112   :  { %v307_v12 = vmul.f32 %v3962_v8, %v305_v61  ;;  %v157_v13 = vmul.f32 %v3919_v5, %v154_v9  ;;  %vm313_vm9 = vweird.f32 %v3962_v8 }
 0x113   :  { %vm314_vm10 = vmor %vm312_vm8, %vm313_vm9  ;;  %vm544_vm8 = vcmask 64512  }
 0x114   :  { %v308_v15 = vmul.f32 %v3962_v8, %v307_v12  ;;  %v160_v17 = vadd.f32 %v3920_v11, %v157_v13 }
 0x116   :  { %v309_v18 = vmul.f32 0.5, %v308_v15  ;;  %v161_v19 = vpack.c.bf16 %v160_v17, %v159_v16 }
 0x118   :  { %v310_v20 = vsub.f32 1.5, %v309_v18  ;;  %3504 = vmatmul.msk.bf16.vlgmr.msra.gmra.mxu0 %vm103_vm0, %v161_v19 }
 0x11a   :  { %v311_v22 = vmul.f32 %v3962_v8, %v310_v20 }
 0x11c   :  { %v315_v26 = vsel %vm314_vm10, %v3962_v8, %v311_v22 }
 0x11d   :  { %v320_v28 = vperm.slane %v315_v26, %v4215_v24  ;;  %v324_v29 = vperm.slane %v315_v26, %v4217_v25  ;;  %v4307_v26 = vld [vmem:[%s5260_s4 + $0x38] sm:$0xff] }
 0x11f   :  { %v327_v31 = vmul.f32 %v320_v28, %v4224_v34  ;;  %v328_v32 = vmul.f32 %v324_v29, %v4227_v35 }
 0x121   :  { %v333_v33 = vmul.f32 %v4266_v21, %v327_v31  ;;  %v334_v36 = vmul.f32 %v331_v27, %v328_v32  ;;  %v4320_v31 = vld [vmem:[%s5260_s4 + $0x30] sm:$0xff] }
 0x123   :  { %v339_v37 = vadd.f32 %v4272_v23, %v333_v33  ;;  %v340_v38 = vadd.f32 %v337_v30, %v334_v36  ;;  %v4331_v33 = vld [vmem:[%s5257_s1] ss:$0 sm:$0xff]  ;;  %v4336_v36 = vld [vmem:[%s5257_s1 + $0x1] ss:$0 sm:$0xff] }
 0x125   :  { %343 = vst [vmem:[#allocation1] ss:$2 sm:$0xff] %v339_v37  ;;  %v4341_v37 = vld [vmem:[%s5258_s2] ss:$0 sm:$0xff] }
 0x126   :  { %345 = vst [vmem:[#allocation1 + $0x1] ss:$2 sm:$0xff] %v340_v38  ;;  %v4346_v38 = vld [vmem:[%s5258_s2 + $0x1] ss:$0 sm:$0xff] }
 0x12d   :  { %v346_v39 = vld.sshfl [vmem:[#allocation1] sm:$0xff pattern:$0x75316420] }
 0x12e   :  { %v348_v40 = vpack.c.bf16 %v346_v39, %v346_v39 }
 0x130   :  { %3513 = vmatmul.msk.bf16.vlgmr.msra.gmra.mxu1 %vm103_vm0, %v348_v40 }
 0x195   :  { %v187_v41 = vpop.f32.mrf.mxu0 }
 0x196   :  { %v4286_v43 = vadd.f32 %v3921_v42, %v187_v41 }
 0x19d   :  { %v189_v34 = vpop.f32.mrf.mxu0 }
 0x19e   :  { %v4288_v35 = vadd.f32 %v3921_v42, %v189_v34 }
 0x1a0   :  { %v3873_v44 = vpack.i.bf16 %v4288_v35, %v4286_v43 }
 0x1a2   :  { %3874 = vxpose.xlu0.b32.start.end [1/1] (short) (narrow) %v3873_v44, 32 }
 0x1ad   :  { %v374_v45 = vpop.f32.mrf.mxu1 }
 0x1ae   :  { %v375_v53 = vadd.f32 %v4295_v50, %v374_v45 }
 0x1b0   :  { %v378_v3 = vpack.c.bf16 %v375_v53, %v375_v53 }
 0x1b2   :  { %v380_v15 = vrot.slane %v378_v3, 2 }
 0x1b4   :  { %v386_v29 = vsel %vm385_vm11, %v378_v3, %v380_v15  ;;  %v384_v32 = vsel %vm381_vm12, %v378_v3, %v380_v15 }
 0x1b5   :  { %v376_v46 = vpop.f32.mrf.mxu1  ;;  %v388_v30 = vrot.slane %v386_v29, 2 }
 0x246   :  { %v3875_v47 = vpop.trf.xlu0 }
 0x247   :  { %v3876_v60 = vunpack.i.l.bf16 %v3875_v47  ;;  %v3879_v61 = vunpack.i.h.bf16 %v3875_v47 }
 0x249   :  { %v258_v8 = vpack.c.bf16 %v3876_v60, %v3876_v60  ;;  %v262_v9 = vpack.c.bf16 %v3879_v61, %v3879_v61 }
 0x24b   :  { %v393_v20 = vunpack.c.l.b16 %v258_v8  ;;  %v420_v22 = vunpack.c.l.b16 %v262_v9 }
 0x24e   :  { %v3880_v48 = vpop.trf.xlu0 }
 0x24f   :  { %v3881_v54 = vunpack.i.l.bf16 %v3880_v48  ;;  %v3884_v55 = vunpack.i.h.bf16 %v3880_v48 }
 0x251   :  { %v259_v6 = vpack.c.bf16 %v3881_v54, %v3881_v54  ;;  %v263_v7 = vpack.c.bf16 %v3884_v55, %v3884_v55 }
 0x253   :  { %v394_v18 = vunpack.c.l.b16 %v259_v6  ;;  %v421_v19 = vunpack.c.l.b16 %v263_v7 }
 0x255   :  { %v4309_v27 = vpack.c.b16 %v394_v18, %v393_v20  ;;  %v4311_v28 = vpack.c.b16 %v421_v19, %v420_v22 }
 0x256   :  { %v3885_v49 = vpop.trf.xlu0 }
 0x257   :  { %v3889_v51 = vunpack.i.h.bf16 %v3885_v49  ;;  %v3886_v52 = vunpack.i.l.bf16 %v3885_v49 }
 0x259   :  { %v264_v56 = vpack.c.bf16 %v3889_v51, %v3889_v51  ;;  %v260_v57 = vpack.c.bf16 %v3886_v52, %v3886_v52 }
 0x25b   :  { %v395_v10 = vunpack.c.l.b16 %v260_v57  ;;  %v422_v12 = vunpack.c.l.b16 %v264_v56 }
 0x25e   :  { %v3890_v58 = vpop.trf.xlu0 }
 0x25f   :  { %v3894_v62 = vunpack.i.h.bf16 %v3890_v58  ;;  %v3891_v63 = vunpack.i.l.bf16 %v3890_v58 }
 0x261   :  { %v265_v4 = vpack.c.bf16 %v3894_v62, %v3894_v62  ;;  %v261_v5 = vpack.c.bf16 %v3891_v63, %v3891_v63 }
 0x263   :  { %v396_v11 = vunpack.c.l.b16 %v261_v5  ;;  %v423_v13 = vunpack.c.l.b16 %v265_v4 }
 0x265   :  { %v4298_v16 = vpack.c.b16 %v396_v11, %v395_v10  ;;  %v4300_v17 = vpack.c.b16 %v423_v13, %v422_v12 }
 0x267   :  { %409 = vmatpush.bf16.msra.mxu2 %v4298_v16  ;;  %437 = vmatpush.bf16.msra.mxu3 %v4300_v17 }
 0x26b   :  { %410 = vmatpush.bf16.msra.mxu2 %v4309_v27  ;;  %438 = vmatpush.bf16.msra.mxu3 %v4311_v28 }
 0x26e   :  { %3514 = vmatmul.msk.bf16.vlgmr.msra.gmra.mxu2 %vm103_vm0, %v384_v32  ;;  %3515 = vmatmul.msk.bf16.vlgmr.msra.gmra.mxu3 %vm103_vm0, %v388_v30 }
 0x26f   :  { %654 = vmatpush.bf16.msrb.mxu3 %v4307_v26 }
 0x273   :  { %655 = vmatpush.bf16.msrb.mxu3 %v4320_v31 }
 0x277   :  { %931 = vmatpush.bf16.msra.mxu3 %v4298_v16 }
 0x27b   :  { %932 = vmatpush.bf16.msra.mxu3 %v4309_v27 }
 0x2f1   :  { %v412_v39 = vpop.f32.mrf.mxu2  ;;  %v440_v40 = vpop.f32.mrf.mxu3 }
 0x2f2   :  { %v450_v41 = vmul.f32 %v4331_v33, %v412_v39  ;;  %v451_v42 = vmul.f32 %v4336_v36, %v440_v40 }
 0x2f4   :  { %v458_v34 = vadd.f32 %v4341_v37, %v450_v41  ;;  %v459_v44 = vadd.f32 %v4346_v38, %v451_v42 }
 0x2f6   :  { %v461_v45 = vsel %vm460_vm13, %v458_v34, -inf  ;;  %v468_v46 = vsel %vm460_vm13, %v459_v44, -inf }
 0x2f7   :  { %v462_v47 = vrot.slane %v461_v45, 4  ;;  %v469_v48 = vrot.slane %v468_v46, 4 }
 0x2f9   :  { %v463_v49 = vmax.f32 %v461_v45, %v462_v47  ;;  %v470_v51 = vmax.f32 %v468_v46, %v469_v48  ;;  %v414_v52 = vpop.f32.mrf.mxu2  ;;  %v442_v53 = vpop.f32.mrf.mxu3  ;;  %v192_v47 = vpack.c.bf16 %v4286_v43, %v4286_v43  ;;  %v193_v48 = vpack.c.bf16 %v4288_v35, %v4288_v35 }
 0x2fb   :  { %v464_v54 = vrot.slane %v463_v49, 2  ;;  %v471_v55 = vrot.slane %v470_v51, 2 }
 0x2fd   :  { %v465_v56 = vmax.f32 %v463_v49, %v464_v54  ;;  %v472_v57 = vmax.f32 %v470_v51, %v471_v55  ;;  %v540_v49 = vunpack.c.l.b16 %v192_v47  ;;  %v566_v51 = vunpack.c.l.b16 %v193_v48 }
 0x2ff   :  { %v466_v58 = vrot.slane %v465_v56, 1  ;;  %v473_v60 = vrot.slane %v472_v57, 1  ;;  %v541_v52 = vpack.c.b16 %v540_v49, %v540_v49  ;;  %v567_v53 = vpack.c.b16 %v566_v51, %v566_v51 }
 0x301   :  { %v467_v61 = vmax.f32 %v465_v56, %v466_v58  ;;  %v474_v62 = vmax.f32 %v472_v57, %v473_v60 }
 0x303   :  { %v475_v63 = vsub.f32 %v458_v34, %v467_v61  ;;  %v476_v3 = vsub.f32 %v459_v44, %v474_v62 }
 0x305   :  { %v477_v4 = vmul.f32 1.442695, %v475_v63  ;;  %v479_v5 = vmul.f32 1.442695, %v476_v3 }
 0x307   :  { %3963 = vpow2.f32 %v477_v4 }
 0x308   :  { %3965 = vpow2.f32 %v479_v5 }
 0x30d   :  { %v3964_v6 = vpop.eup %3963 }
 0x30e   :  { %v3966_v7 = vpop.eup %3965  ;;  %v481_v8 = vsel %vm460_vm13, %v3964_v6, 0.0 }
 0x30f   :  { %v482_v9 = vrot.slane %v481_v8, 4  ;;  %v488_v10 = vsel %vm460_vm13, %v3966_v7, 0.0 }
 0x310   :  { %v489_v11 = vrot.slane %v488_v10, 4 }
 0x311   :  { %v483_v12 = vadd.f32 %v482_v9, %v481_v8 }
 0x312   :  { %v490_v13 = vadd.f32 %v489_v11, %v488_v10 }
 0x313   :  { %v484_v15 = vrot.slane %v483_v12, 2 }
 0x314   :  { %v491_v18 = vrot.slane %v490_v13, 2 }
 0x315   :  { %v485_v19 = vadd.f32 %v484_v15, %v483_v12 }
 0x316   :  { %v492_v20 = vadd.f32 %v491_v18, %v490_v13 }
 0x317   :  { %v486_v22 = vrot.slane %v485_v19, 1 }
 0x318   :  { %v493_v29 = vrot.slane %v492_v20, 1 }
 0x319   :  { %v487_v30 = vadd.f32 %v486_v22, %v485_v19  ;;  %v4372_v22 = vld [vmem:[%s5260_s4 + $0x48] sm:$0xff] }
 0x31a   :  { %v494_v32 = vadd.f32 %v493_v29, %v492_v20 }
 0x31b   :  { %3967 = vrcp.f32 %v487_v30 }
 0x31c   :  { %3969 = vrcp.f32 %v494_v32 }
 0x321   :  { %v3968_v39 = vpop.eup %3967 }
 0x322   :  { %v3970_v40 = vpop.eup %3969  ;;  %v497_v41 = vmul.f32 %v3968_v39, %v3964_v6 }
 0x323   :  { %v498_v42 = vmul.f32 %v3970_v40, %v3966_v7  ;;  %v4382_v40 = vld [vmem:[%s5260_s4 + $0x40] sm:$0xff] }
 0x324   :  { %v499_v34 = vadd.f32 1e-08, %v497_v41  ;;  %v4391_v41 = vld [vmem:[%s5260_s4 + $0x28] sm:$0xff] }
 0x325   :  { %v500_v44 = vadd.f32 1e-08, %v498_v42  ;;  %619 = vmatpush.bf16.msrb.mxu2 %v4391_v41  ;;  %v4397_v42 = vld [vmem:[%s5260_s4 + $0x20] sm:$0xff] }
 0x326   :  { %v501_v45 = vsel %vm460_vm13, %v499_v34, 0.0 }
 0x327   :  { %v504_v46 = vsel %vm460_vm13, %v500_v44, 0.0  ;;  %502 = vadd.xlane.f32.xlu1 %v501_v45 }
 0x328   :  { %505 = vadd.xlane.f32.xlu2 %v504_v46 }
 0x329   :  { %620 = vmatpush.bf16.msrb.mxu2 %v4397_v42 }
 0x32d   :  { %907 = vmatpush.bf16.msra.mxu2 %v4247_v59 }
 0x331   :  { %908 = vmatpush.bf16.msra.mxu2 %v4253_v0 }
 0x340   :  { %568 = vrot.lane.b32.xlu2 %v567_v53, %s4141_s16  ;;  %542 = vrot.lane.b32.xlu1 %v541_v52, %s4141_s16 }
 0x39a   :  { %v503_v54 = vpop.xlane.xlu1 %502 }
 0x39b   :  { %v506_v55 = vpop.xlane.xlu2 %505  ;;  %3971 = vrcp.f32 %v503_v54  ;;  %vm512_vm2 = vweird.f32 %v503_v54  ;;  %v518_v6 = vand.u32 2147483648, %v503_v54  ;;  %v516_v9 = vand.u32 2147483647, %v503_v54 }
 0x39c   :  { %3973 = vrcp.f32 %v506_v55  ;;  %v533_v63 = vand.u32 2147483648, %v506_v55  ;;  %v531_v5 = vand.u32 2147483647, %v506_v55  ;;  %vm527_vm3 = vweird.f32 %v506_v55 }
 0x39d   :  { %v519_v13 = vor.u32 1.1754944e-38, %v518_v6  ;;  %vm517_vm7 = vcmp.eq.f32.partialorder %v516_v9, 8.507059e+37 }
 0x39e   :  { %v534_v10 = vor.u32 1.1754944e-38, %v533_v63  ;;  %vm532_vm6 = vcmp.eq.f32.partialorder %v531_v5, 8.507059e+37 }
 0x3a1   :  { %v3972_v56 = vpop.eup %3971 }
 0x3a2   :  { %v3974_v57 = vpop.eup %3973  ;;  %v508_v43 = vmul.f32 %v3972_v56, %v503_v54  ;;  %vm513_vm15 = vweird.f32 %v3972_v56  ;;  %v4416_v54 = vld [vmem:[%s5262_s6 + $0x9] ss:$0 sm:$0xff] }
 0x3a3   :  { %v523_v58 = vmul.f32 %v3974_v57, %v506_v55  ;;  %v569_v60 = vpop.permute.xlu2 %568  ;;  %vm528_vm1 = vweird.f32 %v3974_v57  ;;  %vm514_vm4 = vmor %vm512_vm2, %vm513_vm15 }
 0x3a4   :  { %v509_v35 = vsub.f32 1.0, %v508_v43  ;;  %v4365_v61 = vsel %vm548_vm14, %v569_v60, 0  ;;  %vm529_vm5 = vmor %vm527_vm3, %vm528_vm1 }
 0x3a5   :  { %v524_v62 = vsub.f32 1.0, %v523_v58  ;;  %583 = vmatpush.bf16.msrb.mxu1 %v4365_v61 }
 0x3a6   :  { %v510_v3 = vmul.f32 %v3972_v56, %v509_v35 }
 0x3a7   :  { %v525_v4 = vmul.f32 %v3974_v57, %v524_v62 }
 0x3a8   :  { %v511_v7 = vadd.f32 %v3972_v56, %v510_v3 }
 0x3a9   :  { %v526_v8 = vadd.f32 %v3974_v57, %v525_v4 }
 0x3aa   :  { %v515_v12 = vsel %vm514_vm4, %v3972_v56, %v511_v7 }
 0x3ab   :  { %v530_v11 = vsel %vm529_vm5, %v3974_v57, %v526_v8  ;;  %v520_v19 = vsel %vm517_vm7, %v519_v13, %v515_v12  ;;  %v4423_v57 = vld [vmem:[%s5262_s6 + $0x8] ss:$0 sm:$0xff] }
 0x3ac   :  { %v535_v15 = vsel %vm532_vm6, %v534_v10, %v530_v11  ;;  %v521_v29 = vmul.f32 %v520_v19, %v499_v34 }
 0x3ad   :  { %v536_v18 = vmul.f32 %v535_v15, %v500_v44 }
 0x3ae   :  { %v537_v39 = vpack.c.bf16 %v521_v29, %v521_v29 }
 0x3af   :  { %v538_v20 = vpack.c.bf16 %v536_v18, %v536_v18 }
 0x3b1   :  { %3517 = vmatmul.msk.bf16.vlgmr.msrb.gmra.mxu1 %vm544_vm8, %v538_v20 }
 0x3b2   :  { %v543_v30 = vpop.permute.xlu1 %542 }
 0x3b3   :  { %v4375_v32 = vsel %vm548_vm14, %v543_v30, 0 }
 0x3b4   :  { %559 = vmatpush.bf16.msrb.mxu0 %v4375_v32 }
 0x3b7   :  { %3516 = vmatmul.msk.bf16.vlgmr.msrb.gmra.mxu0 %vm544_vm8, %v537_v39 }
 0x3b8   :  { %775 = vmatpush.bf16.msra.mxu0 %v4372_v22 }
 0x3bc   :  { %776 = vmatpush.bf16.msra.mxu0 %v4382_v40 }
 0x3c0   :  { %947 = vmatpush.bf16.msrb.mxu0 %v4300_v17 }
 0x3c4   :  { %948 = vmatpush.bf16.msrb.mxu0 %v4311_v28 }
 0x42e   :  { %v585_v34 = vpop.f32.mrf.mxu1 }
 0x42f   :  { %593 = vst [vmem:[#allocation1 + $0x1] ss:$2 sm:$0xff] %v585_v34 }
 0x434   :  { %v561_v44 = vpop.f32.mrf.mxu0 }
 0x435   :  { %591 = vst [vmem:[#allocation1] ss:$2 sm:$0xff] %v561_v44 }
 0x436   :  { %v587_v45 = vpop.f32.mrf.mxu1 }
 0x43c   :  { %v594_v46 = vld.sshfl [vmem:[#allocation1] sm:$0xff pattern:$0x75316420]  ;;  %v563_v47 = vpop.f32.mrf.mxu0 }
 0x43d   :  { %626 = vst [vmem:[#allocation1] ss:$2 sm:$0xff] %v4192_v1  ;;  %v596_v48 = vpack.c.bf16 %v594_v46, %v594_v46 }
 0x43e   :  { %628 = vst [vmem:[#allocation1 + $0x1] ss:$2 sm:$0xff] %v4197_v2 }
 0x43f   :  { %3526 = vmatmul.msk.bf16.vlgmr.msrb.gmra.mxu2 %vm103_vm0, %v596_v48 }
 0x440   :  { %1046 = vmatpush.bf16.msrb.mxu2 %v4375_v32 }
 0x445   :  { %v629_v49 = vld.sshfl [vmem:[#allocation1] sm:$0xff pattern:$0x75316420] }
 0x446   :  { %698 = vst [vmem:[#allocation1] ss:$2 sm:$0xff] %v4192_v1  ;;  %v631_v51 = vpack.c.bf16 %v629_v49, %v629_v49 }
 0x447   :  { %700 = vst [vmem:[#allocation1 + $0x1] ss:$2 sm:$0xff] %v4197_v2 }
 0x448   :  { %3535 = vmatmul.msk.bf16.vlgmr.msrb.gmra.mxu3 %vm103_vm0, %v631_v51  ;;  %v3930_v51 = vld [vmem:[%s5262_s6 + $0x4] ss:$0 sm:$0xff] }
 0x449   :  { %1062 = vmatpush.bf16.msrb.mxu3 %v4365_v61 }
 0x44e   :  { %v701_v52 = vld.sshfl [vmem:[#allocation1] sm:$0xff pattern:$0x75316420] }
 0x44f   :  { %702 = vrot.lane.b32.xlu0 %v701_v52, %s4142_s25 }
 0x457   :  { %890 = vrot.lane.b32.xlu0 %v4272_v23, %s4142_s25 }
 0x4c1   :  { %v703_v19 = vpop.permute.xlu0 %702 }
 0x4c2   :  { %v622_v53 = vpop.f32.mrf.mxu2 }
 0x4c3   :  { %v623_v23 = vadd.f32 %v4423_v57, %v622_v53 }
 0x4ca   :  { %v624_v1 = vpop.f32.mrf.mxu2 }
 0x4cb   :  { %v657_v55 = vpop.f32.mrf.mxu3  ;;  %v3929_v1 = vld [vmem:[%s5262_s6 + $0x5] ss:$0 sm:$0xff] }
 0x4cc   :  { %v658_v2 = vadd.f32 %v4416_v54, %v657_v55 }
 0x4ce   :  { %682 = vrot.lane.b32.xlu2 %v658_v2, %s4143_s28  ;;  %v661_v43 = vadd.f32 %v658_v2, %v623_v23 }
 0x4d0   :  { %v3536_v58 = vmul.f32 -1.442695, %v661_v43 }
 0x4d2   :  { %3975 = vpow2.f32 %v3536_v58 }
 0x4d3   :  { %v659_v56 = vpop.f32.mrf.mxu3 }
 0x4d8   :  { %v3976_v60 = vpop.eup %3975 }
 0x4d9   :  { %v665_v35 = vadd.f32 1.0, %v3976_v60 }
 0x4db   :  { %3977 = vrcp.f32 %v665_v35  ;;  %v677_v6 = vand.u32 2147483648, %v665_v35  ;;  %vm671_vm10 = vweird.f32 %v665_v35  ;;  %v675_v7 = vand.u32 2147483647, %v665_v35 }
 0x4dd   :  { %v678_v9 = vor.u32 1.1754944e-38, %v677_v6  ;;  %vm676_vm15 = vcmp.eq.f32.partialorder %v675_v7, 8.507059e+37 }
 0x4e1   :  { %v3978_v62 = vpop.eup %3977 }
 0x4e2   :  { %v667_v63 = vmul.f32 %v3978_v62, %v665_v35  ;;  %vm672_vm9 = vweird.f32 %v3978_v62 }
 0x4e3   :  { %vm673_vm14 = vmor %vm671_vm10, %vm672_vm9 }
 0x4e4   :  { %v668_v3 = vsub.f32 1.0, %v667_v63 }
 0x4e6   :  { %v669_v4 = vmul.f32 %v3978_v62, %v668_v3 }
 0x4e8   :  { %v670_v5 = vadd.f32 %v3978_v62, %v669_v4 }
 0x4ea   :  { %v674_v8 = vsel %vm673_vm14, %v3978_v62, %v670_v5 }
 0x4eb   :  { %v679_v10 = vsel %vm676_vm15, %v678_v9, %v674_v8  ;;  %v4456_v9 = vld [vmem:[%s5261_s5 + $0x38] sm:$0xff] }
 0x4ec   :  { %v692_v20 = vsub.f32 1.0, %v679_v10  ;;  %v705_v30 = vmul.f32 %v703_v19, %v679_v10  ;;  %832 = vmatpush.bf16.msra.mxu1 %v4456_v9 }
 0x528   :  { %v683_v11 = vpop.permute.xlu2 %682 }
 0x529   :  { %v685_v12 = vmul.f32 %v683_v11, %v679_v10  ;;  %v4462_v10 = vld [vmem:[%s5261_s5 + $0x30] sm:$0xff]  ;;  %v4468_v11 = vld [vmem:[%s5261_s5 + $0x28] sm:$0xff] }
 0x52a   :  { %833 = vmatpush.bf16.msra.mxu1 %v4462_v10 }
 0x52b   :  { %687 = vrot.lane.b32.xlu1 %v685_v12, %s4143_s28  ;;  %v4474_v12 = vld [vmem:[%s5261_s5 + $0x20] sm:$0xff] }
 0x52e   :  { %834 = vmatpush.bf16.msra.mxu1 %v4468_v11 }
 0x532   :  { %835 = vmatpush.bf16.msra.mxu1 %v4474_v12 }
 0x59d   :  { %v688_v13 = vpop.permute.xlu1 %687 }
 0x59e   :  { %v690_v15 = vadd.f32 %v688_v13, %v623_v23  ;;  %v4480_v13 = vld [vmem:[%s5261_s5 + $0x18] sm:$0xff] }
 0x59f   :  { %836 = vmatpush.bf16.msra.mxu1 %v4480_v13 }
 0x5a0   :  { %3979 = vtanh.f32 %v690_v15  ;;  %v4486_v15 = vld [vmem:[%s5261_s5 + $0x10] sm:$0xff] }
 0x5a3   :  { %837 = vmatpush.bf16.msra.mxu1 %v4486_v15 }
 0x5a6   :  { %v3980_v18 = vpop.eup %3979 }
 0x5a7   :  { %694 = vrot.lane.b32.xlu2 %v3980_v18, %s4141_s16  ;;  %v4492_v18 = vld [vmem:[%s5261_s5 + $0x8] sm:$0xff] }
 0x5a8   :  { %838 = vmatpush.bf16.msra.mxu1 %v4492_v18 }
 0x601   :  { %v695_v29 = vpop.permute.xlu2 %694 }
 0x602   :  { %v697_v39 = vmul.f32 %v695_v29, %v692_v20  ;;  %v4501_v20 = vld [vmem:[%s5261_s5] sm:$0xff]  ;;  %v3932_v29 = vld [vmem:[%s5262_s6 + $0xb] ss:$0 sm:$0xff] }
 0x603   :  { %839 = vmatpush.bf16.msra.mxu1 %v4501_v20 }
 0x604   :  { %v4428_v34 = vadd.f32 %v705_v30, %v697_v39  ;;  %v4513_v30 = vld [vmem:[%s5262_s6 + $0xa] ss:$0 sm:$0xff] }
 0x606   :  { %708 = vrot.lane.b32.xlu1 %v4428_v34, %s4141_s16 }
 0x607   :  { %1105 = vmatpush.bf16.msrb.mxu1 %v4307_v26 }
 0x60b   :  { %1106 = vmatpush.bf16.msrb.mxu1 %v4320_v31 }
 0x678   :  { %v709_v44 = vpop.permute.xlu1 %708 }
 0x679   :  { %v711_v45 = vsel %vm103_vm0, %v709_v44, 0.0 }
 0x67a   :  { %712 = vadd.xlane.f32.xlu2 %v711_v45 }
 0x692   :  { %739 = vrot.lane.b32.xlu2 %v3930_v51, %s4142_s25 }
 0x6ed   :  { %v713_v46 = vpop.xlane.xlu2 %712 }
 0x6ee   :  { %v714_v47 = vmul.f32 %v713_v46, %v4207_v14 }
 0x6f0   :  { %v715_v48 = vsub.f32 %v4428_v34, %v714_v47 }
 0x6f2   :  { %v716_v49 = vmul.f32 %v715_v48, %v715_v48 }
 0x6f4   :  { %718 = vrot.lane.b32.xlu1 %v716_v49, %s4141_s16 }
 0x6f5   :  { %v4446_v3 = vpop.permute.xlu2 %739 }
 0x766   :  { %v719_v52 = vpop.permute.xlu1 %718 }
 0x767   :  { %v721_v53 = vsel %vm103_vm0, %v719_v52, 0.0 }
 0x768   :  { %722 = vadd.xlane.f32.xlu1 %v721_v53 }
 0x781   :  { %745 = vrot.lane.b32.xlu1 %v3929_v1, %s4142_s25 }
 0x789   :  { %852 = vrot.lane.b32.xlu1 %v3932_v29, %s4142_s25 }
 0x7db   :  { %v723_v55 = vpop.xlane.xlu1 %722 }
 0x7dc   :  { %v724_v2 = vmul.f32 %v723_v55, %v4207_v14 }
 0x7de   :  { %v725_v56 = vadd.f32 1e-05, %v724_v2 }
 0x7e0   :  { %3981 = vrsqrt.f32 %v725_v56  ;;  %vm732_vm2 = vweird.f32 %v725_v56 }
 0x7e6   :  { %v3982_v23 = vpop.eup %3981 }
 0x7e7   :  { %v727_v43 = vmul.f32 %v3982_v23, %v725_v56  ;;  %vm733_vm1 = vweird.f32 %v3982_v23 }
 0x7e8   :  { %vm734_vm3 = vmor %vm732_vm2, %vm733_vm1 }
 0x7e9   :  { %v728_v58 = vmul.f32 %v3982_v23, %v727_v43 }
 0x7eb   :  { %v729_v60 = vmul.f32 0.5, %v728_v58 }
 0x7ed   :  { %v730_v35 = vsub.f32 1.5, %v729_v60 }
 0x7ef   :  { %v731_v62 = vmul.f32 %v3982_v23, %v730_v35 }
 0x7f1   :  { %v735_v63 = vsel %vm734_vm3, %v3982_v23, %v731_v62 }
 0x7f2   :  { %v736_v4 = vmul.f32 %v735_v63, %v715_v48 }
 0x7f3   :  { %v4448_v5 = vpop.permute.xlu1 %745 }
 0x7f4   :  { %v742_v6 = vmul.f32 %v4446_v3, %v736_v4 }
 0x7f6   :  { %v748_v7 = vadd.f32 %v4448_v5, %v742_v6 }
 0x7f8   :  { %v749_v8 = vpack.c.bf16 %v748_v7, %v748_v7 }
 0x7fa   :  { %752 = vrot.lane.b32.xlu2 %v749_v8, %s4141_s16 }
 0x7fb   :  { %v4519_v52 = vpop.permute.xlu1 %852 }
 0x854   :  { %v753_v19 = vpop.permute.xlu2 %752 }
 0x855   :  { %3545 = vmatmul.msk.bf16.vlgmr.msra.gmra.mxu0 %vm103_vm0, %v753_v19 }
 0x856   :  { %1085 = vmatpush.bf16.msra.mxu0 %v4391_v41 }
 0x85a   :  { %1086 = vmatpush.bf16.msra.mxu0 %v4397_v42 }
 0x8d2   :  { %v778_v39 = vpop.f32.mrf.mxu0 }
 0x8d3   :  { %v779_v44 = vadd.f32 %v4513_v30, %v778_v39  ;;  %v4537_v39 = vpop.permute.xlu0 %890 }
 0x8d5   :  { %v782_v45 = vmax.f32 %v779_v44, 0.0 }
 0x8d7   :  { %v783_v46 = vpack.c.bf16 %v782_v45, %v782_v45 }
 0x8d9   :  { %840 = vmatmul.bf16.vlgmr.msra.gmra.mxu1 %v783_v46 }
 0x8da   :  { %1293 = vmatpush.bf16.msra.mxu1 %v4298_v16  ;;  %v780_v47 = vpop.f32.mrf.mxu0 }
 0x8de   :  { %1294 = vmatpush.bf16.msra.mxu1 %v4309_v27 }
 0x956   :  { %v841_v48 = vpop.f32.mrf.mxu1 }
 0x957   :  { %846 = vrot.lane.b32.xlu2 %v841_v48, %s4142_s25 }
 0x95e   :  { %v843_v49 = vpop.f32.mrf.mxu1 }
 0x9b1   :  { %v847_v51 = vpop.permute.xlu2 %846 }
 0x9b2   :  { %v849_v53 = vadd.f32 %v847_v51, %v4428_v34 }
 0x9b4   :  { %v4523_v1 = vadd.f32 %v4519_v52, %v849_v53 }
 0x9b6   :  { %857 = vrot.lane.b32.xlu2 %v4523_v1, %s4141_s16 }
 0xa10   :  { %v858_v55 = vpop.permute.xlu2 %857 }
 0xa11   :  { %v860_v16 = vsel %vm103_vm0, %v858_v55, 0.0 }
 0xa12   :  { %861 = vadd.xlane.f32.xlu1 %v860_v16 }
 0xa2b   :  { %886 = vrot.lane.b32.xlu1 %v4266_v21, %s4142_s25 }
 0xa85   :  { %v862_v27 = vpop.xlane.xlu1 %861 }
 0xa86   :  { %v863_v2 = vmul.f32 %v862_v27, %v4207_v14 }
 0xa88   :  { %v864_v56 = vsub.f32 %v4523_v1, %v863_v2 }
 0xa8a   :  { %v865_v23 = vmul.f32 %v864_v56, %v864_v56 }
 0xa8c   :  { %867 = vrot.lane.b32.xlu2 %v865_v23, %s4141_s16 }
 0xa9d   :  { %v4535_v19 = vpop.permute.xlu1 %886 }
 0xae6   :  { %v868_v34 = vpop.permute.xlu2 %867 }
 0xae7   :  { %v870_v43 = vsel %vm103_vm0, %v868_v34, 0.0 }
 0xae8   :  { %871 = vadd.xlane.f32.xlu2 %v870_v43 }
 0xb5b   :  { %v872_v58 = vpop.xlane.xlu2 %871 }
 0xb5c   :  { %v873_v60 = vmul.f32 %v872_v58, %v4207_v14 }
 0xb5e   :  { %v874_v35 = vadd.f32 1e-05, %v873_v60 }
 0xb60   :  { %3983 = vrsqrt.f32 %v874_v35  ;;  %vm881_vm5 = vweird.f32 %v874_v35 }
 0xb66   :  { %v3984_v62 = vpop.eup %3983 }
 0xb67   :  { %v876_v63 = vmul.f32 %v3984_v62, %v874_v35  ;;  %vm882_vm4 = vweird.f32 %v3984_v62 }
 0xb68   :  { %vm883_vm6 = vmor %vm881_vm5, %vm882_vm4 }
 0xb69   :  { %v877_v21 = vmul.f32 %v3984_v62, %v876_v63 }
 0xb6b   :  { %v878_v4 = vmul.f32 0.5, %v877_v21 }
 0xb6d   :  { %v879_v6 = vsub.f32 1.5, %v878_v4 }
 0xb6f   :  { %v880_v7 = vmul.f32 %v3984_v62, %v879_v6 }
 0xb71   :  { %v884_v8 = vsel %vm883_vm6, %v3984_v62, %v880_v7 }
 0xb72   :  { %v885_v29 = vmul.f32 %v884_v8, %v864_v56 }
 0xb74   :  { %v889_v44 = vmul.f32 %v4535_v19, %v885_v29 }
 0xb76   :  { %v893_v45 = vadd.f32 %v4537_v39, %v889_v44 }
 0xb78   :  { %v894_v46 = vpack.c.bf16 %v893_v45, %v893_v45 }
 0xb7a   :  { %896 = vrot.lane.b32.xlu0 %v894_v46, %s4141_s16 }
 0xbec   :  { %v897_v47 = vpop.permute.xlu0 %896 }
 0xbed   :  { %3578 = vmatmul.msk.bf16.vlgmr.msra.gmra.mxu2 %vm103_vm0, %v897_v47 }
 0xbee   :  { %1196 = vmatpush.bf16.msra.mxu2 %v4372_v22 }
 0xbf2   :  { %1197 = vmatpush.bf16.msra.mxu2 %v4382_v40 }
 0xc70   :  { %v910_v48 = vpop.f32.mrf.mxu2 }
 0xc71   :  { %v911_v49 = vadd.f32 %v4295_v50, %v910_v48 }
 0xc73   :  { %v914_v51 = vpack.c.bf16 %v911_v49, %v911_v49 }
 0xc75   :  { %v916_v53 = vrot.slane %v914_v51, 2 }
 0xc77   :  { %v919_v55 = vsel %vm381_vm12, %v914_v51, %v916_v53  ;;  %v920_v16 = vsel %vm385_vm11, %v914_v51, %v916_v53 }
 0xc78   :  { %v922_v27 = vrot.slane %v920_v16, 2  ;;  %v912_v2 = vpop.f32.mrf.mxu2  ;;  %3579 = vmatmul.msk.bf16.vlgmr.msra.gmra.mxu3 %vm103_vm0, %v919_v55 }
 0xc79   :  { %1205 = vmatpush.bf16.msra.mxu3 %v4456_v9 }
 0xc7a   :  { %3580 = vmatmul.msk.bf16.vlgmr.msrb.gmra.mxu0 %vm103_vm0, %v922_v27 }
 0xc7b   :  { %1269 = vmatpush.bf16.msrb.mxu0 %v4247_v59 }
 0xc7d   :  { %1206 = vmatpush.bf16.msra.mxu3 %v4462_v10 }
 0xc7f   :  { %1270 = vmatpush.bf16.msrb.mxu0 %v4253_v0 }
 0xc81   :  { %1207 = vmatpush.bf16.msra.mxu3 %v4468_v11 }
 0xc85   :  { %1208 = vmatpush.bf16.msra.mxu3 %v4474_v12 }
 0xc89   :  { %1209 = vmatpush.bf16.msra.mxu3 %v4480_v13 }
 0xc8d   :  { %1210 = vmatpush.bf16.msra.mxu3 %v4486_v15 }
 0xc91   :  { %1211 = vmatpush.bf16.msra.mxu3 %v4492_v18 }
 0xc95   :  { %1212 = vmatpush.bf16.msra.mxu3 %v4501_v20 }
 0xcf7   :  { %v950_v50 = vpop.f32.mrf.mxu0 }
 0xcf8   :  { %v955_v56 = vmul.f32 %v4336_v36, %v950_v50 }
 0xcfa   :  { %v957_v59 = vadd.f32 %v4346_v38, %v955_v56 }
 0xcfb   :  { %v934_v23 = vpop.f32.mrf.mxu3 }
 0xcfc   :  { %v965_v0 = vsel %vm460_vm13, %v957_v59, -inf  ;;  %v954_v34 = vmul.f32 %v4331_v33, %v934_v23 }
 0xcfd   :  { %v966_v43 = vrot.slane %v965_v0, 4 }
 0xcfe   :  { %v956_v58 = vadd.f32 %v4341_v37, %v954_v34 }
 0xcff   :  { %v967_v60 = vmax.f32 %v965_v0, %v966_v43  ;;  %v952_v35 = vpop.f32.mrf.mxu0 }
 0xd00   :  { %v958_v62 = vsel %vm460_vm13, %v956_v58, -inf }
 0xd01   :  { %v968_v63 = vrot.slane %v967_v60, 2  ;;  %v959_v21 = vrot.slane %v958_v62, 4 }
 0xd03   :  { %v969_v4 = vmax.f32 %v967_v60, %v968_v63  ;;  %v960_v6 = vmax.f32 %v958_v62, %v959_v21  ;;  %v936_v7 = vpop.f32.mrf.mxu3 }
 0xd05   :  { %v970_v36 = vrot.slane %v969_v4, 1  ;;  %v961_v8 = vrot.slane %v960_v6, 2 }
 0xd07   :  { %v971_v38 = vmax.f32 %v969_v4, %v970_v36  ;;  %v962_v29 = vmax.f32 %v960_v6, %v961_v8  ;;  %v1092_v36 = vpack.c.bf16 %v4523_v1, %v4523_v1 }
 0xd09   :  { %v973_v44 = vsub.f32 %v957_v59, %v971_v38  ;;  %v963_v45 = vrot.slane %v962_v29, 1 }
 0xd0b   :  { %v976_v46 = vmul.f32 1.442695, %v973_v44  ;;  %v964_v33 = vmax.f32 %v962_v29, %v963_v45 }
 0xd0d   :  { %3985 = vpow2.f32 %v976_v46  ;;  %v972_v47 = vsub.f32 %v956_v58, %v964_v33 }
 0xd0f   :  { %v974_v37 = vmul.f32 1.442695, %v972_v47 }
 0xd11   :  { %3987 = vpow2.f32 %v974_v37 }
 0xd13   :  { %v3986_v48 = vpop.eup %3985 }
 0xd14   :  { %v985_v49 = vsel %vm460_vm13, %v3986_v48, 0.0 }
 0xd15   :  { %v986_v51 = vrot.slane %v985_v49, 4 }
 0xd17   :  { %v3988_v53 = vpop.eup %3987  ;;  %v987_v55 = vadd.f32 %v986_v51, %v985_v49 }
 0xd18   :  { %v978_v16 = vsel %vm460_vm13, %v3988_v53, 0.0 }
 0xd19   :  { %v979_v27 = vrot.slane %v978_v16, 4  ;;  %v988_v2 = vrot.slane %v987_v55, 2 }
 0xd1b   :  { %v980_v50 = vadd.f32 %v979_v27, %v978_v16  ;;  %v989_v56 = vadd.f32 %v988_v2, %v987_v55 }
 0xd1d   :  { %v990_v59 = vrot.slane %v989_v56, 1  ;;  %v981_v23 = vrot.slane %v980_v50, 2 }
 0xd1f   :  { %v991_v0 = vadd.f32 %v990_v59, %v989_v56  ;;  %v982_v34 = vadd.f32 %v981_v23, %v980_v50 }
 0xd21   :  { %3989 = vrcp.f32 %v991_v0  ;;  %v983_v43 = vrot.slane %v982_v34, 1 }
 0xd23   :  { %v984_v58 = vadd.f32 %v983_v43, %v982_v34 }
 0xd25   :  { %3991 = vrcp.f32 %v984_v58 }
 0xd27   :  { %v3990_v60 = vpop.eup %3989 }
 0xd28   :  { %v995_v35 = vmul.f32 %v3990_v60, %v3986_v48 }
 0xd2a   :  { %v997_v62 = vadd.f32 1e-08, %v995_v35 }
 0xd2b   :  { %v3992_v63 = vpop.eup %3991 }
 0xd2c   :  { %v1001_v21 = vsel %vm460_vm13, %v997_v62, 0.0  ;;  %v994_v4 = vmul.f32 %v3992_v63, %v3988_v53 }
 0xd2d   :  { %1002 = vadd.xlane.f32.xlu0 %v1001_v21 }
 0xd2e   :  { %v996_v6 = vadd.f32 1e-08, %v994_v4 }
 0xd30   :  { %v998_v7 = vsel %vm460_vm13, %v996_v6, 0.0 }
 0xd31   :  { %999 = vadd.xlane.f32.xlu2 %v998_v7 }
 0xd49   :  { %1094 = vrot.lane.b32.xlu2 %v1092_v36, %s4141_s16 }
 0xda0   :  { %v1003_v8 = vpop.xlane.xlu0 %1002 }
 0xda1   :  { %3993 = vrcp.f32 %v1003_v8  ;;  %v1028_v33 = vand.u32 2147483647, %v1003_v8  ;;  %v1030_v47 = vand.u32 2147483648, %v1003_v8  ;;  %vm1024_vm9 = vweird.f32 %v1003_v8 }
 0xda3   :  { %vm1029_vm14 = vcmp.eq.f32.partialorder %v1028_v33, 8.507059e+37  ;;  %v1031_v55 = vor.u32 1.1754944e-38, %v1030_v47 }
 0xda4   :  { %v1000_v38 = vpop.xlane.xlu2 %999 }
 0xda5   :  { %3995 = vrcp.f32 %v1000_v38  ;;  %v1015_v16 = vand.u32 2147483648, %v1000_v38  ;;  %v1013_v50 = vand.u32 2147483647, %v1000_v38  ;;  %vm1009_vm1 = vweird.f32 %v1000_v38 }
 0xda7   :  { %v3994_v29 = vpop.eup %3993  ;;  %v1016_v0 = vor.u32 1.1754944e-38, %v1015_v16  ;;  %vm1014_vm3 = vcmp.eq.f32.partialorder %v1013_v50, 8.507059e+37 }
 0xda8   :  { %v1020_v44 = vmul.f32 %v3994_v29, %v1003_v8  ;;  %vm1025_vm7 = vweird.f32 %v3994_v29 }
 0xda9   :  { %vm1026_vm10 = vmor %vm1024_vm9, %vm1025_vm7 }
 0xdaa   :  { %v1021_v45 = vsub.f32 1.0, %v1020_v44 }
 0xdab   :  { %v3996_v46 = vpop.eup %3995 }
 0xdac   :  { %v1022_v37 = vmul.f32 %v3994_v29, %v1021_v45  ;;  %v1005_v48 = vmul.f32 %v3996_v46, %v1000_v38  ;;  %v1095_v49 = vpop.permute.xlu2 %1094  ;;  %vm1010_vm15 = vweird.f32 %v3996_v46 }
 0xdad   :  { %3584 = vmatmul.msk.bf16.vlgmr.msrb.gmra.mxu1 %vm103_vm0, %v1095_v49  ;;  %vm1011_vm2 = vmor %vm1009_vm1, %vm1010_vm15 }
 0xdae   :  { %v1023_v51 = vadd.f32 %v3994_v29, %v1022_v37  ;;  %v1006_v53 = vsub.f32 1.0, %v1005_v48  ;;  %1424 = vmatpush.bf16.msrb.mxu1 %v4365_v61 }
 0xdb0   :  { %v1027_v27 = vsel %vm1026_vm10, %v3994_v29, %v1023_v51  ;;  %v1007_v2 = vmul.f32 %v3996_v46, %v1006_v53 }
 0xdb1   :  { %v1032_v56 = vsel %vm1029_vm14, %v1031_v55, %v1027_v27 }
 0xdb2   :  { %v1033_v59 = vmul.f32 %v1032_v56, %v997_v62  ;;  %v1008_v23 = vadd.f32 %v3996_v46, %v1007_v2 }
 0xdb4   :  { %v1012_v34 = vsel %vm1011_vm2, %v3996_v46, %v1008_v23  ;;  %v1035_v43 = vpack.c.bf16 %v1033_v59, %v1033_v59 }
 0xdb5   :  { %v1017_v58 = vsel %vm1014_vm3, %v1016_v0, %v1012_v34 }
 0xdb6   :  { %v1018_v60 = vmul.f32 %v1017_v58, %v996_v6  ;;  %3582 = vmatmul.msk.bf16.vlgmr.msrb.gmra.mxu3 %vm544_vm8, %v1035_v43 }
 0xdb7   :  { %1467 = vmatpush.bf16.msrb.mxu3 %v4307_v26 }
 0xdb8   :  { %v1034_v61 = vpack.c.bf16 %v1018_v60, %v1018_v60 }
 0xdba   :  { %3581 = vmatmul.msk.bf16.vlgmr.msrb.gmra.mxu2 %vm544_vm8, %v1034_v61 }
 0xdbb   :  { %1309 = vmatpush.bf16.msrb.mxu2 %v4300_v17  ;;  %1468 = vmatpush.bf16.msrb.mxu3 %v4320_v31 }
 0xdbf   :  { %1310 = vmatpush.bf16.msrb.mxu2 %v4311_v28 }
 0xe2a   :  { %v1108_v35 = vpop.f32.mrf.mxu1 }
 0xe2b   :  { %v1109_v62 = vadd.f32 %v4416_v54, %v1108_v35 }
 0xe2d   :  { %1133 = vrot.lane.b32.xlu1 %v1109_v62, %s4143_s28 }
 0xe32   :  { %v1110_v63 = vpop.f32.mrf.mxu1 }
 0xe39   :  { %v1064_v21 = vpop.f32.mrf.mxu3 }
 0xe3a   :  { %1072 = vst [vmem:[#allocation1 + $0x1] ss:$2 sm:$0xff] %v1064_v21 }
 0xe3d   :  { %v1048_v4 = vpop.f32.mrf.mxu2 }
 0xe3e   :  { %1070 = vst [vmem:[#allocation1] ss:$2 sm:$0xff] %v1048_v4 }
 0xe41   :  { %v1066_v26 = vpop.f32.mrf.mxu3 }
 0xe45   :  { %v1073_v6 = vld.sshfl [vmem:[#allocation1] sm:$0xff pattern:$0x75316420]  ;;  %v1050_v7 = vpop.f32.mrf.mxu2 }
 0xe46   :  { %v1075_v36 = vpack.c.bf16 %v1073_v6, %v1073_v6 }
 0xe48   :  { %3583 = vmatmul.msk.bf16.vlgmr.msra.gmra.mxu0 %vm103_vm0, %v1075_v36 }
 0xe49   :  { %1408 = vmatpush.bf16.msra.mxu0 %v4375_v32 }
 0xec5   :  { %v1088_v17 = vpop.f32.mrf.mxu0 }
 0xec6   :  { %v1089_v28 = vadd.f32 %v4423_v57, %v1088_v17  ;;  %v1134_v57 = vpop.permute.xlu1 %1133 }
 0xec8   :  { %v1112_v31 = vadd.f32 %v1109_v62, %v1089_v28 }
 0xeca   :  { %v3585_v54 = vmul.f32 -1.442695, %v1112_v31 }
 0xecc   :  { %3997 = vpow2.f32 %v3585_v54 }
 0xecd   :  { %v1090_v8 = vpop.f32.mrf.mxu0 }
 0xed2   :  { %v3998_v38 = vpop.eup %3997 }
 0xed3   :  { %v1116_v29 = vadd.f32 1.0, %v3998_v38 }
 0xed5   :  { %3999 = vrcp.f32 %v1116_v29  ;;  %v1128_v33 = vand.u32 2147483648, %v1116_v29  ;;  %v1126_v37 = vand.u32 2147483647, %v1116_v29  ;;  %vm1122_vm5 = vweird.f32 %v1116_v29 }
 0xed7   :  { %v1129_v32 = vor.u32 1.1754944e-38, %v1128_v33  ;;  %vm1127_vm7 = vcmp.eq.f32.partialorder %v1126_v37, 8.507059e+37 }
 0xedb   :  { %v4000_v44 = vpop.eup %3999 }
 0xedc   :  { %v1118_v45 = vmul.f32 %v4000_v44, %v1116_v29  ;;  %vm1123_vm4 = vweird.f32 %v4000_v44 }
 0xedd   :  { %vm1124_vm6 = vmor %vm1122_vm5, %vm1123_vm4 }
 0xede   :  { %v1119_v46 = vsub.f32 1.0, %v1118_v45 }
 0xee0   :  { %v1120_v47 = vmul.f32 %v4000_v44, %v1119_v46 }
 0xee2   :  { %v1121_v48 = vadd.f32 %v4000_v44, %v1120_v47 }
 0xee4   :  { %v1125_v49 = vsel %vm1124_vm6, %v4000_v44, %v1121_v48 }
 0xee5   :  { %v1130_v51 = vsel %vm1127_vm7, %v1129_v32, %v1125_v49 }
 0xee6   :  { %v1136_v53 = vmul.f32 %v1134_v57, %v1130_v51  ;;  %v1143_v2 = vsub.f32 1.0, %v1130_v51  ;;  %v1149_v56 = vmul.f32 %v1130_v51, %v4523_v1 }
 0xee8   :  { %1138 = vrot.lane.b32.xlu1 %v1136_v53, %s4143_s28 }
 0xf5a   :  { %v1139_v55 = vpop.permute.xlu1 %1138 }
 0xf5b   :  { %v1141_v16 = vadd.f32 %v1139_v55, %v1089_v28 }
 0xf5d   :  { %4001 = vtanh.f32 %v1141_v16 }
 0xf63   :  { %v4002_v27 = vpop.eup %4001 }
 0xf64   :  { %1145 = vrot.lane.b32.xlu1 %v4002_v27, %s4141_s16 }
 0xfd6   :  { %v1146_v50 = vpop.permute.xlu1 %1145 }
 0xfd7   :  { %v1148_v59 = vmul.f32 %v1146_v50, %v1143_v2 }
 0xfd9   :  { %v1150_v23 = vadd.f32 %v1149_v56, %v1148_v59 }
 0xfdb   :  { %1152 = vrot.lane.b32.xlu2 %v1150_v23, %s4141_s16 }
0x1035   :  { %v1153_v0 = vpop.permute.xlu2 %1152 }
0x1036   :  { %v1155_v34 = vsel %vm103_vm0, %v1153_v0, 0.0 }
0x1037   :  { %1156 = vadd.xlane.f32.xlu1 %v1155_v34 }
0x10aa   :  { %v1157_v43 = vpop.xlane.xlu1 %1156 }
0x10ab   :  { %v1158_v58 = vmul.f32 %v1157_v43, %v4207_v14 }
0x10ad   :  { %v1159_v60 = vsub.f32 %v1150_v23, %v1158_v58 }
0x10af   :  { %v1160_v61 = vmul.f32 %v1159_v60, %v1159_v60 }
0x10b1   :  { %1162 = vrot.lane.b32.xlu2 %v1160_v61, %s4141_s16 }
0x110b   :  { %v1163_v35 = vpop.permute.xlu2 %1162 }
0x110c   :  { %v1165_v62 = vsel %vm103_vm0, %v1163_v35, 0.0 }
0x110d   :  { %1166 = vadd.xlane.f32.xlu0 %v1165_v62 }
0x1180   :  { %v1167_v1 = vpop.xlane.xlu0 %1166 }
0x1181   :  { %v1168_v63 = vmul.f32 %v1167_v1, %v4207_v14 }
0x1183   :  { %v1169_v21 = vadd.f32 1e-05, %v1168_v63 }
0x1185   :  { %4003 = vrsqrt.f32 %v1169_v21  ;;  %vm1176_vm10 = vweird.f32 %v1169_v21 }
0x118b   :  { %v4004_v4 = vpop.eup %4003 }
0x118c   :  { %v1171_v26 = vmul.f32 %v4004_v4, %v1169_v21  ;;  %vm1177_vm9 = vweird.f32 %v4004_v4 }
0x118d   :  { %vm1178_vm14 = vmor %vm1176_vm10, %vm1177_vm9 }
0x118e   :  { %v1172_v6 = vmul.f32 %v4004_v4, %v1171_v26 }
0x1190   :  { %v1173_v7 = vmul.f32 0.5, %v1172_v6 }
0x1192   :  { %v1174_v36 = vsub.f32 1.5, %v1173_v7 }
0x1194   :  { %v1175_v17 = vmul.f32 %v4004_v4, %v1174_v36 }
0x1196   :  { %v1179_v28 = vsel %vm1178_vm14, %v4004_v4, %v1175_v17  ;;  %v4101_v4 = vld [vmem:[%s5262_s6 + $0x6] ss:$0 sm:$0xff] }
0x1197   :  { %v1180_v31 = vmul.f32 %v1179_v28, %v1159_v60 }
0x1199   :  { %v1181_v54 = vmul.f32 %v1180_v31, %v4446_v3 }
0x119b   :  { %v1182_v8 = vadd.f32 %v1181_v54, %v4448_v5 }
0x119d   :  { %v1183_v38 = vpack.c.bf16 %v1182_v8, %v1182_v8  ;;  %v4105_v8 = vld [vmem:[%s5258_s2 + $0x1] ss:$0 sm:$0xff] }
0x119f   :  { %1185 = vrot.lane.b32.xlu2 %v1183_v38, %s4141_s16 }
0x11f9   :  { %v1186_v29 = vpop.permute.xlu2 %1185 }
0x11fa   :  { %3586 = vmatmul.msk.bf16.vlgmr.msra.gmra.mxu2 %vm103_vm0, %v1186_v29 }
0x11fb   :  { %1447 = vmatpush.bf16.msra.mxu2 %v4391_v41 }
0x11ff   :  { %1448 = vmatpush.bf16.msra.mxu2 %v4397_v42 }
0x127d   :  { %v1199_v44 = vpop.f32.mrf.mxu2 }
0x127e   :  { %v1200_v45 = vadd.f32 %v4513_v30, %v1199_v44 }
0x1280   :  { %v1203_v46 = vmax.f32 %v1200_v45, 0.0 }
0x1282   :  { %v1204_v33 = vpack.c.bf16 %v1203_v46, %v1203_v46 }
0x1284   :  { %1213 = vmatmul.bf16.vlgmr.msra.gmra.mxu3 %v1204_v33 }
0x1285   :  { %v1201_v47 = vpop.f32.mrf.mxu2 }
0x1307   :  { %v1214_v37 = vpop.f32.mrf.mxu3 }
0x1308   :  { %1219 = vrot.lane.b32.xlu0 %v1214_v37, %s4142_s25 }
0x130f   :  { %v1216_v48 = vpop.f32.mrf.mxu3 }
0x137a   :  { %v1220_v32 = vpop.permute.xlu0 %1219 }
0x137b   :  { %v1222_v49 = vadd.f32 %v1220_v32, %v1150_v23 }
0x137d   :  { %v4604_v57 = vadd.f32 %v1222_v49, %v4519_v52 }
0x137f   :  { %1225 = vrot.lane.b32.xlu2 %v4604_v57, %s4141_s16 }
0x13d9   :  { %v1226_v41 = vpop.permute.xlu2 %1225 }
0x13da   :  { %v1228_v42 = vsel %vm103_vm0, %v1226_v41, 0.0 }
0x13db   :  { %1229 = vadd.xlane.f32.xlu2 %v1228_v42 }
0x144e   :  { %v1230_v30 = vpop.xlane.xlu2 %1229 }
0x144f   :  { %v1231_v51 = vmul.f32 %v1230_v30, %v4207_v14 }
0x1451   :  { %v1232_v53 = vsub.f32 %v4604_v57, %v1231_v51 }
0x1453   :  { %v1233_v55 = vmul.f32 %v1232_v53, %v1232_v53 }
0x1455   :  { %1235 = vrot.lane.b32.xlu0 %v1233_v55, %s4141_s16 }
0x14c7   :  { %v1236_v16 = vpop.permute.xlu0 %1235 }
0x14c8   :  { %v1238_v27 = vsel %vm103_vm0, %v1236_v16, 0.0 }
0x14c9   :  { %1239 = vadd.xlane.f32.xlu1 %v1238_v27 }
0x153c   :  { %v1240_v2 = vpop.xlane.xlu1 %1239 }
0x153d   :  { %v1241_v50 = vmul.f32 %v1240_v2, %v4207_v14 }
0x153f   :  { %v1242_v56 = vadd.f32 1e-05, %v1241_v50 }
0x1541   :  { %4005 = vrsqrt.f32 %v1242_v56  ;;  %vm1249_vm1 = vweird.f32 %v1242_v56 }
0x1547   :  { %v4006_v59 = vpop.eup %4005 }
0x1548   :  { %v1244_v23 = vmul.f32 %v4006_v59, %v1242_v56  ;;  %vm1250_vm15 = vweird.f32 %v4006_v59 }
0x1549   :  { %vm1251_vm2 = vmor %vm1249_vm1, %vm1250_vm15 }
0x154a   :  { %v1245_v0 = vmul.f32 %v4006_v59, %v1244_v23 }
0x154c   :  { %v1246_v34 = vmul.f32 0.5, %v1245_v0 }
0x154e   :  { %v1247_v43 = vsub.f32 1.5, %v1246_v34 }
0x1550   :  { %v1248_v58 = vmul.f32 %v4006_v59, %v1247_v43 }
0x1552   :  { %v1252_v60 = vsel %vm1251_vm2, %v4006_v59, %v1248_v58 }
0x1553   :  { %v1253_v61 = vmul.f32 %v1252_v60, %v1232_v53 }
0x1555   :  { %v1254_v35 = vmul.f32 %v1253_v61, %v4535_v19 }
0x1557   :  { %v1255_v62 = vadd.f32 %v1254_v35, %v4537_v39 }
0x1559   :  { %v1256_v1 = vpack.c.bf16 %v1255_v62, %v1255_v62 }
0x155b   :  { %1258 = vrot.lane.b32.xlu0 %v1256_v1, %s4141_s16 }
0x15cd   :  { %v1259_v63 = vpop.permute.xlu0 %1258 }
0x15ce   :  { %3587 = vmatmul.msk.bf16.vlgmr.msrb.gmra.mxu0 %vm103_vm0, %v1259_v63 }
0x15cf   :  { %1558 = vmatpush.bf16.msrb.mxu0 %v4372_v22 }
0x15d3   :  { %1559 = vmatpush.bf16.msrb.mxu0 %v4382_v40  ;;  %v4102_v40 = vld [vmem:[%s5257_s1] ss:$0 sm:$0xff] }
0x164b   :  { %v1272_v21 = vpop.f32.mrf.mxu0 }
0x164c   :  { %v1273_v26 = vadd.f32 %v4101_v4, %v1272_v21 }
0x164e   :  { %v1276_v6 = vpack.c.bf16 %v1273_v26, %v1273_v26 }
0x1650   :  { %v1278_v19 = vrot.slane %v1276_v6, 2 }
0x1652   :  { %v1281_v39 = vsel %vm381_vm12, %v1276_v6, %v1278_v19  ;;  %v1282_v7 = vsel %vm385_vm11, %v1276_v6, %v1278_v19 }
0x1653   :  { %v1284_v36 = vrot.slane %v1282_v7, 2  ;;  %v1274_v17 = vpop.f32.mrf.mxu0  ;;  %3588 = vmatmul.msk.bf16.vlgmr.msra.gmra.mxu1 %vm103_vm0, %v1281_v39  ;;  %v1454_v7 = vpack.c.bf16 %v4604_v57, %v4604_v57 }
0x1654   :  { %1567 = vmatpush.bf16.msra.mxu1 %v4456_v9 }
0x1655   :  { %3589 = vmatmul.msk.bf16.vlgmr.msrb.gmra.mxu2 %vm103_vm0, %v1284_v36 }
0x1658   :  { %1568 = vmatpush.bf16.msra.mxu1 %v4462_v10  ;;  %v4103_v10 = vld [vmem:[%s5258_s2] ss:$0 sm:$0xff]  ;;  %s4145_s2 = smov 4  }
0x165c   :  { %1569 = vmatpush.bf16.msra.mxu1 %v4468_v11 }
0x1660   :  { %1570 = vmatpush.bf16.msra.mxu1 %v4474_v12 }
0x1664   :  { %1571 = vmatpush.bf16.msra.mxu1 %v4480_v13 }
0x1668   :  { %1572 = vmatpush.bf16.msra.mxu1 %v4486_v15 }
0x166c   :  { %1573 = vmatpush.bf16.msra.mxu1 %v4492_v18  ;;  %v4104_v18 = vld [vmem:[%s5257_s1 + $0x1] ss:$0 sm:$0xff]  ;;  %s3464_s1 = sshll.u32 %s5263_s7, 4  ;;  %s3465_s1 = int_to_ptr.hbm [resolvable:$true] %s3464_s1 }
0x1670   :  { %1574 = vmatpush.bf16.msra.mxu1 %v4501_v20 }
0x16d0   :  { %v1296_v22 = vpop.f32.mrf.mxu1 }
0x16d1   :  { %v1316_v9 = vmul.f32 %v4102_v40, %v1296_v22 }
0x16d3   :  { %v1318_v11 = vadd.f32 %v4103_v10, %v1316_v9 }
0x16d5   :  { %v1320_v12 = vsel %vm460_vm13, %v1318_v11, -inf }
0x16d6   :  { %v1321_v13 = vrot.slane %v1320_v12, 4 }
0x16d8   :  { %v1322_v28 = vmax.f32 %v1320_v12, %v1321_v13  ;;  %v1298_v15 = vpop.f32.mrf.mxu1  ;;  %v1312_v31 = vpop.f32.mrf.mxu2 }
0x16d9   :  { %v1317_v20 = vmul.f32 %v4104_v18, %v1312_v31 }
0x16da   :  { %v1323_v54 = vrot.slane %v1322_v28, 2 }
0x16db   :  { %v1319_v38 = vadd.f32 %v4105_v8, %v1317_v20 }
0x16dc   :  { %v1324_v29 = vmax.f32 %v1322_v28, %v1323_v54 }
0x16dd   :  { %v1327_v44 = vsel %vm460_vm13, %v1319_v38, -inf }
0x16de   :  { %v1325_v45 = vrot.slane %v1324_v29, 1  ;;  %v1328_v46 = vrot.slane %v1327_v44, 4 }
0x16e0   :  { %v1326_v33 = vmax.f32 %v1324_v29, %v1325_v45  ;;  %v1329_v47 = vmax.f32 %v1327_v44, %v1328_v46  ;;  %v1314_v37 = vpop.f32.mrf.mxu2 }
0x16e2   :  { %v1334_v48 = vsub.f32 %v1318_v11, %v1326_v33  ;;  %v1330_v32 = vrot.slane %v1329_v47, 2 }
0x16e4   :  { %v1336_v49 = vmul.f32 1.442695, %v1334_v48  ;;  %v1331_v41 = vmax.f32 %v1329_v47, %v1330_v32 }
0x16e6   :  { %4007 = vpow2.f32 %v1336_v49  ;;  %v1332_v42 = vrot.slane %v1331_v41, 1 }
0x16e8   :  { %v1333_v30 = vmax.f32 %v1331_v41, %v1332_v42 }
0x16ea   :  { %v1335_v51 = vsub.f32 %v1319_v38, %v1333_v30 }
0x16ec   :  { %v4008_v53 = vpop.eup %4007  ;;  %v1338_v55 = vmul.f32 1.442695, %v1335_v51 }
0x16ed   :  { %v1340_v16 = vsel %vm460_vm13, %v4008_v53, 0.0 }
0x16ee   :  { %v1341_v27 = vrot.slane %v1340_v16, 4  ;;  %4009 = vpow2.f32 %v1338_v55 }
0x16f0   :  { %v1342_v2 = vadd.f32 %v1341_v27, %v1340_v16  ;;  %v4666_v16 = vld [vmem:[%s5259_s3 + $0x8] sm:$0xf]  ;;  %v4671_v27 = vld [vmem:[%s5259_s3 + $0xc] sm:$0xf] }
0x16f2   :  { %v1343_v50 = vrot.slane %v1342_v2, 2 }
0x16f4   :  { %v4010_v56 = vpop.eup %4009  ;;  %v1344_v59 = vadd.f32 %v1343_v50, %v1342_v2 }
0x16f5   :  { %v1347_v23 = vsel %vm460_vm13, %v4010_v56, 0.0 }
0x16f6   :  { %v1348_v0 = vrot.slane %v1347_v23, 4  ;;  %v1345_v34 = vrot.slane %v1344_v59, 1 }
0x16f8   :  { %v1349_v43 = vadd.f32 %v1348_v0, %v1347_v23  ;;  %v1346_v58 = vadd.f32 %v1345_v34, %v1344_v59  ;;  %v4107_v0 = vld [vmem:[%s5262_s6 + $0x8] ss:$0 sm:$0xff] }
0x16fa   :  { %4011 = vrcp.f32 %v1346_v58  ;;  %v1350_v60 = vrot.slane %v1349_v43, 2 }
0x16fc   :  { %v1351_v61 = vadd.f32 %v1350_v60, %v1349_v43 }
0x16fe   :  { %v1352_v35 = vrot.slane %v1351_v61, 1 }
0x1700   :  { %v4012_v62 = vpop.eup %4011  ;;  %v1353_v1 = vadd.f32 %v1352_v35, %v1351_v61 }
0x1701   :  { %v1356_v63 = vmul.f32 %v4012_v62, %v4008_v53  ;;  %v4106_v53 = vld [vmem:[%s5262_s6 + $0x9] ss:$0 sm:$0xff] }
0x1702   :  { %4013 = vrcp.f32 %v1353_v1 }
0x1703   :  { %v1358_v21 = vadd.f32 1e-08, %v1356_v63 }
0x1705   :  { %v1360_v4 = vsel %vm460_vm13, %v1358_v21, 0.0 }
0x1706   :  { %1361 = vadd.xlane.f32.xlu1 %v1360_v4 }
0x1708   :  { %v4014_v26 = vpop.eup %4013 }
0x1709   :  { %v1357_v6 = vmul.f32 %v4014_v26, %v4010_v56 }
0x170b   :  { %v1359_v19 = vadd.f32 1e-08, %v1357_v6 }
0x170d   :  { %v1363_v39 = vsel %vm460_vm13, %v1359_v19, 0.0 }
0x170e   :  { %1364 = vadd.xlane.f32.xlu0 %v1363_v39 }
0x171f   :  { %1456 = vrot.lane.b32.xlu1 %v1454_v7, %s4141_s16 }
0x1779   :  { %v1362_v36 = vpop.xlane.xlu1 %1361 }
0x177a   :  { %4015 = vrcp.f32 %v1362_v36  ;;  %v1377_v10 = vand.u32 2147483648, %v1362_v36  ;;  %v1375_v12 = vand.u32 2147483647, %v1362_v36  ;;  %vm1371_vm4 = vweird.f32 %v1362_v36 }
0x177c   :  { %v1378_v15 = vor.u32 1.1754944e-38, %v1377_v10  ;;  %vm1376_vm5 = vcmp.eq.f32.partialorder %v1375_v12, 8.507059e+37 }
0x1780   :  { %v4016_v17 = vpop.eup %4015 }
0x1781   :  { %v1367_v22 = vmul.f32 %v4016_v17, %v1362_v36  ;;  %v1365_v40 = vpop.xlane.xlu0 %1364  ;;  %vm1372_vm3 = vweird.f32 %v4016_v17 }
0x1782   :  { %4017 = vrcp.f32 %v1365_v40  ;;  %vm1373_vm13 = vmor %vm1371_vm4, %vm1372_vm3  ;;  %v1392_v38 = vand.u32 2147483648, %v1365_v40  ;;  %v1390_v44 = vand.u32 2147483647, %v1365_v40  ;;  %vm1386_vm7 = vweird.f32 %v1365_v40 }
0x1783   :  { %v1368_v9 = vsub.f32 1.0, %v1367_v22 }
0x1784   :  { %v1393_v33 = vor.u32 1.1754944e-38, %v1392_v38  ;;  %vm1391_vm10 = vcmp.eq.f32.partialorder %v1390_v44, 8.507059e+37 }
0x1785   :  { %v1369_v11 = vmul.f32 %v4016_v17, %v1368_v9 }
0x1787   :  { %v1370_v13 = vadd.f32 %v4016_v17, %v1369_v11 }
0x1788   :  { %v4018_v28 = vpop.eup %4017 }
0x1789   :  { %v1374_v31 = vsel %vm1373_vm13, %v4016_v17, %v1370_v13  ;;  %v1382_v18 = vmul.f32 %v4018_v28, %v1365_v40  ;;  %vm1387_vm6 = vweird.f32 %v4018_v28  ;;  %vm1646_vm13 = vcmask 523264  }
0x178a   :  { %v1379_v20 = vsel %vm1376_vm5, %v1378_v15, %v1374_v31  ;;  %vm1388_vm9 = vmor %vm1386_vm7, %vm1387_vm6 }
0x178b   :  { %v1380_v54 = vmul.f32 %v1379_v20, %v1358_v21  ;;  %v1383_v8 = vsub.f32 1.0, %v1382_v18 }
0x178d   :  { %v1384_v29 = vmul.f32 %v4018_v28, %v1383_v8  ;;  %v1396_v45 = vpack.c.bf16 %v1380_v54, %v1380_v54 }
0x178f   :  { %v1385_v46 = vadd.f32 %v4018_v28, %v1384_v29  ;;  %3590 = vmatmul.msk.bf16.vlgmr.msra.gmra.mxu0 %vm544_vm8, %v1396_v45 }
0x1791   :  { %v1389_v47 = vsel %vm1388_vm9, %v4018_v28, %v1385_v46  ;;  %v1457_v37 = vpop.permute.xlu1 %1456 }
0x1792   :  { %v1394_v48 = vsel %vm1391_vm10, %v1393_v33, %v1389_v47  ;;  %3593 = vmatmul.msk.bf16.vlgmr.msrb.gmra.mxu3 %vm103_vm0, %v1457_v37 }
0x1793   :  { %v1395_v32 = vmul.f32 %v1394_v48, %v1359_v19 }
0x1795   :  { %v1397_v49 = vpack.c.bf16 %v1395_v32, %v1395_v32 }
0x1797   :  { %3591 = vmatmul.msk.bf16.vlgmr.msrb.gmra.mxu1 %vm544_vm8, %v1397_v49 }
0x180c   :  { %v1410_v41 = vpop.f32.mrf.mxu0 }
0x180d   :  { %1432 = vst [vmem:[#allocation1] ss:$2 sm:$0xff] %v1410_v41 }
0x1814   :  { %v1412_v42 = vpop.f32.mrf.mxu0  ;;  %v1426_v30 = vpop.f32.mrf.mxu1 }
0x1815   :  { %1434 = vst [vmem:[#allocation1 + $0x1] ss:$2 sm:$0xff] %v1426_v30  ;;  %v1470_v51 = vpop.f32.mrf.mxu3 }
0x1816   :  { %v1471_v55 = vadd.f32 %v4106_v53, %v1470_v51 }
0x1818   :  { %1495 = vrot.lane.b32.xlu2 %v1471_v55, %s4143_s28 }
0x181c   :  { %v1435_v2 = vld.sshfl [vmem:[#allocation1] sm:$0xff pattern:$0x75316420]  ;;  %v1428_v50 = vpop.f32.mrf.mxu1 }
0x181d   :  { %1948 = vst [vmem:[#allocation1] ss:$2 sm:$0xff] %v4666_v16  ;;  %v1472_v56 = vpop.f32.mrf.mxu3  ;;  %v1437_v59 = vpack.c.bf16 %v1435_v2, %v1435_v2  ;;  %v4108_v2 = vld [vmem:[%s5262_s6 + $0xa] ss:$0 sm:$0xff] }
0x181e   :  { %1950 = vst [vmem:[#allocation1 + $0x1] ss:$2 sm:$0xff] %v4671_v27 }
0x181f   :  { %3592 = vmatmul.msk.bf16.vlgmr.msra.gmra.mxu2 %vm103_vm0, %v1437_v59 }
0x1872   :  { %v1496_v7 = vpop.permute.xlu2 %1495 }
0x18a2   :  { %v1450_v23 = vpop.f32.mrf.mxu2 }
0x18a3   :  { %v1451_v34 = vadd.f32 %v4107_v0, %v1450_v23 }
0x18a5   :  { %v1474_v43 = vadd.f32 %v1471_v55, %v1451_v34 }
0x18a7   :  { %v3594_v58 = vmul.f32 -1.442695, %v1474_v43 }
0x18a9   :  { %4019 = vpow2.f32 %v3594_v58 }
0x18aa   :  { %v1452_v60 = vpop.f32.mrf.mxu2 }
0x18af   :  { %v4020_v61 = vpop.eup %4019 }
0x18b0   :  { %v1478_v35 = vadd.f32 1.0, %v4020_v61 }
0x18b2   :  { %4021 = vrcp.f32 %v1478_v35  ;;  %v1490_v21 = vand.u32 2147483648, %v1478_v35  ;;  %v1488_v26 = vand.u32 2147483647, %v1478_v35  ;;  %vm1484_vm14 = vweird.f32 %v1478_v35 }
0x18b4   :  { %v1491_v19 = vor.u32 1.1754944e-38, %v1490_v21  ;;  %vm1489_vm1 = vcmp.eq.f32.partialorder %v1488_v26, 8.507059e+37  ;;  %v3933_v21 = vld [vmem:[%s5262_s6 + $0xc] ss:$0 sm:$0xff] }
0x18b8   :  { %v4022_v62 = vpop.eup %4021 }
0x18b9   :  { %v1480_v1 = vmul.f32 %v4022_v62, %v1478_v35  ;;  %vm1485_vm8 = vweird.f32 %v4022_v62  ;;  %v3839_v35 = vld [vmem:[%s5261_s5 + $0x58] sm:$0xff] }
0x18ba   :  { %vm1486_vm15 = vmor %vm1484_vm14, %vm1485_vm8  ;;  %1654 = vmatpush.bf16.msra.mxu3 %v3839_v35 }
0x18bb   :  { %v1481_v63 = vsub.f32 1.0, %v1480_v1 }
0x18bd   :  { %v1482_v4 = vmul.f32 %v4022_v62, %v1481_v63  ;;  %v3836_v63 = vld [vmem:[%s5261_s5 + $0x40] sm:$0xff] }
0x18bf   :  { %v1483_v6 = vadd.f32 %v4022_v62, %v1482_v4 }
0x18c1   :  { %v1487_v39 = vsel %vm1486_vm15, %v4022_v62, %v1483_v6  ;;  %v3838_v62 = vld [vmem:[%s5261_s5 + $0x50] sm:$0xff] }
0x18c2   :  { %v1492_v36 = vsel %vm1489_vm1, %v1491_v19, %v1487_v39  ;;  %1655 = vmatpush.bf16.msra.mxu3 %v3838_v62 }
0x18c3   :  { %v1498_v17 = vmul.f32 %v1496_v7, %v1492_v36  ;;  %v1505_v10 = vsub.f32 1.0, %v1492_v36  ;;  %v1511_v12 = vmul.f32 %v1492_v36, %v4604_v57  ;;  %v3934_v7 = vld [vmem:[%s5262_s6 + $0xd] ss:$0 sm:$0xff] }
0x18c5   :  { %1500 = vrot.lane.b32.xlu1 %v1498_v17, %s4143_s28 }
0x1937   :  { %v1501_v22 = vpop.permute.xlu1 %1500 }
0x1938   :  { %v1503_v40 = vadd.f32 %v1501_v22, %v1451_v34  ;;  %v3826_v34 = vld [vmem:[%s5260_s4 + $0x50] sm:$0xff] }
0x193a   :  { %4023 = vtanh.f32 %v1503_v40 }
0x1940   :  { %v4024_v9 = vpop.eup %4023 }
0x1941   :  { %1507 = vrot.lane.b32.xlu1 %v4024_v9, %s4141_s16 }
0x19b3   :  { %v1508_v11 = vpop.permute.xlu1 %1507 }
0x19b4   :  { %v1510_v13 = vmul.f32 %v1508_v11, %v1505_v10 }
0x19b6   :  { %v1512_v28 = vadd.f32 %v1511_v12, %v1510_v13 }
0x19b8   :  { %1514 = vrot.lane.b32.xlu2 %v1512_v28, %s4141_s16 }
0x1a12   :  { %v1515_v15 = vpop.permute.xlu2 %1514 }
0x1a13   :  { %v1517_v31 = vsel %vm103_vm0, %v1515_v15, 0.0 }
0x1a14   :  { %1518 = vadd.xlane.f32.xlu0 %v1517_v31  ;;  %v3935_v31 = vld [vmem:[%s5262_s6 + $0x10] ss:$0 sm:$0xff] }
0x1a87   :  { %v1519_v18 = vpop.xlane.xlu0 %1518 }
0x1a88   :  { %v1520_v20 = vmul.f32 %v1519_v18, %v4207_v14  ;;  %v3936_v18 = vld [vmem:[%s5262_s6 + $0x11] ss:$0 sm:$0xff] }
0x1a8a   :  { %v1521_v54 = vsub.f32 %v1512_v28, %v1520_v20 }
0x1a8c   :  { %v1522_v8 = vmul.f32 %v1521_v54, %v1521_v54 }
0x1a8e   :  { %1524 = vrot.lane.b32.xlu1 %v1522_v8, %s4141_s16 }
0x1b00   :  { %v1525_v38 = vpop.permute.xlu1 %1524 }
0x1b01   :  { %v1527_v29 = vsel %vm103_vm0, %v1525_v38, 0.0 }
0x1b02   :  { %1528 = vadd.xlane.f32.xlu2 %v1527_v29 }
0x1b1a   :  { %1700 = vrot.lane.b32.xlu2 %v3935_v31, %s4142_s25 }
0x1b22   :  { %1706 = vrot.lane.b32.xlu2 %v3936_v18, %s4142_s25  ;;  %v3842_v18 = vld [vmem:[%s5260_s4 + $0x70] sm:$0xff] }
0x1b75   :  { %v1529_v57 = vpop.xlane.xlu2 %1528 }
0x1b76   :  { %v1530_v44 = vmul.f32 %v1529_v57, %v4207_v14 }
0x1b78   :  { %v1531_v45 = vadd.f32 1e-05, %v1530_v44 }
0x1b7a   :  { %4025 = vrsqrt.f32 %v1531_v45  ;;  %vm1538_vm3 = vweird.f32 %v1531_v45 }
0x1b80   :  { %v4026_v46 = vpop.eup %4025 }
0x1b81   :  { %v1533_v33 = vmul.f32 %v4026_v46, %v1531_v45  ;;  %vm1539_vm2 = vweird.f32 %v4026_v46 }
0x1b82   :  { %vm1540_vm4 = vmor %vm1538_vm3, %vm1539_vm2  ;;  %vm2122_vm2 = vcmask 27648  }
0x1b83   :  { %v1534_v47 = vmul.f32 %v4026_v46, %v1533_v33 }
0x1b85   :  { %v1535_v37 = vmul.f32 0.5, %v1534_v47 }
0x1b87   :  { %v1536_v48 = vsub.f32 1.5, %v1535_v37 }
0x1b89   :  { %v1537_v32 = vmul.f32 %v4026_v46, %v1536_v48 }
0x1b8b   :  { %v1541_v49 = vsel %vm1540_vm4, %v4026_v46, %v1537_v32  ;;  %v1701_v46 = vpop.permute.xlu2 %1700 }
0x1b8c   :  { %v1542_v41 = vmul.f32 %v1541_v49, %v1521_v54 }
0x1b8e   :  { %v1543_v42 = vmul.f32 %v1542_v41, %v4446_v3 }
0x1b90   :  { %v1544_v30 = vadd.f32 %v1543_v42, %v4448_v5  ;;  %v3827_v5 = vld [vmem:[%s5260_s4 + $0x58] sm:$0xff] }
0x1b91   :  { %1612 = vmatpush.bf16.msrb.mxu2 %v3827_v5 }
0x1b92   :  { %v1545_v51 = vpack.c.bf16 %v1544_v30, %v1544_v30 }
0x1b93   :  { %v1707_v49 = vpop.permute.xlu2 %1706 }
0x1b94   :  { %1547 = vrot.lane.b32.xlu0 %v1545_v51, %s4141_s16 }
0x1b95   :  { %1613 = vmatpush.bf16.msrb.mxu2 %v3826_v34 }
0x1c06   :  { %v1548_v53 = vpop.permute.xlu0 %1547 }
0x1c07   :  { %3595 = vmatmul.msk.bf16.vlgmr.msrb.gmra.mxu0 %vm103_vm0, %v1548_v53  ;;  %v1951_v53 = vld.sshfl [vmem:[#allocation1] sm:$0xff pattern:$0x75316420] }
0x1c84   :  { %v1561_v55 = vpop.f32.mrf.mxu0 }
0x1c85   :  { %v1562_v50 = vadd.f32 %v4108_v2, %v1561_v55  ;;  %v1953_v55 = vsel %vm103_vm0, %v1951_v53, 0.0 }
0x1c87   :  { %v1565_v56 = vmax.f32 %v1562_v50, 0.0 }
0x1c89   :  { %v1566_v59 = vpack.c.bf16 %v1565_v56, %v1565_v56 }
0x1c8b   :  { %1575 = vmatmul.bf16.vlgmr.msra.gmra.mxu1 %v1566_v59 }
0x1c8c   :  { %v1563_v23 = vpop.f32.mrf.mxu0 }
0x1c8d   :  { %v3937_v23 = vld [vmem:[%s5262_s6 + $0x18] ss:$0 sm:$0xff] }
0x1d08   :  { %v1576_v0 = vpop.f32.mrf.mxu1 }
0x1d09   :  { %1581 = vrot.lane.b32.xlu1 %v1576_v0, %s4142_s25 }
0x1d10   :  { %v1578_v3 = vpop.f32.mrf.mxu1 }
0x1d7b   :  { %v1582_v43 = vpop.permute.xlu1 %1581 }
0x1d7c   :  { %v1584_v58 = vadd.f32 %v1582_v43, %v1512_v28 }
0x1d7e   :  { %v1585_v60 = vadd.f32 %v1584_v58, %v4519_v52  ;;  %v3837_v52 = vld [vmem:[%s5261_s5 + $0x48] sm:$0xff] }
0x1d7f   :  { %1656 = vmatpush.bf16.msra.mxu3 %v3837_v52 }
0x1d80   :  { %v1586_v61 = vpack.c.bf16 %v1585_v60, %v1585_v60 }
0x1d82   :  { %1589 = vrot.lane.b32.xlu1 %v1586_v61, %s4141_s16 }
0x1d83   :  { %1657 = vmatpush.bf16.msra.mxu3 %v3836_v63 }
0x1df4   :  { %v1590_v1 = vpop.permute.xlu1 %1589 }
0x1df5   :  { %3604 = vmatmul.msk.bf16.vlgmr.msrb.gmra.mxu2 %vm103_vm0, %v1590_v1 }
0x1e78   :  { %v1615_v4 = vpop.f32.mrf.mxu2 }
0x1e79   :  { %v1616_v26 = vadd.f32 %v3933_v21, %v1615_v4 }
0x1e7b   :  { %v1619_v6 = vmax.f32 %v1616_v26, 0.0 }
0x1e7d   :  { %v1620_v19 = vpack.c.bf16 %v1619_v6, %v1619_v6 }
0x1e7f   :  { %3621 = vmatmul.msk.bf16.vlgmr.msra.gmra.mxu3 %vm1646_vm13, %v1620_v19 }
0x1e80   :  { %v1617_v39 = vpop.f32.mrf.mxu2 }
0x1f02   :  { %v1659_v36 = vpop.f32.mrf.mxu3 }
0x1f03   :  { %v1660_v17 = vadd.f32 %v3934_v7, %v1659_v36 }
0x1f05   :  { %1664 = vrot.lane.b32.xlu1 %v1660_v17, %s4142_s25 }
0x1f0a   :  { %v1661_v22 = vpop.f32.mrf.mxu3 }
0x1f77   :  { %v1665_v40 = vpop.permute.xlu1 %1664 }
0x1f78   :  { %v1667_v9 = vadd.f32 %v1665_v40, %v1585_v60  ;;  %v3938_v60 = vld [vmem:[%s5262_s6 + $0x19] ss:$0 sm:$0xff] }
0x1f7a   :  { %1669 = vrot.lane.b32.xlu0 %v1667_v9, %s4141_s16 }
0x1fec   :  { %v1670_v10 = vpop.permute.xlu0 %1669 }
0x1fed   :  { %v1672_v11 = vsel %vm103_vm0, %v1670_v10, 0.0 }
0x1fee   :  { %1673 = vadd.xlane.f32.xlu1 %v1672_v11 }
0x2061   :  { %v1674_v12 = vpop.xlane.xlu1 %1673 }
0x2062   :  { %v1675_v13 = vmul.f32 %v1674_v12, %v4207_v14 }
0x2064   :  { %v1676_v28 = vsub.f32 %v1667_v9, %v1675_v13 }
0x2066   :  { %v1677_v15 = vmul.f32 %v1676_v28, %v1676_v28 }
0x2068   :  { %1679 = vrot.lane.b32.xlu0 %v1677_v15, %s4141_s16  ;;  %v3843_v15 = vld [vmem:[%s5260_s4 + $0x78] sm:$0xff] }
0x2069   :  { %1852 = vmatpush.bf16.msra.mxu0 %v3843_v15 }
0x206d   :  { %1853 = vmatpush.bf16.msra.mxu0 %v3842_v18 }
0x20da   :  { %v1680_v20 = vpop.permute.xlu0 %1679 }
0x20db   :  { %v1682_v54 = vsel %vm103_vm0, %v1680_v20, 0.0 }
0x20dc   :  { %1683 = vadd.xlane.f32.xlu0 %v1682_v54 }
0x214f   :  { %v1684_v8 = vpop.xlane.xlu0 %1683 }
0x2150   :  { %v1685_v38 = vmul.f32 %v1684_v8, %v4207_v14 }
0x2152   :  { %v1686_v29 = vadd.f32 1e-05, %v1685_v38 }
0x2154   :  { %4027 = vrsqrt.f32 %v1686_v29  ;;  %vm1693_vm6 = vweird.f32 %v1686_v29 }
0x215a   :  { %v4028_v57 = vpop.eup %4027 }
0x215b   :  { %v1688_v44 = vmul.f32 %v4028_v57, %v1686_v29  ;;  %vm1694_vm5 = vweird.f32 %v4028_v57  ;;  %v4783_v29 = vld [vmem:[%s5260_s4 + $0x68] sm:$0xff] }
0x215c   :  { %vm1695_vm7 = vmor %vm1693_vm6, %vm1694_vm5  ;;  %2049 = vmatpush.bf16.msra.mxu2 %v4783_v29 }
0x215d   :  { %v1689_v45 = vmul.f32 %v4028_v57, %v1688_v44  ;;  %v4789_v44 = vld [vmem:[%s5260_s4 + $0x60] sm:$0xff] }
0x215f   :  { %v1690_v33 = vmul.f32 0.5, %v1689_v45 }
0x2160   :  { %2050 = vmatpush.bf16.msra.mxu2 %v4789_v44 }
0x2161   :  { %v1691_v47 = vsub.f32 1.5, %v1690_v33 }
0x2163   :  { %v1692_v37 = vmul.f32 %v4028_v57, %v1691_v47  ;;  %v4800_v47 = vld [vmem:[%s5262_s6 + $0x1b] ss:$0 sm:$0xff] }
0x2165   :  { %v1696_v48 = vsel %vm1695_vm7, %v4028_v57, %v1692_v37  ;;  %vm2206_vm7 = vcmask 31744  }
0x2166   :  { %v1697_v32 = vmul.f32 %v1696_v48, %v1676_v28 }
0x2168   :  { %v1703_v41 = vmul.f32 %v1701_v46, %v1697_v32  ;;  %v4794_v46 = vld [vmem:[%s5262_s6 + $0x1a] ss:$0 sm:$0xff] }
0x2169   :  { %v2009_v48 = vrot.slane %v4794_v46, 4 }
0x216a   :  { %v4739_v42 = vadd.f32 %v1707_v49, %v1703_v41  ;;  %v2015_v41 = vrot.slane %v4800_v47, 4 }
0x216c   :  { %1785 = vrot.lane.b32.xlu1 %v4739_v42, %s4141_s16 }
0x2196   :  { %1954 = vadd.xlane.f32.xlu1 %v1953_v55 }
0x21de   :  { %v1786_v30 = vpop.permute.xlu1 %1785 }
0x21df   :  { %v1788_v51 = vsel %vm103_vm0, %v1786_v30, 0.0 }
0x21e0   :  { %1789 = vadd.xlane.f32.xlu2 %v1788_v51 }
0x21f8   :  { %1816 = vrot.lane.b32.xlu2 %v3937_v23, %s4142_s25 }
0x2200   :  { %1822 = vrot.lane.b32.xlu2 %v3938_v60, %s4142_s25 }
0x2209   :  { %v1955_v0 = vpop.xlane.xlu1 %1954 }
0x220a   :  { %v1956_v3 = vmul.f32 %v1955_v0, %v4207_v14 }
0x220c   :  { %v1961_v5 = vperm.slane %v1956_v3, %v4215_v24  ;;  %v1965_v34 = vperm.slane %v1956_v3, %v4217_v25 }
0x220e   :  { %v4756_v43 = vsub.f32 %v4666_v16, %v1961_v5  ;;  %v4759_v58 = vsub.f32 %v4671_v27, %v1965_v34 }
0x2210   :  { %v1970_v61 = vmul.f32 %v4756_v43, %v4756_v43  ;;  %v1971_v35 = vmul.f32 %v4759_v58, %v4759_v58 }
0x2212   :  { %1974 = vst [vmem:[#allocation1] ss:$2 sm:$0xff] %v1970_v61 }
0x2213   :  { %1976 = vst [vmem:[#allocation1 + $0x1] ss:$2 sm:$0xff] %v1971_v35 }
0x221a   :  { %v1977_v52 = vld.sshfl [vmem:[#allocation1] sm:$0xff pattern:$0x75316420] }
0x221b   :  { %v1979_v63 = vsel %vm103_vm0, %v1977_v52, 0.0 }
0x221c   :  { %1980 = vadd.xlane.f32.xlu1 %v1979_v63 }
0x2253   :  { %v1790_v2 = vpop.xlane.xlu2 %1789 }
0x2254   :  { %v1791_v50 = vmul.f32 %v1790_v2, %v4207_v14 }
0x2256   :  { %v1792_v56 = vsub.f32 %v4739_v42, %v1791_v50 }
0x2258   :  { %v1793_v59 = vmul.f32 %v1792_v56, %v1792_v56 }
0x225a   :  { %1795 = vrot.lane.b32.xlu0 %v1793_v59, %s4141_s16 }
0x225b   :  { %v1817_v7 = vpop.permute.xlu2 %1816 }
0x2263   :  { %v1823_v10 = vpop.permute.xlu2 %1822 }
0x228f   :  { %v1981_v28 = vpop.xlane.xlu1 %1980 }
0x2290   :  { %v1982_v31 = vmul.f32 %v1981_v28, %v4207_v14 }
0x2292   :  { %v1983_v20 = vadd.f32 1e-05, %v1982_v31 }
0x2294   :  { %vm1990_vm14 = vweird.f32 %v1983_v20 }
0x22cc   :  { %v1796_v62 = vpop.permute.xlu0 %1795 }
0x22cd   :  { %v1798_v1 = vsel %vm103_vm0, %v1796_v62, 0.0 }
0x22ce   :  { %1799 = vadd.xlane.f32.xlu0 %v1798_v1 }
0x2341   :  { %v1800_v21 = vpop.xlane.xlu0 %1799 }
0x2342   :  { %v1801_v4 = vmul.f32 %v1800_v21, %v4207_v14 }
0x2344   :  { %v1802_v26 = vadd.f32 1e-05, %v1801_v4 }
0x2346   :  { %4029 = vrsqrt.f32 %v1802_v26  ;;  %vm1809_vm10 = vweird.f32 %v1802_v26 }
0x2347   :  { %4031 = vrsqrt.f32 %v1983_v20 }
0x234c   :  { %v4030_v6 = vpop.eup %4029 }
0x234d   :  { %v1804_v19 = vmul.f32 %v4030_v6, %v1802_v26  ;;  %vm1810_vm9 = vweird.f32 %v4030_v6  ;;  %v4032_v54 = vpop.eup %4031 }
0x234e   :  { %vm1811_vm8 = vmor %vm1809_vm10, %vm1810_vm9  ;;  %v1985_v8 = vmul.f32 %v4032_v54, %v1983_v20  ;;  %vm1991_vm15 = vweird.f32 %v4032_v54 }
0x234f   :  { %v1805_v39 = vmul.f32 %v4030_v6, %v1804_v19  ;;  %vm1992_vm1 = vmor %vm1990_vm14, %vm1991_vm15 }
0x2350   :  { %v1986_v38 = vmul.f32 %v4032_v54, %v1985_v8 }
0x2351   :  { %v1806_v36 = vmul.f32 0.5, %v1805_v39  ;;  %v4830_v39 = vld [vmem:[%s5262_s6 + $0x1e] ss:$0 sm:$0xff] }
0x2352   :  { %v1987_v57 = vmul.f32 0.5, %v1986_v38 }
0x2353   :  { %v1807_v17 = vsub.f32 1.5, %v1806_v36 }
0x2354   :  { %v1988_v45 = vsub.f32 1.5, %v1987_v57 }
0x2355   :  { %v1808_v22 = vmul.f32 %v4030_v6, %v1807_v17 }
0x2356   :  { %v1989_v33 = vmul.f32 %v4032_v54, %v1988_v45 }
0x2357   :  { %v1812_v40 = vsel %vm1811_vm8, %v4030_v6, %v1808_v22 }
0x2358   :  { %v1813_v9 = vmul.f32 %v1812_v40, %v1792_v56  ;;  %v1993_v37 = vsel %vm1992_vm1, %v4032_v54, %v1989_v33 }
0x2359   :  { %v1998_v32 = vperm.slane %v1993_v37, %v4215_v24  ;;  %v2002_v49 = vperm.slane %v1993_v37, %v4217_v25  ;;  %v3941_v25 = vld [vmem:[%s5262_s6 + $0x1f] ss:$0 sm:$0xff] }
0x235a   :  { %v1819_v11 = vmul.f32 %v1817_v7, %v1813_v9 }
0x235b   :  { %v2005_v30 = vmul.f32 %v1998_v32, %v4756_v43  ;;  %v2006_v51 = vmul.f32 %v2002_v49, %v4759_v58 }
0x235c   :  { %v1825_v12 = vadd.f32 %v1823_v10, %v1819_v11 }
0x235d   :  { %v2011_v53 = vmul.f32 %v4794_v46, %v2005_v30  ;;  %v2012_v55 = vmul.f32 %v2009_v48, %v2006_v51 }
0x235e   :  { %v1826_v13 = vpack.c.bf16 %v1825_v12, %v1825_v12 }
0x235f   :  { %v2017_v2 = vadd.f32 %v4800_v47, %v2011_v53  ;;  %v2018_v50 = vadd.f32 %v2015_v41, %v2012_v55 }
0x2360   :  { %1829 = vrot.lane.b32.xlu0 %v1826_v13, %s4141_s16 }
0x2361   :  { %2021 = vst [vmem:[#allocation1] ss:$2 sm:$0xff] %v2017_v2  ;;  %v4842_v2 = vld [vmem:[%s5260_s4 + $0x98] sm:$0xff] }
0x2362   :  { %2023 = vst [vmem:[#allocation1 + $0x1] ss:$2 sm:$0xff] %v2018_v50 }
0x2369   :  { %v2024_v56 = vld.sshfl [vmem:[#allocation1] sm:$0xff pattern:$0x75316420] }
0x236a   :  { %v2026_v59 = vpack.c.bf16 %v2024_v56, %v2024_v56 }
0x236c   :  { %3707 = vmatmul.msk.bf16.vlgmr.msra.gmra.mxu2 %vm103_vm0, %v2026_v59 }
0x23d2   :  { %v1830_v24 = vpop.permute.xlu0 %1829 }
0x23d3   :  { %3696 = vmatmul.msk.bf16.vlgmr.msra.gmra.mxu0 %vm103_vm0, %v1830_v24 }
0x23ef   :  { %v2052_v3 = vpop.f32.mrf.mxu2 }
0x23f0   :  { %v2053_v17 = vadd.f32 %v4830_v39, %v2052_v3 }
0x23f2   :  { %v2056_v31 = vpack.c.bf16 %v2053_v17, %v2053_v17 }
0x23f4   :  { %v2058_v32 = vrot.slane %v2056_v31, 2 }
0x23f6   :  { %v2062_v50 = vsel %vm385_vm11, %v2056_v31, %v2058_v32 }
0x23f7   :  { %v2054_v35 = vpop.f32.mrf.mxu2  ;;  %v2064_v24 = vrot.slane %v2062_v50, 2 }
0x2450   :  { %v1855_v23 = vpop.f32.mrf.mxu0 }
0x2451   :  { %v1856_v0 = vadd.f32 %v3941_v25, %v1855_v23  ;;  %v4855_v25 = vld [vmem:[%s5260_s4 + $0x90] sm:$0xff]  ;;  %v2061_v23 = vsel %vm381_vm12, %v2056_v31, %v2058_v32 }
0x2453   :  { %v1862_v5 = vpack.c.bf16 %v1856_v0, %v1856_v0  ;;  %v1860_v34 = vrot.slane %v1856_v0, 4 }
0x2455   :  { %v1864_v43 = vrot.slane %v1862_v5, 2  ;;  %v3895_v58 = vpack.i.bf16 %v1860_v34, %v1856_v0 }
0x2457   :  { %v4816_v60 = vsel %vm381_vm12, %v1862_v5, %v1864_v43  ;;  %3896 = vxpose.xlu2.b32.start.end [1/1] (short) (narrow) %v3895_v58, 32  ;;  %v1868_v62 = vsel %vm385_vm11, %v1862_v5, %v1864_v43 }
0x2458   :  { %2201 = vst [vmem:[#allocation1] ss:$4 sm:$0xff] %v4816_v60  ;;  %v1857_v61 = vpop.f32.mrf.mxu0  ;;  %v4820_v1 = vrot.slane %v1868_v62, 2 }
0x245f   :  { %v4822_v52 = vld.sshfl [vmem:[#allocation1] sm:$0xff pattern:$0x73625140] }
0x2460   :  { %2227 = vst [vmem:[#allocation1] ss:$4 sm:$0xff] %v4820_v1 }
0x2467   :  { %v2228_v63 = vld.sshfl [vmem:[#allocation1] sm:$0xff pattern:$0x73625140] }
0x2468   :  { %2230 = vrot.lane.b32.xlu0 %v2228_v63, %s4141_s16 }
0x24da   :  { %v2231_v21 = vpop.permute.xlu0 %2230 }
0x24db   :  { %v2236_v4 = vsel %vm381_vm12, %v2231_v21, 0 }
0x24dc   :  { %2245 = vmatpush.bf16.msrb.mxu2 %v2236_v4 }
0x24f0   :  { %v3897_v26 = vpop.trf.xlu2 }
0x24f1   :  { %v3901_v9 = vunpack.i.h.bf16 %v3897_v26  ;;  %v3898_v10 = vunpack.i.l.bf16 %v3897_v26 }
0x24f3   :  { %v1939_v38 = vpack.c.bf16 %v3901_v9, %v3901_v9  ;;  %v1935_v57 = vpack.c.bf16 %v3898_v10, %v3898_v10 }
0x24f5   :  { %v2069_v53 = vunpack.c.l.b16 %v1935_v57  ;;  %v2096_v55 = vunpack.c.l.b16 %v1939_v38 }
0x24f8   :  { %v3902_v6 = vpop.trf.xlu2 }
0x24f9   :  { %v3906_v22 = vunpack.i.h.bf16 %v3902_v6  ;;  %v3903_v40 = vunpack.i.l.bf16 %v3902_v6 }
0x24fb   :  { %v1940_v18 = vpack.c.bf16 %v3906_v22, %v3906_v22  ;;  %v1936_v20 = vpack.c.bf16 %v3903_v40, %v3903_v40 }
0x24fd   :  { %v2070_v30 = vunpack.c.l.b16 %v1936_v20  ;;  %v2097_v51 = vunpack.c.l.b16 %v1940_v18 }
0x24ff   :  { %v4845_v56 = vpack.c.b16 %v2070_v30, %v2069_v53  ;;  %v4847_v59 = vpack.c.b16 %v2097_v51, %v2096_v55 }
0x2500   :  { %v3907_v19 = vpop.trf.xlu2 }
0x2501   :  { %v3911_v7 = vunpack.i.h.bf16 %v3907_v19  ;;  %v3908_v36 = vunpack.i.l.bf16 %v3907_v19 }
0x2503   :  { %v1941_v11 = vpack.c.bf16 %v3911_v7, %v3911_v7  ;;  %v1937_v12 = vpack.c.bf16 %v3908_v36, %v3908_v36 }
0x2505   :  { %v2098_v45 = vunpack.c.l.b16 %v1941_v11  ;;  %v2071_v33 = vunpack.c.l.b16 %v1937_v12 }
0x2508   :  { %v3912_v13 = vpop.trf.xlu2 }
0x2509   :  { %v3916_v28 = vunpack.i.h.bf16 %v3912_v13  ;;  %v3913_v15 = vunpack.i.l.bf16 %v3912_v13 }
0x250b   :  { %v1942_v54 = vpack.c.bf16 %v3916_v28, %v3916_v28  ;;  %v1938_v8 = vpack.c.bf16 %v3913_v15, %v3913_v15 }
0x250d   :  { %v2099_v37 = vunpack.c.l.b16 %v1942_v54  ;;  %v2072_v48 = vunpack.c.l.b16 %v1938_v8 }
0x250f   :  { %v4833_v49 = vpack.c.b16 %v2072_v48, %v2071_v33  ;;  %v4835_v41 = vpack.c.b16 %v2099_v37, %v2098_v45 }
0x2511   :  { %2085 = vmatpush.bf16.msrb.mxu3 %v4833_v49  ;;  %2113 = vmatpush.bf16.msrb.mxu0 %v4835_v41 }
0x2515   :  { %2086 = vmatpush.bf16.msrb.mxu3 %v4845_v56  ;;  %2114 = vmatpush.bf16.msrb.mxu0 %v4847_v59 }
0x2518   :  { %3708 = vmatmul.msk.bf16.vlgmr.msrb.gmra.mxu3 %vm103_vm0, %v2061_v23  ;;  %3709 = vmatmul.msk.bf16.vlgmr.msrb.gmra.mxu0 %vm103_vm0, %v2064_v24 }
0x2519   :  { %2316 = vmatpush.bf16.msra.mxu0 %v4842_v2 }
0x251d   :  { %2317 = vmatpush.bf16.msra.mxu0 %v4855_v25 }
0x2521   :  { %2593 = vmatpush.bf16.msrb.mxu0 %v4833_v49 }
0x2525   :  { %2594 = vmatpush.bf16.msrb.mxu0 %v4845_v56 }
0x2595   :  { %v2116_v0 = vpop.f32.mrf.mxu0 }
0x2596   :  { %v2121_v3 = vmul.f32 0.17677669, %v2116_v0 }
0x2598   :  { %v2130_v5 = vsel %vm2122_vm2, %v2121_v3, -inf }
0x2599   :  { %v2131_v34 = vrot.slane %v2130_v5, 4 }
0x259b   :  { %v2132_v43 = vmax.f32 %v2130_v5, %v2131_v34  ;;  %v2088_v58 = vpop.f32.mrf.mxu3 }
0x259c   :  { %v2120_v61 = vmul.f32 0.17677669, %v2088_v58 }
0x259d   :  { %v2133_v35 = vrot.slane %v2132_v43, 2  ;;  %v2118_v62 = vpop.f32.mrf.mxu0 }
0x259e   :  { %v2123_v63 = vsel %vm2122_vm2, %v2120_v61, -inf }
0x259f   :  { %v2134_v21 = vmax.f32 %v2132_v43, %v2133_v35  ;;  %v2124_v4 = vrot.slane %v2123_v63, 4 }
0x25a1   :  { %v2135_v26 = vrot.slane %v2134_v21, 1  ;;  %v2125_v6 = vmax.f32 %v2123_v63, %v2124_v4 }
0x25a3   :  { %v2136_v19 = vmax.f32 %v2134_v21, %v2135_v26  ;;  %v2126_v7 = vrot.slane %v2125_v6, 2  ;;  %v2090_v36 = vpop.f32.mrf.mxu3 }
0x25a5   :  { %v2138_v17 = vsub.f32 %v2121_v3, %v2136_v19  ;;  %v2127_v22 = vmax.f32 %v2125_v6, %v2126_v7 }
0x25a7   :  { %v2141_v40 = vmul.f32 1.442695, %v2138_v17  ;;  %v2128_v9 = vrot.slane %v2127_v22, 1 }
0x25a9   :  { %4033 = vpow2.f32 %v2141_v40  ;;  %v2129_v10 = vmax.f32 %v2127_v22, %v2128_v9 }
0x25ab   :  { %v2137_v11 = vsub.f32 %v2120_v61, %v2129_v10 }
0x25ad   :  { %v2139_v12 = vmul.f32 1.442695, %v2137_v11 }
0x25af   :  { %v4034_v13 = vpop.eup %4033  ;;  %4035 = vpow2.f32 %v2139_v12 }
0x25b0   :  { %v2150_v28 = vsel %vm2122_vm2, %v4034_v13, 0.0 }
0x25b1   :  { %v2151_v15 = vrot.slane %v2150_v28, 4 }
0x25b3   :  { %v2152_v31 = vadd.f32 %v2151_v15, %v2150_v28  ;;  %v4875_v15 = vld [vmem:[%s5260_s4 + $0xa8] sm:$0xff] }
0x25b5   :  { %v4036_v18 = vpop.eup %4035  ;;  %v2153_v20 = vrot.slane %v2152_v31, 2 }
0x25b6   :  { %v2143_v54 = vsel %vm2122_vm2, %v4036_v18, 0.0 }
0x25b7   :  { %v2144_v8 = vrot.slane %v2143_v54, 4  ;;  %v2154_v38 = vadd.f32 %v2153_v20, %v2152_v31 }
0x25b9   :  { %v2145_v57 = vadd.f32 %v2144_v8, %v2143_v54  ;;  %v2155_v45 = vrot.slane %v2154_v38, 1  ;;  %v4882_v54 = vld [vmem:[%s5260_s4 + $0xa0] sm:$0xff]  ;;  %v4891_v8 = vld [vmem:[%s5260_s4 + $0x88] sm:$0xff] }
0x25ba   :  { %2281 = vmatpush.bf16.msra.mxu3 %v4891_v8 }
0x25bb   :  { %v2146_v33 = vrot.slane %v2145_v57, 2  ;;  %v2156_v37 = vadd.f32 %v2155_v45, %v2154_v38  ;;  %v4897_v38 = vld [vmem:[%s5260_s4 + $0x80] sm:$0xff] }
0x25bd   :  { %4037 = vrcp.f32 %v2156_v37  ;;  %v2147_v48 = vadd.f32 %v2146_v33, %v2145_v57 }
0x25be   :  { %2282 = vmatpush.bf16.msra.mxu3 %v4897_v38 }
0x25bf   :  { %v2148_v32 = vrot.slane %v2147_v48, 1 }
0x25c1   :  { %v2149_v30 = vadd.f32 %v2148_v32, %v2147_v48 }
0x25c2   :  { %2569 = vmatpush.bf16.msrb.mxu3 %v4783_v29 }
0x25c3   :  { %v4038_v51 = vpop.eup %4037  ;;  %4039 = vrcp.f32 %v2149_v30 }
0x25c4   :  { %v2160_v53 = vmul.f32 %v4038_v51, %v4034_v13 }
0x25c6   :  { %v2162_v55 = vadd.f32 1e-08, %v2160_v53  ;;  %2570 = vmatpush.bf16.msrb.mxu3 %v4789_v44 }
0x25c8   :  { %v2166_v50 = vsel %vm2122_vm2, %v2162_v55, 0.0 }
0x25c9   :  { %v4040_v24 = vpop.eup %4039  ;;  %2167 = vadd.xlane.f32.xlu1 %v2166_v50 }
0x25ca   :  { %v2159_v23 = vmul.f32 %v4040_v24, %v4036_v18  ;;  %v4915_v24 = vld [vmem:[%s5262_s6 + $0x21] ss:$0 sm:$0xff] }
0x25cc   :  { %v2161_v0 = vadd.f32 1e-08, %v2159_v23 }
0x25ce   :  { %v2163_v3 = vsel %vm2122_vm2, %v2161_v0, 0.0 }
0x25d1   :  { %2164 = vadd.xlane.f32.xlu1 %v2163_v3  ;;  %v4922_v3 = vld [vmem:[%s5262_s6 + $0x20] ss:$0 sm:$0xff] }
0x25ea   :  { %2204 = vrot.lane.b32.xlu1 %v4822_v52, %s4141_s16 }
0x263c   :  { %v2168_v5 = vpop.xlane.xlu1 %2167 }
0x263d   :  { %4041 = vrcp.f32 %v2168_v5  ;;  %v2195_v35 = vand.u32 2147483648, %v2168_v5  ;;  %v2193_v63 = vand.u32 2147483647, %v2168_v5  ;;  %vm2189_vm4 = vweird.f32 %v2168_v5 }
0x263f   :  { %v2196_v26 = vor.u32 1.1754944e-38, %v2195_v35  ;;  %vm2194_vm6 = vcmp.eq.f32.partialorder %v2193_v63, 8.507059e+37 }
0x2643   :  { %v4042_v34 = vpop.eup %4041 }
0x2644   :  { %v2185_v43 = vmul.f32 %v4042_v34, %v2168_v5  ;;  %v2165_v58 = vpop.xlane.xlu1 %2164  ;;  %vm2190_vm3 = vweird.f32 %v4042_v34 }
0x2645   :  { %4043 = vrcp.f32 %v2165_v58  ;;  %vm2191_vm5 = vmor %vm2189_vm4, %vm2190_vm3  ;;  %v2180_v9 = vand.u32 2147483648, %v2165_v58  ;;  %vm2174_vm10 = vweird.f32 %v2165_v58  ;;  %v2178_v10 = vand.u32 2147483647, %v2165_v58 }
0x2646   :  { %v2186_v61 = vsub.f32 1.0, %v2185_v43 }
0x2647   :  { %v2181_v12 = vor.u32 1.1754944e-38, %v2180_v9  ;;  %vm2179_vm14 = vcmp.eq.f32.partialorder %v2178_v10, 8.507059e+37 }
0x2648   :  { %v2187_v62 = vmul.f32 %v4042_v34, %v2186_v61 }
0x264a   :  { %v2188_v21 = vadd.f32 %v4042_v34, %v2187_v62 }
0x264b   :  { %v4044_v4 = vpop.eup %4043 }
0x264c   :  { %v2192_v6 = vsel %vm2191_vm5, %v4042_v34, %v2188_v21  ;;  %v2170_v19 = vmul.f32 %v4044_v4, %v2165_v58  ;;  %vm2175_vm9 = vweird.f32 %v4044_v4 }
0x264d   :  { %v2197_v52 = vsel %vm2194_vm6, %v2196_v26, %v2192_v6  ;;  %vm2176_vm8 = vmor %vm2174_vm10, %vm2175_vm9 }
0x264e   :  { %v2198_v7 = vmul.f32 %v2197_v52, %v2162_v55  ;;  %v2171_v36 = vsub.f32 1.0, %v2170_v19 }
0x2650   :  { %v2172_v17 = vmul.f32 %v4044_v4, %v2171_v36  ;;  %v2200_v22 = vpack.c.bf16 %v2198_v7, %v2198_v7 }
0x2652   :  { %v2173_v40 = vadd.f32 %v4044_v4, %v2172_v17  ;;  %3711 = vmatmul.msk.bf16.vlgmr.msrb.gmra.mxu2 %vm2206_vm7, %v2200_v22 }
0x2654   :  { %v2177_v11 = vsel %vm2176_vm8, %v4044_v4, %v2173_v40 }
0x2655   :  { %v2182_v13 = vsel %vm2179_vm14, %v2181_v12, %v2177_v11 }
0x2656   :  { %v2183_v28 = vmul.f32 %v2182_v13, %v2161_v0 }
0x2658   :  { %v2199_v20 = vpack.c.bf16 %v2183_v28, %v2183_v28 }
0x265c   :  { %v2205_v31 = vpop.permute.xlu1 %2204 }
0x265d   :  { %v2211_v18 = vsel %vm381_vm12, %v2205_v31, 0 }
0x265e   :  { %2220 = vmatpush.bf16.msrb.mxu1 %v2211_v18 }
0x2661   :  { %3710 = vmatmul.msk.bf16.vlgmr.msrb.gmra.mxu1 %vm2206_vm7, %v2199_v20 }
0x2662   :  { %2437 = vmatpush.bf16.msra.mxu1 %v4875_v15 }
0x2666   :  { %2438 = vmatpush.bf16.msra.mxu1 %v4882_v54 }
0x266a   :  { %2609 = vmatpush.bf16.msrb.mxu1 %v4835_v41 }
0x266e   :  { %2610 = vmatpush.bf16.msrb.mxu1 %v4847_v59 }
0x26d5   :  { %v2247_v57 = vpop.f32.mrf.mxu2 }
0x26d6   :  { %2255 = vst [vmem:[#allocation1 + $0x1] ss:$2 sm:$0xff] %v2247_v57 }
0x26dd   :  { %v2249_v45 = vpop.f32.mrf.mxu2 }
0x26de   :  { %v2222_v33 = vpop.f32.mrf.mxu1 }
0x26df   :  { %2253 = vst [vmem:[#allocation1] ss:$2 sm:$0xff] %v2222_v33  ;;  %v3945_v33 = vld [vmem:[%s5262_s6 + $0x1c] ss:$0 sm:$0xff] }
0x26e6   :  { %v2224_v37 = vpop.f32.mrf.mxu1  ;;  %v2256_v48 = vld.sshfl [vmem:[#allocation1] sm:$0xff pattern:$0x75316420] }
0x26e7   :  { %v2258_v32 = vpack.c.bf16 %v2256_v48, %v2256_v48  ;;  %2288 = vst [vmem:[#allocation1] ss:$2 sm:$0xff] %v4666_v16 }
0x26e8   :  { %2290 = vst [vmem:[#allocation1 + $0x1] ss:$2 sm:$0xff] %v4671_v27 }
0x26e9   :  { %3720 = vmatmul.msk.bf16.vlgmr.msra.gmra.mxu3 %vm103_vm0, %v2258_v32  ;;  %v3946_v32 = vld [vmem:[%s5262_s6 + $0x1d] ss:$0 sm:$0xff] }
0x26ef   :  { %v2291_v30 = vld.sshfl [vmem:[#allocation1] sm:$0xff pattern:$0x75316420] }
0x26f0   :  { %v2293_v51 = vpack.c.bf16 %v2291_v30, %v2291_v30  ;;  %2360 = vst [vmem:[#allocation1] ss:$2 sm:$0xff] %v4666_v16 }
0x26f1   :  { %2362 = vst [vmem:[#allocation1 + $0x1] ss:$2 sm:$0xff] %v4671_v27 }
0x26f2   :  { %3729 = vmatmul.msk.bf16.vlgmr.msra.gmra.mxu0 %vm103_vm0, %v2293_v51 }
0x26f8   :  { %v2363_v53 = vld.sshfl [vmem:[#allocation1] sm:$0xff pattern:$0x75316420] }
0x26f9   :  { %2696 = vst [vmem:[#allocation1] ss:$4 sm:$0xff] %v4816_v60 }
0x2700   :  { %v4909_v55 = vld.sshfl [vmem:[#allocation1] sm:$0xff pattern:$0x73625140] }
0x2701   :  { %2720 = vst [vmem:[#allocation1] ss:$4 sm:$0xff] %v4820_v1 }
0x276c   :  { %v2284_v50 = vpop.f32.mrf.mxu3 }
0x276d   :  { %v2285_v5 = vadd.f32 %v4922_v3, %v2284_v50 }
0x276f   :  { %v2319_v23 = vpop.f32.mrf.mxu0 }
0x2770   :  { %v2320_v16 = vadd.f32 %v4915_v24, %v2319_v23 }
0x2772   :  { %2344 = vrot.lane.b32.xlu0 %v2320_v16, %s4143_s28  ;;  %v2323_v34 = vadd.f32 %v2320_v16, %v2285_v5 }
0x2774   :  { %v2286_v27 = vpop.f32.mrf.mxu3  ;;  %v3730_v43 = vmul.f32 -1.442695, %v2323_v34 }
0x2776   :  { %4045 = vpow2.f32 %v3730_v43 }
0x2777   :  { %v2321_v0 = vpop.f32.mrf.mxu0 }
0x277c   :  { %v4046_v58 = vpop.eup %4045 }
0x277d   :  { %v2327_v61 = vadd.f32 1.0, %v4046_v58 }
0x277f   :  { %4047 = vrcp.f32 %v2327_v61  ;;  %v2339_v26 = vand.u32 2147483648, %v2327_v61  ;;  %vm2333_vm1 = vweird.f32 %v2327_v61  ;;  %v2337_v6 = vand.u32 2147483647, %v2327_v61 }
0x2781   :  { %v2340_v52 = vor.u32 1.1754944e-38, %v2339_v26  ;;  %vm2338_vm4 = vcmp.eq.f32.partialorder %v2337_v6, 8.507059e+37  ;;  %v4972_v26 = vld [vmem:[%s5261_s5 + $0x88] sm:$0xff]  ;;  %v4978_v6 = vld [vmem:[%s5261_s5 + $0x80] sm:$0xff] }
0x2785   :  { %v4048_v35 = vpop.eup %4047 }
0x2786   :  { %v2329_v62 = vmul.f32 %v4048_v35, %v2327_v61  ;;  %vm2334_vm15 = vweird.f32 %v4048_v35 }
0x2787   :  { %vm2335_vm3 = vmor %vm2333_vm1, %vm2334_vm15 }
0x2788   :  { %v2330_v63 = vsub.f32 1.0, %v2329_v62 }
0x278a   :  { %v2331_v21 = vmul.f32 %v4048_v35, %v2330_v63 }
0x278c   :  { %v2332_v4 = vadd.f32 %v4048_v35, %v2331_v21  ;;  %v4960_v21 = vld [vmem:[%s5261_s5 + $0x98] sm:$0xff] }
0x278d   :  { %2494 = vmatpush.bf16.msra.mxu2 %v4960_v21 }
0x278e   :  { %v2336_v19 = vsel %vm2335_vm3, %v4048_v35, %v2332_v4  ;;  %v4966_v4 = vld [vmem:[%s5261_s5 + $0x90] sm:$0xff] }
0x278f   :  { %v2341_v36 = vsel %vm2338_vm4, %v2340_v52, %v2336_v19  ;;  %v4984_v19 = vld [vmem:[%s5261_s5 + $0x78] sm:$0xff]  ;;  %v4990_v52 = vld [vmem:[%s5261_s5 + $0x70] sm:$0xff] }
0x2790   :  { %v2354_v11 = vsub.f32 1.0, %v2341_v36 }
0x2791   :  { %2495 = vmatpush.bf16.msra.mxu2 %v4966_v4 }
0x2795   :  { %2496 = vmatpush.bf16.msra.mxu2 %v4972_v26 }
0x2799   :  { %2497 = vmatpush.bf16.msra.mxu2 %v4978_v6 }
0x279d   :  { %2498 = vmatpush.bf16.msra.mxu2 %v4984_v19 }
0x27a1   :  { %2499 = vmatpush.bf16.msra.mxu2 %v4990_v52 }
0x27e4   :  { %v2345_v7 = vpop.permute.xlu0 %2344 }
0x27e5   :  { %v2347_v17 = vmul.f32 %v2345_v7, %v2341_v36  ;;  %v4996_v7 = vld [vmem:[%s5261_s5 + $0x68] sm:$0xff] }
0x27e6   :  { %2500 = vmatpush.bf16.msra.mxu2 %v4996_v7 }
0x27e7   :  { %2349 = vrot.lane.b32.xlu0 %v2347_v17, %s4143_s28  ;;  %v5005_v17 = vld [vmem:[%s5261_s5 + $0x60] sm:$0xff] }
0x27ea   :  { %2501 = vmatpush.bf16.msra.mxu2 %v5005_v17 }
0x27ee   :  { %2781 = vmatpush.bf16.msrb.mxu2 %v4842_v2 }
0x27ef   :  { %2364 = vrot.lane.b32.xlu0 %v2363_v53, %s4142_s25 }
0x27f2   :  { %2782 = vmatpush.bf16.msrb.mxu2 %v4855_v25 }
0x2859   :  { %v2350_v22 = vpop.permute.xlu0 %2349 }
0x285a   :  { %v2352_v40 = vadd.f32 %v2350_v22, %v2285_v5  ;;  %v5013_v22 = vld [vmem:[%s5262_s6 + $0x22] ss:$0 sm:$0xff] }
0x285c   :  { %4049 = vtanh.f32 %v2352_v40 }
0x2861   :  { %v2365_v10 = vpop.permute.xlu0 %2364 }
0x2862   :  { %v4050_v9 = vpop.eup %4049  ;;  %v2367_v13 = vmul.f32 %v2365_v10, %v2341_v36 }
0x2863   :  { %2356 = vrot.lane.b32.xlu2 %v4050_v9, %s4141_s16 }
0x286b   :  { %2548 = vrot.lane.b32.xlu2 %v4794_v46, %s4142_s25 }
0x2873   :  { %2552 = vrot.lane.b32.xlu2 %v4800_v47, %s4142_s25 }
0x28bd   :  { %v2357_v12 = vpop.permute.xlu2 %2356 }
0x28be   :  { %v2359_v28 = vmul.f32 %v2357_v12, %v2354_v11 }
0x28c0   :  { %v4932_v31 = vadd.f32 %v2367_v13, %v2359_v28  ;;  %v3948_v13 = vld [vmem:[%s5262_s6 + $0x23] ss:$0 sm:$0xff] }
0x28c2   :  { %2370 = vrot.lane.b32.xlu1 %v4932_v31, %s4141_s16 }
0x2934   :  { %v2371_v18 = vpop.permute.xlu1 %2370 }
0x2935   :  { %v2373_v20 = vsel %vm103_vm0, %v2371_v18, 0.0 }
0x2936   :  { %2374 = vadd.xlane.f32.xlu0 %v2373_v20 }
0x294a   :  { %2401 = vrot.lane.b32.xlu0 %v3945_v33, %s4142_s25 }
0x29a9   :  { %v2375_v57 = vpop.xlane.xlu0 %2374 }
0x29aa   :  { %v2376_v46 = vmul.f32 %v2375_v57, %v4207_v14 }
0x29ac   :  { %v2377_v45 = vsub.f32 %v4932_v31, %v2376_v46 }
0x29ae   :  { %v2378_v47 = vmul.f32 %v2377_v45, %v2377_v45 }
0x29b0   :  { %2380 = vrot.lane.b32.xlu1 %v2378_v47, %s4141_s16 }
0x29bc   :  { %v4950_v43 = vpop.permute.xlu0 %2401 }
0x2a22   :  { %v2381_v37 = vpop.permute.xlu1 %2380 }
0x2a23   :  { %v2383_v48 = vsel %vm103_vm0, %v2381_v37, 0.0 }
0x2a24   :  { %2384 = vadd.xlane.f32.xlu1 %v2383_v48 }
0x2a3d   :  { %2407 = vrot.lane.b32.xlu1 %v3946_v32, %s4142_s25 }
0x2a45   :  { %2514 = vrot.lane.b32.xlu1 %v3948_v13, %s4142_s25 }
0x2a97   :  { %v2385_v30 = vpop.xlane.xlu1 %2384 }
0x2a98   :  { %v2386_v51 = vmul.f32 %v2385_v30, %v4207_v14 }
0x2a9a   :  { %v2387_v53 = vadd.f32 1e-05, %v2386_v51 }
0x2a9c   :  { %4051 = vrsqrt.f32 %v2387_v53  ;;  %vm2394_vm6 = vweird.f32 %v2387_v53 }
0x2aa2   :  { %v4052_v50 = vpop.eup %4051 }
0x2aa3   :  { %v2389_v23 = vmul.f32 %v4052_v50, %v2387_v53  ;;  %vm2395_vm5 = vweird.f32 %v4052_v50 }
0x2aa4   :  { %vm2396_vm9 = vmor %vm2394_vm6, %vm2395_vm5 }
0x2aa5   :  { %v2390_v16 = vmul.f32 %v4052_v50, %v2389_v23 }
0x2aa7   :  { %v2391_v27 = vmul.f32 0.5, %v2390_v16 }
0x2aa9   :  { %v2392_v0 = vsub.f32 1.5, %v2391_v27  ;;  %v5037_v27 = vpop.permute.xlu2 %2548 }
0x2aab   :  { %v2393_v5 = vmul.f32 %v4052_v50, %v2392_v0 }
0x2aad   :  { %v2397_v34 = vsel %vm2396_vm9, %v4052_v50, %v2393_v5 }
0x2aae   :  { %v2398_v58 = vmul.f32 %v2397_v34, %v2377_v45 }
0x2aaf   :  { %v4952_v61 = vpop.permute.xlu1 %2407 }
0x2ab0   :  { %v2404_v35 = vmul.f32 %v4950_v43, %v2398_v58 }
0x2ab2   :  { %v2410_v62 = vadd.f32 %v4952_v61, %v2404_v35 }
0x2ab4   :  { %v2411_v63 = vpack.c.bf16 %v2410_v62, %v2410_v62  ;;  %v5039_v62 = vpop.permute.xlu2 %2552 }
0x2ab6   :  { %2414 = vrot.lane.b32.xlu0 %v2411_v63, %s4141_s16 }
0x2ab7   :  { %v5023_v57 = vpop.permute.xlu1 %2514 }
0x2b28   :  { %v2415_v36 = vpop.permute.xlu0 %2414 }
0x2b29   :  { %3739 = vmatmul.msk.bf16.vlgmr.msra.gmra.mxu1 %vm103_vm0, %v2415_v36 }
0x2b2a   :  { %2761 = vmatpush.bf16.msra.mxu1 %v4891_v8 }
0x2b2e   :  { %2762 = vmatpush.bf16.msra.mxu1 %v4897_v38 }
0x2ba6   :  { %v2440_v40 = vpop.f32.mrf.mxu1 }
0x2ba7   :  { %v2441_v9 = vadd.f32 %v5013_v22, %v2440_v40 }
0x2ba9   :  { %v2444_v10 = vmax.f32 %v2441_v9, 0.0  ;;  %v2721_v9 = vld.sshfl [vmem:[#allocation1] sm:$0xff pattern:$0x73625140] }
0x2bab   :  { %v2445_v11 = vpack.c.bf16 %v2444_v10, %v2444_v10 }
0x2bad   :  { %2502 = vmatmul.bf16.vlgmr.msra.gmra.mxu2 %v2445_v11 }
0x2bae   :  { %2969 = vmatpush.bf16.msra.mxu2 %v4833_v49  ;;  %v2442_v12 = vpop.f32.mrf.mxu1 }
0x2bb2   :  { %2970 = vmatpush.bf16.msra.mxu2 %v4845_v56 }
0x2c30   :  { %v2503_v28 = vpop.f32.mrf.mxu2 }
0x2c31   :  { %2508 = vrot.lane.b32.xlu0 %v2503_v28, %s4142_s25 }
0x2c38   :  { %v2505_v18 = vpop.f32.mrf.mxu2 }
0x2ca3   :  { %v2509_v20 = vpop.permute.xlu0 %2508 }
0x2ca4   :  { %v2511_v46 = vadd.f32 %v2509_v20, %v4932_v31 }
0x2ca6   :  { %v5027_v49 = vadd.f32 %v5023_v57, %v2511_v46 }
0x2ca8   :  { %2519 = vrot.lane.b32.xlu0 %v5027_v49, %s4141_s16  ;;  %v2768_v10 = vpack.c.bf16 %v5027_v49, %v5027_v49 }
0x2d1a   :  { %v2520_v56 = vpop.permute.xlu0 %2519 }
0x2d1b   :  { %v2522_v45 = vsel %vm103_vm0, %v2520_v56, 0.0 }
0x2d1c   :  { %2523 = vadd.xlane.f32.xlu1 %v2522_v45 }
0x2d8f   :  { %v2524_v47 = vpop.xlane.xlu1 %2523 }
0x2d90   :  { %v2525_v33 = vmul.f32 %v2524_v47, %v4207_v14 }
0x2d92   :  { %v2526_v37 = vsub.f32 %v5027_v49, %v2525_v33 }
0x2d94   :  { %v2527_v48 = vmul.f32 %v2526_v37, %v2526_v37 }
0x2d96   :  { %2529 = vrot.lane.b32.xlu0 %v2527_v48, %s4141_s16 }
0x2e08   :  { %v2530_v32 = vpop.permute.xlu0 %2529 }
0x2e09   :  { %v2532_v31 = vsel %vm103_vm0, %v2530_v32, 0.0 }
0x2e0a   :  { %2533 = vadd.xlane.f32.xlu0 %v2532_v31 }
0x2e7d   :  { %v2534_v30 = vpop.xlane.xlu0 %2533 }
0x2e7e   :  { %v2535_v51 = vmul.f32 %v2534_v30, %v4207_v14 }
0x2e80   :  { %v2536_v53 = vadd.f32 1e-05, %v2535_v51 }
0x2e82   :  { %4053 = vrsqrt.f32 %v2536_v53  ;;  %vm2543_vm8 = vweird.f32 %v2536_v53 }
0x2e88   :  { %v4054_v50 = vpop.eup %4053 }
0x2e89   :  { %v2538_v23 = vmul.f32 %v4054_v50, %v2536_v53  ;;  %vm2544_vm10 = vweird.f32 %v4054_v50 }
0x2e8a   :  { %vm2545_vm14 = vmor %vm2543_vm8, %vm2544_vm10 }
0x2e8b   :  { %v2539_v16 = vmul.f32 %v4054_v50, %v2538_v23 }
0x2e8d   :  { %v2540_v0 = vmul.f32 0.5, %v2539_v16 }
0x2e8f   :  { %v2541_v5 = vsub.f32 1.5, %v2540_v0 }
0x2e91   :  { %v2542_v34 = vmul.f32 %v4054_v50, %v2541_v5 }
0x2e93   :  { %v2546_v58 = vsel %vm2545_vm14, %v4054_v50, %v2542_v34 }
0x2e94   :  { %v2547_v35 = vmul.f32 %v2546_v58, %v2526_v37 }
0x2e96   :  { %v2551_v63 = vmul.f32 %v5037_v27, %v2547_v35 }
0x2e98   :  { %v2555_v36 = vadd.f32 %v5039_v62, %v2551_v63 }
0x2e9a   :  { %v2556_v40 = vpack.c.bf16 %v2555_v36, %v2555_v36 }
0x2e9c   :  { %2558 = vrot.lane.b32.xlu1 %v2556_v40, %s4141_s16 }
0x2ea4   :  { %2723 = vrot.lane.b32.xlu1 %v2721_v9, %s4141_s16 }
0x2eac   :  { %2770 = vrot.lane.b32.xlu1 %v2768_v10, %s4141_s16 }
0x2f0e   :  { %v2559_v11 = vpop.permute.xlu1 %2558 }
0x2f0f   :  { %3772 = vmatmul.msk.bf16.vlgmr.msrb.gmra.mxu3 %vm103_vm0, %v2559_v11 }
0x2f16   :  { %v2724_v12 = vpop.permute.xlu1 %2723 }
0x2f17   :  { %v2729_v13 = vsel %vm381_vm12, %v2724_v12, 0 }
0x2f18   :  { %2738 = vmatpush.bf16.msra.mxu0 %v2729_v13 }
0x2f1e   :  { %v2771_v28 = vpop.permute.xlu1 %2770 }
0x2f1f   :  { %3778 = vmatmul.msk.bf16.vlgmr.msrb.gmra.mxu2 %vm103_vm0, %v2771_v28 }
0x2f92   :  { %v2572_v18 = vpop.f32.mrf.mxu3 }
0x2f93   :  { %v2573_v20 = vadd.f32 %v4830_v39, %v2572_v18 }
0x2f95   :  { %v2576_v46 = vpack.c.bf16 %v2573_v20, %v2573_v20 }
0x2f97   :  { %v2578_v56 = vrot.slane %v2576_v46, 2 }
0x2f99   :  { %v2581_v45 = vsel %vm381_vm12, %v2576_v46, %v2578_v56  ;;  %v2582_v47 = vsel %vm385_vm11, %v2576_v46, %v2578_v56 }
0x2f9a   :  { %v2584_v33 = vrot.slane %v2582_v47, 2  ;;  %v2574_v37 = vpop.f32.mrf.mxu3  ;;  %3773 = vmatmul.msk.bf16.vlgmr.msrb.gmra.mxu0 %vm103_vm0, %v2581_v45 }
0x2f9b   :  { %2881 = vmatpush.bf16.msrb.mxu0 %v4960_v21 }
0x2f9c   :  { %3774 = vmatmul.msk.bf16.vlgmr.msrb.gmra.mxu1 %vm103_vm0, %v2584_v33 }
0x2f9d   :  { %2945 = vmatpush.bf16.msrb.mxu1 %v4783_v29 }
0x2f9f   :  { %2882 = vmatpush.bf16.msrb.mxu0 %v4966_v4 }
0x2fa1   :  { %2946 = vmatpush.bf16.msrb.mxu1 %v4789_v44 }
0x2fa2   :  { %v5060_v39 = vpop.f32.mrf.mxu2 }
0x2fa3   :  { %2883 = vmatpush.bf16.msrb.mxu0 %v4972_v26 }
0x2fa7   :  { %2884 = vmatpush.bf16.msrb.mxu0 %v4978_v6 }
0x2faa   :  { %v2786_v48 = vpop.f32.mrf.mxu2 }
0x2fab   :  { %2885 = vmatpush.bf16.msrb.mxu0 %v4984_v19 }
0x2faf   :  { %2886 = vmatpush.bf16.msrb.mxu0 %v4990_v52 }
0x2fb3   :  { %2887 = vmatpush.bf16.msrb.mxu0 %v4996_v7 }
0x2fb7   :  { %2888 = vmatpush.bf16.msrb.mxu0 %v5005_v17 }
0x3017   :  { %v2596_v29 = vpop.f32.mrf.mxu0 }
0x3018   :  { %v2616_v32 = vmul.f32 0.17677669, %v2596_v29 }
0x3019   :  { %v2612_v31 = vpop.f32.mrf.mxu1 }
0x301a   :  { %v2618_v44 = vsel %vm2122_vm2, %v2616_v32, -inf  ;;  %v2617_v30 = vmul.f32 0.17677669, %v2612_v31 }
0x301b   :  { %v2619_v51 = vrot.slane %v2618_v44, 4 }
0x301c   :  { %v2625_v53 = vsel %vm2122_vm2, %v2617_v30, -inf }
0x301d   :  { %v2620_v50 = vmax.f32 %v2618_v44, %v2619_v51  ;;  %v2626_v23 = vrot.slane %v2625_v53, 4 }
0x301f   :  { %v2621_v16 = vrot.slane %v2620_v50, 2  ;;  %v2627_v0 = vmax.f32 %v2625_v53, %v2626_v23  ;;  %v2598_v5 = vpop.f32.mrf.mxu0 }
0x3021   :  { %v2622_v34 = vmax.f32 %v2620_v50, %v2621_v16  ;;  %v2628_v58 = vrot.slane %v2627_v0, 2  ;;  %v2614_v35 = vpop.f32.mrf.mxu1 }
0x3023   :  { %v2623_v63 = vrot.slane %v2622_v34, 1  ;;  %v2629_v36 = vmax.f32 %v2627_v0, %v2628_v58 }
0x3025   :  { %v2624_v40 = vmax.f32 %v2622_v34, %v2623_v63  ;;  %v2630_v9 = vrot.slane %v2629_v36, 1  ;;  %v5078_v63 = vadd.f32 %v4915_v24, %v5060_v39 }
0x3027   :  { %v2632_v10 = vsub.f32 %v2616_v32, %v2624_v40  ;;  %v2631_v11 = vmax.f32 %v2629_v36, %v2630_v9 }
0x3029   :  { %v2634_v12 = vmul.f32 1.442695, %v2632_v10  ;;  %v2633_v13 = vsub.f32 %v2617_v30, %v2631_v11 }
0x302b   :  { %4055 = vpow2.f32 %v2634_v12  ;;  %v2636_v28 = vmul.f32 1.442695, %v2633_v13 }
0x302d   :  { %4057 = vpow2.f32 %v2636_v28 }
0x3031   :  { %v4056_v18 = vpop.eup %4055 }
0x3032   :  { %v2638_v20 = vsel %vm2122_vm2, %v4056_v18, 0.0 }
0x3033   :  { %v4058_v46 = vpop.eup %4057  ;;  %v2639_v56 = vrot.slane %v2638_v20, 4 }
0x3034   :  { %v2645_v45 = vsel %vm2122_vm2, %v4058_v46, 0.0 }
0x3035   :  { %v2640_v47 = vadd.f32 %v2639_v56, %v2638_v20  ;;  %v2646_v33 = vrot.slane %v2645_v45, 4 }
0x3037   :  { %v2641_v37 = vrot.slane %v2640_v47, 2  ;;  %v2647_v48 = vadd.f32 %v2646_v33, %v2645_v45 }
0x3039   :  { %v2648_v29 = vrot.slane %v2647_v48, 2  ;;  %v2642_v31 = vadd.f32 %v2641_v37, %v2640_v47 }
0x303b   :  { %v2643_v32 = vrot.slane %v2642_v31, 1  ;;  %v2649_v44 = vadd.f32 %v2648_v29, %v2647_v48 }
0x303d   :  { %v2644_v51 = vadd.f32 %v2643_v32, %v2642_v31  ;;  %v2650_v30 = vrot.slane %v2649_v44, 1 }
0x303f   :  { %4059 = vrcp.f32 %v2644_v51  ;;  %v2651_v53 = vadd.f32 %v2650_v30, %v2649_v44 }
0x3041   :  { %4061 = vrcp.f32 %v2651_v53 }
0x3045   :  { %v4060_v50 = vpop.eup %4059 }
0x3046   :  { %v2654_v23 = vmul.f32 %v4060_v50, %v4056_v18 }
0x3047   :  { %v4062_v16 = vpop.eup %4061 }
0x3048   :  { %v2656_v0 = vadd.f32 1e-08, %v2654_v23  ;;  %v2655_v5 = vmul.f32 %v4062_v16, %v4058_v46 }
0x304a   :  { %v2658_v34 = vsel %vm2122_vm2, %v2656_v0, 0.0  ;;  %v2657_v58 = vadd.f32 1e-08, %v2655_v5 }
0x304b   :  { %2659 = vadd.xlane.f32.xlu2 %v2658_v34 }
0x304c   :  { %v2661_v35 = vsel %vm2122_vm2, %v2657_v58, 0.0 }
0x304d   :  { %2662 = vadd.xlane.f32.xlu0 %v2661_v35 }
0x3061   :  { %2699 = vrot.lane.b32.xlu0 %v4909_v55, %s4141_s16 }
0x3069   :  { %2809 = vrot.lane.b32.xlu0 %v5078_v63, %s4143_s28 }
0x30be   :  { %v2660_v36 = vpop.xlane.xlu2 %2659 }
0x30bf   :  { %4063 = vrcp.f32 %v2660_v36  ;;  %v2675_v28 = vand.u32 2147483648, %v2660_v36  ;;  %v2673_v55 = vand.u32 2147483647, %v2660_v36  ;;  %vm2669_vm1 = vweird.f32 %v2660_v36 }
0x30c0   :  { %v2663_v40 = vpop.xlane.xlu0 %2662 }
0x30c1   :  { %4065 = vrcp.f32 %v2663_v40  ;;  %v2690_v39 = vand.u32 2147483648, %v2663_v40  ;;  %v2688_v45 = vand.u32 2147483647, %v2663_v40  ;;  %v2676_v47 = vor.u32 1.1754944e-38, %v2675_v28 }
0x30c2   :  { %vm2674_vm5 = vcmp.eq.f32.partialorder %v2673_v55, 8.507059e+37  ;;  %vm2684_vm6 = vweird.f32 %v2663_v40 }
0x30c3   :  { %v2691_v29 = vor.u32 1.1754944e-38, %v2690_v39  ;;  %vm2689_vm10 = vcmp.eq.f32.partialorder %v2688_v45, 8.507059e+37 }
0x30c5   :  { %v4064_v9 = vpop.eup %4063 }
0x30c6   :  { %v2665_v10 = vmul.f32 %v4064_v9, %v2660_v36  ;;  %vm2670_vm15 = vweird.f32 %v4064_v9 }
0x30c7   :  { %v4066_v11 = vpop.eup %4065  ;;  %vm2671_vm4 = vmor %vm2669_vm1, %vm2670_vm15 }
0x30c8   :  { %v2666_v12 = vsub.f32 1.0, %v2665_v10  ;;  %v2680_v13 = vmul.f32 %v4066_v11, %v2663_v40  ;;  %vm2685_vm3 = vweird.f32 %v4066_v11 }
0x30c9   :  { %vm2686_vm9 = vmor %vm2684_vm6, %vm2685_vm3 }
0x30ca   :  { %v2667_v18 = vmul.f32 %v4064_v9, %v2666_v12  ;;  %v2681_v20 = vsub.f32 1.0, %v2680_v13 }
0x30cc   :  { %v2668_v46 = vadd.f32 %v4064_v9, %v2667_v18  ;;  %v2682_v56 = vmul.f32 %v4066_v11, %v2681_v20 }
0x30ce   :  { %v2672_v33 = vsel %vm2671_vm4, %v4064_v9, %v2668_v46  ;;  %v2683_v37 = vadd.f32 %v4066_v11, %v2682_v56 }
0x30cf   :  { %v2677_v48 = vsel %vm2674_vm5, %v2676_v47, %v2672_v33 }
0x30d0   :  { %v2687_v31 = vsel %vm2686_vm9, %v4066_v11, %v2683_v37  ;;  %v2678_v44 = vmul.f32 %v2677_v48, %v2656_v0 }
0x30d1   :  { %v2692_v32 = vsel %vm2689_vm10, %v2691_v29, %v2687_v31 }
0x30d2   :  { %v2693_v51 = vmul.f32 %v2692_v32, %v2657_v58  ;;  %v2694_v23 = vpack.c.bf16 %v2678_v44, %v2678_v44 }
0x30d3   :  { %v2700_v30 = vpop.permute.xlu0 %2699 }
0x30d4   :  { %v2695_v53 = vpack.c.bf16 %v2693_v51, %v2693_v51  ;;  %v2705_v50 = vsel %vm381_vm12, %v2700_v30, 0 }
0x30d5   :  { %2714 = vmatpush.bf16.msra.mxu3 %v2705_v50 }
0x30d6   :  { %3776 = vmatmul.msk.bf16.vlgmr.msra.gmra.mxu0 %vm2206_vm7, %v2695_v53 }
0x30d7   :  { %3157 = vmatpush.bf16.msra.mxu0 %v4842_v2 }
0x30d8   :  { %3775 = vmatmul.msk.bf16.vlgmr.msra.gmra.mxu3 %vm2206_vm7, %v2694_v23 }
0x30d9   :  { %2872 = vmatpush.bf16.msrb.mxu3 %v4875_v15 }
0x30db   :  { %3158 = vmatpush.bf16.msra.mxu0 %v4855_v25 }
0x30dd   :  { %2873 = vmatpush.bf16.msrb.mxu3 %v4882_v54 }
0x30e1   :  { %2985 = vmatpush.bf16.msra.mxu3 %v4835_v41 }
0x30e5   :  { %2986 = vmatpush.bf16.msra.mxu3 %v4847_v59 }
0x3153   :  { %v2740_v16 = vpop.f32.mrf.mxu0 }
0x3154   :  { %2748 = vst [vmem:[#allocation1 + $0x1] ss:$2 sm:$0xff] %v2740_v16 }
0x315b   :  { %v2716_v0 = vpop.f32.mrf.mxu3  ;;  %v2742_v5 = vpop.f32.mrf.mxu0 }
0x315c   :  { %2746 = vst [vmem:[#allocation1] ss:$2 sm:$0xff] %v2716_v0 }
0x3163   :  { %v2718_v34 = vpop.f32.mrf.mxu3  ;;  %v2749_v58 = vld.sshfl [vmem:[#allocation1] sm:$0xff pattern:$0x75316420] }
0x3164   :  { %v2751_v35 = vpack.c.bf16 %v2749_v58, %v2749_v58  ;;  %3072 = vst [vmem:[#allocation1] ss:$4 sm:$0xff] %v4816_v60 }
0x3166   :  { %3777 = vmatmul.msk.bf16.vlgmr.msra.gmra.mxu1 %vm103_vm0, %v2751_v35 }
0x316b   :  { %v5093_v2 = vld.sshfl [vmem:[#allocation1] sm:$0xff pattern:$0x73625140] }
0x316c   :  { %3096 = vst [vmem:[#allocation1] ss:$4 sm:$0xff] %v4820_v1 }
0x31e3   :  { %v2764_v41 = vpop.f32.mrf.mxu1 }
0x31e4   :  { %v2765_v25 = vadd.f32 %v4922_v3, %v2764_v41 }
0x31e6   :  { %v2788_v59 = vadd.f32 %v5078_v63, %v2765_v25  ;;  %v2810_v63 = vpop.permute.xlu0 %2809 }
0x31e8   :  { %v3779_v36 = vmul.f32 -1.442695, %v2788_v59 }
0x31ea   :  { %4067 = vpow2.f32 %v3779_v36 }
0x31eb   :  { %v2766_v40 = vpop.f32.mrf.mxu1 }
0x31f0   :  { %v4068_v9 = vpop.eup %4067 }
0x31f1   :  { %v2792_v10 = vadd.f32 1.0, %v4068_v9 }
0x31f3   :  { %4069 = vrcp.f32 %v2792_v10  ;;  %v2804_v13 = vand.u32 2147483648, %v2792_v10  ;;  %v2802_v18 = vand.u32 2147483647, %v2792_v10  ;;  %vm2798_vm14 = vweird.f32 %v2792_v10 }
0x31f5   :  { %v2805_v1 = vor.u32 1.1754944e-38, %v2804_v13  ;;  %vm2803_vm1 = vcmp.eq.f32.partialorder %v2802_v18, 8.507059e+37 }
0x31f9   :  { %v4070_v11 = vpop.eup %4069 }
0x31fa   :  { %v2794_v12 = vmul.f32 %v4070_v11, %v2792_v10  ;;  %vm2799_vm8 = vweird.f32 %v4070_v11 }
0x31fb   :  { %vm2800_vm15 = vmor %vm2798_vm14, %vm2799_vm8 }
0x31fc   :  { %v2795_v60 = vsub.f32 1.0, %v2794_v12 }
0x31fe   :  { %v2796_v28 = vmul.f32 %v4070_v11, %v2795_v60 }
0x3200   :  { %v2797_v55 = vadd.f32 %v4070_v11, %v2796_v28 }
0x3202   :  { %v2801_v3 = vsel %vm2800_vm15, %v4070_v11, %v2797_v55 }
0x3203   :  { %v2806_v20 = vsel %vm2803_vm1, %v2805_v1, %v2801_v3 }
0x3204   :  { %v2812_v39 = vmul.f32 %v2810_v63, %v2806_v20  ;;  %v2819_v47 = vsub.f32 1.0, %v2806_v20  ;;  %v2825_v37 = vmul.f32 %v2806_v20, %v5027_v49 }
0x3206   :  { %2814 = vrot.lane.b32.xlu1 %v2812_v39, %s4143_s28 }
0x3278   :  { %v2815_v46 = vpop.permute.xlu1 %2814 }
0x3279   :  { %v2817_v56 = vadd.f32 %v2815_v46, %v2765_v25 }
0x327b   :  { %4071 = vtanh.f32 %v2817_v56 }
0x3281   :  { %v4072_v45 = vpop.eup %4071 }
0x3282   :  { %2821 = vrot.lane.b32.xlu0 %v4072_v45, %s4141_s16 }
0x32f4   :  { %v2822_v33 = vpop.permute.xlu0 %2821 }
0x32f5   :  { %v2824_v48 = vmul.f32 %v2822_v33, %v2819_v47 }
0x32f7   :  { %v2826_v29 = vadd.f32 %v2825_v37, %v2824_v48 }
0x32f9   :  { %2828 = vrot.lane.b32.xlu2 %v2826_v29, %s4141_s16 }
0x3353   :  { %v2829_v31 = vpop.permute.xlu2 %2828 }
0x3354   :  { %v2831_v32 = vsel %vm103_vm0, %v2829_v31, 0.0 }
0x3355   :  { %2832 = vadd.xlane.f32.xlu1 %v2831_v32 }
0x33c8   :  { %v2833_v44 = vpop.xlane.xlu1 %2832 }
0x33c9   :  { %v2834_v51 = vmul.f32 %v2833_v44, %v4207_v14 }
0x33cb   :  { %v2835_v30 = vsub.f32 %v2826_v29, %v2834_v51 }
0x33cd   :  { %v2836_v53 = vmul.f32 %v2835_v30, %v2835_v30 }
0x33cf   :  { %2838 = vrot.lane.b32.xlu0 %v2836_v53, %s4141_s16 }
0x3441   :  { %v2839_v50 = vpop.permute.xlu0 %2838 }
0x3442   :  { %v2841_v23 = vsel %vm103_vm0, %v2839_v50, 0.0 }
0x3443   :  { %2842 = vadd.xlane.f32.xlu0 %v2841_v23 }
0x34b6   :  { %v2843_v49 = vpop.xlane.xlu0 %2842 }
0x34b7   :  { %v2844_v16 = vmul.f32 %v2843_v49, %v4207_v14 }
0x34b9   :  { %v2845_v0 = vadd.f32 1e-05, %v2844_v16 }
0x34bb   :  { %4073 = vrsqrt.f32 %v2845_v0  ;;  %vm2852_vm4 = vweird.f32 %v2845_v0 }
0x34c1   :  { %v4074_v5 = vpop.eup %4073 }
0x34c2   :  { %v2847_v34 = vmul.f32 %v4074_v5, %v2845_v0  ;;  %vm2853_vm3 = vweird.f32 %v4074_v5 }
0x34c3   :  { %vm2854_vm5 = vmor %vm2852_vm4, %vm2853_vm3 }
0x34c4   :  { %v2848_v58 = vmul.f32 %v4074_v5, %v2847_v34 }
0x34c6   :  { %v2849_v35 = vmul.f32 0.5, %v2848_v58 }
0x34c8   :  { %v2850_v41 = vsub.f32 1.5, %v2849_v35 }
0x34ca   :  { %v2851_v25 = vmul.f32 %v4074_v5, %v2850_v41 }
0x34cc   :  { %v2855_v59 = vsel %vm2854_vm5, %v4074_v5, %v2851_v25 }
0x34cd   :  { %v2856_v36 = vmul.f32 %v2855_v59, %v2835_v30 }
0x34cf   :  { %v2857_v40 = vmul.f32 %v2856_v36, %v4950_v43 }
0x34d1   :  { %v2858_v9 = vadd.f32 %v2857_v40, %v4952_v61 }
0x34d3   :  { %v2859_v10 = vpack.c.bf16 %v2858_v9, %v2858_v9 }
0x34d5   :  { %2861 = vrot.lane.b32.xlu2 %v2859_v10, %s4141_s16 }
0x352f   :  { %v2862_v11 = vpop.permute.xlu2 %2861 }
0x3530   :  { %3780 = vmatmul.msk.bf16.vlgmr.msrb.gmra.mxu3 %vm103_vm0, %v2862_v11 }
0x3531   :  { %3137 = vmatpush.bf16.msrb.mxu3 %v4891_v8 }
0x3535   :  { %3138 = vmatpush.bf16.msrb.mxu3 %v4897_v38 }
0x35b3   :  { %v2875_v12 = vpop.f32.mrf.mxu3 }
0x35b4   :  { %v2876_v60 = vadd.f32 %v5013_v22, %v2875_v12 }
0x35b6   :  { %v2879_v13 = vmax.f32 %v2876_v60, 0.0 }
0x35b8   :  { %v2880_v28 = vpack.c.bf16 %v2879_v13, %v2879_v13 }
0x35ba   :  { %2889 = vmatmul.bf16.vlgmr.msrb.gmra.mxu0 %v2880_v28 }
0x35bb   :  { %v2877_v18 = vpop.f32.mrf.mxu3 }
0x3637   :  { %v2890_v55 = vpop.f32.mrf.mxu0 }
0x3638   :  { %2895 = vrot.lane.b32.xlu2 %v2890_v55, %s4142_s25 }
0x363f   :  { %v2892_v1 = vpop.f32.mrf.mxu0 }
0x3692   :  { %v2896_v3 = vpop.permute.xlu2 %2895 }
0x3693   :  { %v2898_v63 = vadd.f32 %v2896_v3, %v2826_v29 }
0x3695   :  { %v5116_v20 = vadd.f32 %v2898_v63, %v5023_v57 }
0x3697   :  { %2901 = vrot.lane.b32.xlu2 %v5116_v20, %s4141_s16  ;;  %v3144_v0 = vpack.c.bf16 %v5116_v20, %v5116_v20 }
0x36f1   :  { %v2902_v8 = vpop.permute.xlu2 %2901 }
0x36f2   :  { %v2904_v38 = vsel %vm103_vm0, %v2902_v8, 0.0 }
0x36f3   :  { %2905 = vadd.xlane.f32.xlu1 %v2904_v38 }
0x3766   :  { %v2906_v22 = vpop.xlane.xlu1 %2905 }
0x3767   :  { %v2907_v39 = vmul.f32 %v2906_v22, %v4207_v14 }
0x3769   :  { %v2908_v46 = vsub.f32 %v5116_v20, %v2907_v39 }
0x376b   :  { %v2909_v56 = vmul.f32 %v2908_v46, %v2908_v46 }
0x376d   :  { %2911 = vrot.lane.b32.xlu2 %v2909_v56, %s4141_s16 }
0x37c7   :  { %v2912_v45 = vpop.permute.xlu2 %2911 }
0x37c8   :  { %v2914_v47 = vsel %vm103_vm0, %v2912_v45, 0.0 }
0x37c9   :  { %2915 = vadd.xlane.f32.xlu1 %v2914_v47 }
0x383c   :  { %v2916_v33 = vpop.xlane.xlu1 %2915 }
0x383d   :  { %v2917_v37 = vmul.f32 %v2916_v33, %v4207_v14 }
0x383f   :  { %v2918_v48 = vadd.f32 1e-05, %v2917_v37 }
0x3841   :  { %4075 = vrsqrt.f32 %v2918_v48  ;;  %vm2925_vm9 = vweird.f32 %v2918_v48 }
0x3847   :  { %v4076_v29 = vpop.eup %4075 }
0x3848   :  { %v2920_v31 = vmul.f32 %v4076_v29, %v2918_v48  ;;  %vm2926_vm6 = vweird.f32 %v4076_v29 }
0x3849   :  { %vm2927_vm10 = vmor %vm2925_vm9, %vm2926_vm6 }
0x384a   :  { %v2921_v32 = vmul.f32 %v4076_v29, %v2920_v31 }
0x384c   :  { %v2922_v44 = vmul.f32 0.5, %v2921_v32 }
0x384e   :  { %v2923_v51 = vsub.f32 1.5, %v2922_v44 }
0x3850   :  { %v2924_v30 = vmul.f32 %v4076_v29, %v2923_v51 }
0x3852   :  { %v2928_v53 = vsel %vm2927_vm10, %v4076_v29, %v2924_v30 }
0x3853   :  { %v2929_v50 = vmul.f32 %v2928_v53, %v2908_v46 }
0x3855   :  { %v2930_v23 = vmul.f32 %v2929_v50, %v5037_v27 }
0x3857   :  { %v2931_v49 = vadd.f32 %v2930_v23, %v5039_v62 }
0x3859   :  { %v2932_v16 = vpack.c.bf16 %v2931_v49, %v2931_v49 }
0x385b   :  { %2934 = vrot.lane.b32.xlu0 %v2932_v16, %s4141_s16 }
0x3863   :  { %3075 = vrot.lane.b32.xlu0 %v5093_v2, %s4141_s16  ;;  %v4109_v2 = vld [vmem:[%s5262_s6 + $0x1e] ss:$0 sm:$0xff] }
0x386b   :  { %3146 = vrot.lane.b32.xlu0 %v3144_v0, %s4141_s16 }
0x38cd   :  { %v2935_v5 = vpop.permute.xlu0 %2934 }
0x38ce   :  { %3781 = vmatmul.msk.bf16.vlgmr.msrb.gmra.mxu1 %vm103_vm0, %v2935_v5 }
0x38d5   :  { %v3076_v34 = vpop.permute.xlu0 %3075 }
0x38d6   :  { %v3081_v58 = vsel %vm381_vm12, %v3076_v34, 0 }
0x38d7   :  { %3090 = vmatpush.bf16.msra.mxu1 %v3081_v58 }
0x38db   :  { %3248 = vmatpush.bf16.msrb.mxu1 %v4875_v15 }
0x38dd   :  { %v3147_v27 = vpop.permute.xlu0 %3146 }
0x38de   :  { %3787 = vmatmul.msk.bf16.vlgmr.msra.gmra.mxu0 %vm103_vm0, %v3147_v27 }
0x38df   :  { %3249 = vmatpush.bf16.msrb.mxu1 %v4882_v54 }
0x394b   :  { %v2948_v62 = vpop.f32.mrf.mxu1 }
0x394c   :  { %v2949_v35 = vadd.f32 %v4109_v2, %v2948_v62 }
0x394e   :  { %v2952_v41 = vpack.c.bf16 %v2949_v35, %v2949_v35 }
0x3950   :  { %v2954_v25 = vrot.slane %v2952_v41, 2 }
0x3952   :  { %v2957_v59 = vsel %vm381_vm12, %v2952_v41, %v2954_v25  ;;  %v2958_v36 = vsel %vm385_vm11, %v2952_v41, %v2954_v25 }
0x3953   :  { %v2960_v40 = vrot.slane %v2958_v36, 2  ;;  %v2950_v9 = vpop.f32.mrf.mxu1  ;;  %3782 = vmatmul.msk.bf16.vlgmr.msra.gmra.mxu2 %vm103_vm0, %v2957_v59 }
0x3955   :  { %3783 = vmatmul.msk.bf16.vlgmr.msra.gmra.mxu3 %vm103_vm0, %v2960_v40 }
0x395b   :  { %v3160_v15 = vpop.f32.mrf.mxu0 }
0x395c   :  { %v5147_v54 = vadd.f32 %v4915_v24, %v3160_v15 }
0x395e   :  { %3185 = vrot.lane.b32.xlu0 %v5147_v54, %s4143_s28 }
0x3963   :  { %v3162_v10 = vpop.f32.mrf.mxu0 }
0x3964   :  { %v3097_v10 = vld.sshfl [vmem:[#allocation1] sm:$0xff pattern:$0x73625140] }
0x39d6   :  { %v2972_v11 = vpop.f32.mrf.mxu2 }
0x39d7   :  { %v2992_v12 = vmul.f32 0.17677669, %v2972_v11 }
0x39d8   :  { %v2988_v60 = vpop.f32.mrf.mxu3 }
0x39d9   :  { %v2994_v13 = vsel %vm2122_vm2, %v2992_v12, -inf  ;;  %v2993_v28 = vmul.f32 0.17677669, %v2988_v60 }
0x39da   :  { %v2995_v18 = vrot.slane %v2994_v13, 4 }
0x39db   :  { %v3001_v55 = vsel %vm2122_vm2, %v2993_v28, -inf }
0x39dc   :  { %v2996_v1 = vmax.f32 %v2994_v13, %v2995_v18  ;;  %v3002_v3 = vrot.slane %v3001_v55, 4 }
0x39de   :  { %v2997_v63 = vrot.slane %v2996_v1, 2  ;;  %v3003_v8 = vmax.f32 %v3001_v55, %v3002_v3  ;;  %v2974_v38 = vpop.f32.mrf.mxu2 }
0x39e0   :  { %v2998_v24 = vmax.f32 %v2996_v1, %v2997_v63  ;;  %v3004_v22 = vrot.slane %v3003_v8, 2  ;;  %v2990_v39 = vpop.f32.mrf.mxu3 }
0x39e2   :  { %v2999_v46 = vrot.slane %v2998_v24, 1  ;;  %v3005_v56 = vmax.f32 %v3003_v8, %v3004_v22 }
0x39e4   :  { %v3000_v45 = vmax.f32 %v2998_v24, %v2999_v46  ;;  %v3006_v47 = vrot.slane %v3005_v56, 1 }
0x39e6   :  { %v3008_v33 = vsub.f32 %v2992_v12, %v3000_v45  ;;  %v3007_v37 = vmax.f32 %v3005_v56, %v3006_v47 }
0x39e8   :  { %v3010_v48 = vmul.f32 1.442695, %v3008_v33  ;;  %v3009_v29 = vsub.f32 %v2993_v28, %v3007_v37 }
0x39ea   :  { %4077 = vpow2.f32 %v3010_v48  ;;  %v3012_v31 = vmul.f32 1.442695, %v3009_v29 }
0x39ec   :  { %4079 = vpow2.f32 %v3012_v31 }
0x39f0   :  { %v4078_v32 = vpop.eup %4077 }
0x39f1   :  { %v3014_v44 = vsel %vm2122_vm2, %v4078_v32, 0.0 }
0x39f2   :  { %v4080_v51 = vpop.eup %4079  ;;  %v3015_v30 = vrot.slane %v3014_v44, 4 }
0x39f3   :  { %v3021_v53 = vsel %vm2122_vm2, %v4080_v51, 0.0 }
0x39f4   :  { %v3016_v50 = vadd.f32 %v3015_v30, %v3014_v44  ;;  %v3022_v23 = vrot.slane %v3021_v53, 4 }
0x39f6   :  { %v3017_v49 = vrot.slane %v3016_v50, 2  ;;  %v3023_v16 = vadd.f32 %v3022_v23, %v3021_v53 }
0x39f8   :  { %v3024_v0 = vrot.slane %v3023_v16, 2  ;;  %v3018_v5 = vadd.f32 %v3017_v49, %v3016_v50 }
0x39fa   :  { %v3019_v34 = vrot.slane %v3018_v5, 1  ;;  %v3025_v58 = vadd.f32 %v3024_v0, %v3023_v16 }
0x39fc   :  { %v3020_v27 = vadd.f32 %v3019_v34, %v3018_v5  ;;  %v3026_v62 = vrot.slane %v3025_v58, 1 }
0x39fe   :  { %4081 = vrcp.f32 %v3020_v27  ;;  %v3027_v2 = vadd.f32 %v3026_v62, %v3025_v58 }
0x3a00   :  { %4083 = vrcp.f32 %v3027_v2 }
0x3a04   :  { %v4082_v35 = vpop.eup %4081 }
0x3a05   :  { %v3030_v41 = vmul.f32 %v4082_v35, %v4078_v32 }
0x3a06   :  { %v4084_v25 = vpop.eup %4083 }
0x3a07   :  { %v3032_v59 = vadd.f32 1e-08, %v3030_v41  ;;  %v3031_v36 = vmul.f32 %v4084_v25, %v4080_v51 }
0x3a09   :  { %v3034_v40 = vsel %vm2122_vm2, %v3032_v59, 0.0  ;;  %v3033_v9 = vadd.f32 1e-08, %v3031_v36 }
0x3a0a   :  { %3035 = vadd.xlane.f32.xlu1 %v3034_v40 }
0x3a0b   :  { %v3037_v15 = vsel %vm2122_vm2, %v3033_v9, 0.0 }
0x3a0c   :  { %3038 = vadd.xlane.f32.xlu2 %v3037_v15 }
0x3a23   :  { %3099 = vrot.lane.b32.xlu1 %v3097_v10, %s4141_s16 }
0x3a7d   :  { %v3036_v11 = vpop.xlane.xlu1 %3035 }
0x3a7e   :  { %4085 = vrcp.f32 %v3036_v11  ;;  %v3051_v1 = vand.u32 2147483648, %v3036_v11  ;;  %v3049_v63 = vand.u32 2147483647, %v3036_v11  ;;  %vm3045_vm8 = vweird.f32 %v3036_v11 }
0x3a7f   :  { %v3039_v12 = vpop.xlane.xlu2 %3038 }
0x3a80   :  { %4087 = vrcp.f32 %v3039_v12  ;;  %v3066_v22 = vand.u32 2147483648, %v3039_v12  ;;  %v3052_v39 = vor.u32 1.1754944e-38, %v3051_v1  ;;  %v3064_v46 = vand.u32 2147483647, %v3039_v12 }
0x3a81   :  { %vm3050_vm15 = vcmp.eq.f32.partialorder %v3049_v63, 8.507059e+37  ;;  %vm3060_vm1 = vweird.f32 %v3039_v12 }
0x3a82   :  { %v3067_v48 = vor.u32 1.1754944e-38, %v3066_v22  ;;  %vm3065_vm4 = vcmp.eq.f32.partialorder %v3064_v46, 8.507059e+37 }
0x3a84   :  { %v4086_v60 = vpop.eup %4085 }
0x3a85   :  { %v3041_v13 = vmul.f32 %v4086_v60, %v3036_v11  ;;  %vm3046_vm11 = vweird.f32 %v4086_v60 }
0x3a86   :  { %v4088_v28 = vpop.eup %4087  ;;  %vm3047_vm14 = vmor %vm3045_vm8, %vm3046_vm11 }
0x3a87   :  { %v3042_v18 = vsub.f32 1.0, %v3041_v13  ;;  %v3056_v55 = vmul.f32 %v4088_v28, %v3039_v12  ;;  %vm3061_vm2 = vweird.f32 %v4088_v28 }
0x3a88   :  { %vm3062_vm3 = vmor %vm3060_vm1, %vm3061_vm2 }
0x3a89   :  { %v3043_v3 = vmul.f32 %v4086_v60, %v3042_v18  ;;  %v3057_v8 = vsub.f32 1.0, %v3056_v55 }
0x3a8b   :  { %v3044_v38 = vadd.f32 %v4086_v60, %v3043_v3  ;;  %v3058_v24 = vmul.f32 %v4088_v28, %v3057_v8 }
0x3a8d   :  { %v3048_v56 = vsel %vm3047_vm14, %v4086_v60, %v3044_v38  ;;  %v3059_v45 = vadd.f32 %v4088_v28, %v3058_v24 }
0x3a8e   :  { %v3053_v47 = vsel %vm3050_vm15, %v3052_v39, %v3048_v56 }
0x3a8f   :  { %v3054_v33 = vmul.f32 %v3053_v47, %v3032_v59  ;;  %v3063_v37 = vsel %vm3062_vm3, %v4088_v28, %v3059_v45 }
0x3a90   :  { %v3068_v31 = vsel %vm3065_vm4, %v3067_v48, %v3063_v37 }
0x3a91   :  { %v3070_v29 = vpack.c.bf16 %v3054_v33, %v3054_v33  ;;  %v3069_v32 = vmul.f32 %v3068_v31, %v3033_v9 }
0x3a93   :  { %3784 = vmatmul.msk.bf16.vlgmr.msra.gmra.mxu1 %vm2206_vm7, %v3070_v29  ;;  %v3071_v30 = vpack.c.bf16 %v3069_v32, %v3069_v32 }
0x3a95   :  { %v3100_v44 = vpop.permute.xlu1 %3099 }
0x3a96   :  { %v3105_v51 = vsel %vm381_vm12, %v3100_v44, 0 }
0x3a97   :  { %3114 = vmatpush.bf16.msrb.mxu2 %v3105_v51 }
0x3a9a   :  { %3785 = vmatmul.msk.bf16.vlgmr.msrb.gmra.mxu2 %vm2206_vm7, %v3071_v30  ;;  %v4111_v30 = vld [vmem:[%s5262_s6 + $0x22] ss:$0 sm:$0xff] }
0x3a9b   :  { %3257 = vmatpush.bf16.msra.mxu2 %v4960_v21 }
0x3a9f   :  { %3258 = vmatpush.bf16.msra.mxu2 %v4966_v4 }
0x3aa3   :  { %3259 = vmatpush.bf16.msra.mxu2 %v4972_v26 }
0x3aa7   :  { %3260 = vmatpush.bf16.msra.mxu2 %v4978_v6  ;;  %v4110_v6 = vld [vmem:[%s5262_s6 + $0x20] ss:$0 sm:$0xff] }
0x3aab   :  { %3261 = vmatpush.bf16.msra.mxu2 %v4984_v19 }
0x3aaf   :  { %3262 = vmatpush.bf16.msra.mxu2 %v4990_v52 }
0x3ab3   :  { %3263 = vmatpush.bf16.msra.mxu2 %v4996_v7 }
0x3ab7   :  { %3264 = vmatpush.bf16.msra.mxu2 %v5005_v17 }
0x3b10   :  { %v3092_v53 = vpop.f32.mrf.mxu1 }
0x3b11   :  { %3122 = vst [vmem:[#allocation1] ss:$2 sm:$0xff] %v3092_v53 }
0x3b18   :  { %v3094_v50 = vpop.f32.mrf.mxu1 }
0x3b1d   :  { %v3116_v21 = vpop.f32.mrf.mxu2 }
0x3b1e   :  { %3124 = vst [vmem:[#allocation1 + $0x1] ss:$2 sm:$0xff] %v3116_v21 }
0x3b25   :  { %v3118_v23 = vpop.f32.mrf.mxu2  ;;  %v3125_v49 = vld.sshfl [vmem:[#allocation1] sm:$0xff pattern:$0x75316420] }
0x3b26   :  { %v3127_v4 = vpack.c.bf16 %v3125_v49, %v3125_v49 }
0x3b28   :  { %3786 = vmatmul.msk.bf16.vlgmr.msrb.gmra.mxu3 %vm103_vm0, %v3127_v4 }
0x3bab   :  { %v3140_v26 = vpop.f32.mrf.mxu3 }
0x3bac   :  { %v3141_v19 = vadd.f32 %v4110_v6, %v3140_v26 }
0x3bae   :  { %v3164_v52 = vadd.f32 %v5147_v54, %v3141_v19  ;;  %v3186_v54 = vpop.permute.xlu0 %3185 }
0x3bb0   :  { %v3788_v7 = vmul.f32 -1.442695, %v3164_v52 }
0x3bb2   :  { %4089 = vpow2.f32 %v3788_v7 }
0x3bb3   :  { %v3142_v17 = vpop.f32.mrf.mxu3 }
0x3bb8   :  { %v4090_v16 = vpop.eup %4089 }
0x3bb9   :  { %v3168_v0 = vadd.f32 1.0, %v4090_v16 }
0x3bbb   :  { %4091 = vrcp.f32 %v3168_v0  ;;  %v3180_v27 = vand.u32 2147483648, %v3168_v0  ;;  %v3178_v2 = vand.u32 2147483647, %v3168_v0  ;;  %vm3174_vm7 = vweird.f32 %v3168_v0 }
0x3bbd   :  { %v3181_v41 = vor.u32 1.1754944e-38, %v3180_v27  ;;  %vm3179_vm6 = vcmp.eq.f32.partialorder %v3178_v2, 8.507059e+37  ;;  %v3850_v2 = vld [vmem:[%s5260_s4 + $0xb0] sm:$0xff] }
0x3bc1   :  { %v4092_v5 = vpop.eup %4091 }
0x3bc2   :  { %v3170_v34 = vmul.f32 %v4092_v5, %v3168_v0  ;;  %vm3175_vm12 = vweird.f32 %v4092_v5 }
0x3bc3   :  { %vm3176_vm5 = vmor %vm3174_vm7, %vm3175_vm12 }
0x3bc4   :  { %v3171_v58 = vsub.f32 1.0, %v3170_v34 }
0x3bc6   :  { %v3172_v62 = vmul.f32 %v4092_v5, %v3171_v58  ;;  %v3851_v58 = vld [vmem:[%s5260_s4 + $0xb8] sm:$0xff] }
0x3bc7   :  { %3345 = vmatpush.bf16.msra.mxu3 %v3851_v58 }
0x3bc8   :  { %v3173_v35 = vadd.f32 %v4092_v5, %v3172_v62 }
0x3bca   :  { %v3177_v25 = vsel %vm3176_vm5, %v4092_v5, %v3173_v35  ;;  %v3949_v5 = vld [vmem:[%s5262_s6 + $0x27] ss:$0 sm:$0xff] }
0x3bcb   :  { %v3182_v59 = vsel %vm3179_vm6, %v3181_v41, %v3177_v25  ;;  %3346 = vmatpush.bf16.msra.mxu3 %v3850_v2 }
0x3bcc   :  { %v3188_v36 = vmul.f32 %v3186_v54, %v3182_v59  ;;  %v3195_v10 = vsub.f32 1.0, %v3182_v59  ;;  %v3201_v12 = vmul.f32 %v3182_v59, %v5116_v20 }
0x3bce   :  { %3190 = vrot.lane.b32.xlu1 %v3188_v36, %s4143_s28 }
0x3c40   :  { %v3191_v40 = vpop.permute.xlu1 %3190 }
0x3c41   :  { %v3193_v9 = vadd.f32 %v3191_v40, %v3141_v19 }
0x3c43   :  { %4093 = vtanh.f32 %v3193_v9 }
0x3c49   :  { %v4094_v15 = vpop.eup %4093 }
0x3c4a   :  { %3197 = vrot.lane.b32.xlu2 %v4094_v15, %s4141_s16 }
0x3ca4   :  { %v3198_v11 = vpop.permute.xlu2 %3197 }
0x3ca5   :  { %v3200_v60 = vmul.f32 %v3198_v11, %v3195_v10 }
0x3ca7   :  { %v3202_v13 = vadd.f32 %v3201_v12, %v3200_v60 }
0x3ca9   :  { %3204 = vrot.lane.b32.xlu0 %v3202_v13, %s4141_s16 }
0x3d1b   :  { %v3205_v28 = vpop.permute.xlu0 %3204 }
0x3d1c   :  { %v3207_v18 = vsel %vm103_vm0, %v3205_v28, 0.0  ;;  %v3863_v28 = vld [vmem:[%s5261_s5 + $0xb8] sm:$0xff] }
0x3d1d   :  { %3208 = vadd.xlane.f32.xlu1 %v3207_v18  ;;  %3386 = vmatpush.bf16.msrb.mxu0 %v3863_v28  ;;  %v3862_v18 = vld [vmem:[%s5261_s5 + $0xb0] sm:$0xff] }
0x3d21   :  { %3387 = vmatpush.bf16.msrb.mxu0 %v3862_v18 }
0x3d90   :  { %v3209_v55 = vpop.xlane.xlu1 %3208 }
0x3d91   :  { %v3210_v1 = vmul.f32 %v3209_v55, %v4207_v14 }
0x3d93   :  { %v3211_v3 = vsub.f32 %v3202_v13, %v3210_v1  ;;  %v3861_v1 = vld [vmem:[%s5261_s5 + $0xa8] sm:$0xff] }
0x3d94   :  { %3388 = vmatpush.bf16.msrb.mxu0 %v3861_v1 }
0x3d95   :  { %v3212_v63 = vmul.f32 %v3211_v3, %v3211_v3 }
0x3d97   :  { %3214 = vrot.lane.b32.xlu0 %v3212_v63, %s4141_s16  ;;  %v3951_v63 = vld [vmem:[%s5262_s6 + $0x24] ss:$0 sm:$0xff] }
0x3e09   :  { %v3215_v8 = vpop.permute.xlu0 %3214 }
0x3e0a   :  { %v3217_v38 = vsel %vm103_vm0, %v3215_v8, 0.0 }
0x3e0b   :  { %3218 = vadd.xlane.f32.xlu0 %v3217_v38 }
0x3e1f   :  { %3315 = vrot.lane.b32.xlu0 %v3949_v5, %s4142_s25 }
0x3e7e   :  { %v3219_v20 = vpop.xlane.xlu0 %3218 }
0x3e7f   :  { %v3220_v24 = vmul.f32 %v3219_v20, %v4207_v14 }
0x3e81   :  { %v3221_v22 = vadd.f32 1e-05, %v3220_v24 }
0x3e83   :  { %4095 = vrsqrt.f32 %v3221_v22  ;;  %vm3228_vm10 = vweird.f32 %v3221_v22 }
0x3e89   :  { %v4096_v39 = vpop.eup %4095 }
0x3e8a   :  { %v3223_v46 = vmul.f32 %v4096_v39, %v3221_v22  ;;  %vm3229_vm9 = vweird.f32 %v4096_v39 }
0x3e8b   :  { %vm3230_vm11 = vmor %vm3228_vm10, %vm3229_vm9 }
0x3e8c   :  { %v3224_v56 = vmul.f32 %v4096_v39, %v3223_v46 }
0x3e8e   :  { %v3225_v45 = vmul.f32 0.5, %v3224_v56 }
0x3e90   :  { %v3226_v47 = vsub.f32 1.5, %v3225_v45 }
0x3e91   :  { %v3316_v11 = vpop.permute.xlu0 %3315 }
0x3e92   :  { %v3227_v33 = vmul.f32 %v4096_v39, %v3226_v47 }
0x3e94   :  { %v3231_v37 = vsel %vm3230_vm11, %v4096_v39, %v3227_v33  ;;  %v3952_v39 = vld [vmem:[%s5262_s6 + $0x25] ss:$0 sm:$0xff] }
0x3e95   :  { %v3232_v48 = vmul.f32 %v3231_v37, %v3211_v3  ;;  %v3860_v3 = vld [vmem:[%s5261_s5 + $0xa0] sm:$0xff] }
0x3e96   :  { %3389 = vmatpush.bf16.msrb.mxu0 %v3860_v3 }
0x3e97   :  { %v3233_v29 = vmul.f32 %v3232_v48, %v4950_v43 }
0x3e99   :  { %v3234_v31 = vadd.f32 %v3233_v29, %v4952_v61 }
0x3e9b   :  { %v3235_v32 = vpack.c.bf16 %v3234_v31, %v3234_v31 }
0x3e9d   :  { %3237 = vrot.lane.b32.xlu2 %v3235_v32, %s4141_s16 }
0x3ef7   :  { %v3238_v44 = vpop.permute.xlu2 %3237 }
0x3ef8   :  { %3789 = vmatmul.msk.bf16.vlgmr.msrb.gmra.mxu1 %vm103_vm0, %v3238_v44 }
0x3f75   :  { %v3251_v51 = vpop.f32.mrf.mxu1 }
0x3f76   :  { %v3252_v53 = vadd.f32 %v4111_v30, %v3251_v51  ;;  %v3953_v51 = vld [vmem:[%s5262_s6 + $0x28] ss:$0 sm:$0xff]  ;;  %v3954_v30 = vld [vmem:[%s5262_s6 + $0x29] ss:$0 sm:$0xff] }
0x3f78   :  { %v3255_v50 = vmax.f32 %v3252_v53, 0.0 }
0x3f7a   :  { %v3256_v21 = vpack.c.bf16 %v3255_v50, %v3255_v50 }
0x3f7c   :  { %3265 = vmatmul.bf16.vlgmr.msra.gmra.mxu2 %v3256_v21 }
0x3f7d   :  { %v3253_v23 = vpop.f32.mrf.mxu1 }
0x3fff   :  { %v3266_v49 = vpop.f32.mrf.mxu2 }
0x4000   :  { %3271 = vrot.lane.b32.xlu2 %v3266_v49, %s4142_s25 }
0x4007   :  { %v3268_v43 = vpop.f32.mrf.mxu2 }
0x405a   :  { %v3272_v61 = vpop.permute.xlu2 %3271 }
0x405b   :  { %v3274_v4 = vadd.f32 %v3272_v61, %v3202_v13 }
0x405d   :  { %v3275_v26 = vadd.f32 %v3274_v4, %v5023_v57 }
0x405f   :  { %v3276_v6 = vadd.f32 %v3275_v26, %v4739_v42  ;;  %v3950_v42 = vld [vmem:[%s5262_s6 + $0x26] ss:$0 sm:$0xff]  ;;  %s4144_s6 = smov [#allocation2]  }
0x4061   :  { %3278 = vrot.lane.b32.xlu2 %v3276_v6, %s4141_s16 }
0x40bb   :  { %v3279_v19 = vpop.permute.xlu2 %3278 }
0x40bc   :  { %v3281_v52 = vsel %vm103_vm0, %v3279_v19, 0.0 }
0x40bd   :  { %3282 = vadd.xlane.f32.xlu1 %v3281_v52 }
0x4130   :  { %v3283_v7 = vpop.xlane.xlu1 %3282 }
0x4131   :  { %v3284_v17 = vmul.f32 %v3283_v7, %v4207_v14 }
0x4133   :  { %v3285_v16 = vsub.f32 %v3276_v6, %v3284_v17 }
0x4135   :  { %v3286_v0 = vmul.f32 %v3285_v16, %v3285_v16 }
0x4137   :  { %3288 = vrot.lane.b32.xlu2 %v3286_v0, %s4141_s16 }
0x413f   :  { %3309 = vrot.lane.b32.xlu2 %v3950_v42, %s4142_s25 }
0x4191   :  { %v3289_v57 = vpop.permute.xlu2 %3288 }
0x4192   :  { %v3291_v34 = vsel %vm103_vm0, %v3289_v57, 0.0 }
0x4193   :  { %3292 = vadd.xlane.f32.xlu1 %v3291_v34 }
0x4199   :  { %v3310_v15 = vpop.permute.xlu2 %3309 }
0x4206   :  { %v3293_v27 = vpop.xlane.xlu1 %3292 }
0x4207   :  { %v3294_v62 = vmul.f32 %v3293_v27, %v4207_v14 }
0x4209   :  { %v3295_v35 = vadd.f32 1e-05, %v3294_v62 }
0x420b   :  { %4097 = vrsqrt.f32 %v3295_v35  ;;  %vm3302_vm2 = vweird.f32 %v3295_v35 }
0x4211   :  { %v4098_v41 = vpop.eup %4097 }
0x4212   :  { %v3297_v25 = vmul.f32 %v4098_v41, %v3295_v35  ;;  %vm3303_vm8 = vweird.f32 %v4098_v41 }
0x4213   :  { %vm3304_vm14 = vmor %vm3302_vm2, %vm3303_vm8 }
0x4214   :  { %v3298_v54 = vmul.f32 %v4098_v41, %v3297_v25 }
0x4216   :  { %v3299_v59 = vmul.f32 0.5, %v3298_v54 }
0x4218   :  { %v3300_v36 = vsub.f32 1.5, %v3299_v59 }
0x421a   :  { %v3301_v40 = vmul.f32 %v4098_v41, %v3300_v36 }
0x421c   :  { %v3305_v9 = vsel %vm3304_vm14, %v4098_v41, %v3301_v40 }
0x421d   :  { %v3306_v10 = vmul.f32 %v3305_v9, %v3285_v16 }
0x421f   :  { %v3312_v12 = vmul.f32 %v3310_v15, %v3306_v10 }
0x4221   :  { %v3318_v60 = vadd.f32 %v3316_v11, %v3312_v12 }
0x4223   :  { %v3319_v13 = vpack.c.bf16 %v3318_v60, %v3318_v60 }
0x4225   :  { %3322 = vrot.lane.b32.xlu1 %v3319_v13, %s4141_s16 }
0x4297   :  { %v3323_v55 = vpop.permute.xlu1 %3322 }
0x4298   :  { %3798 = vmatmul.msk.bf16.vlgmr.msra.gmra.mxu3 %vm103_vm0, %v3323_v55 }
0x431b   :  { %v3348_v8 = vpop.f32.mrf.mxu3 }
0x431c   :  { %v3349_v38 = vadd.f32 %v3951_v63, %v3348_v8 }
0x431e   :  { %v3352_v20 = vmax.f32 %v3349_v38, 0.0 }
0x4320   :  { %v3353_v24 = vpack.c.bf16 %v3352_v20, %v3352_v20 }
0x4322   :  { %3815 = vmatmul.msk.bf16.vlgmr.msrb.gmra.mxu0 %vm1646_vm13, %v3353_v24 }
0x4323   :  { %v3350_v22 = vpop.f32.mrf.mxu3 }
0x439f   :  { %v3391_v46 = vpop.f32.mrf.mxu0 }
0x43a0   :  { %v3392_v56 = vadd.f32 %v3952_v39, %v3391_v46 }
0x43a2   :  { %3396 = vrot.lane.b32.xlu2 %v3392_v56, %s4142_s25 }
0x43a7   :  { %v3393_v45 = vpop.f32.mrf.mxu0 }
0x43fc   :  { %v3397_v47 = vpop.permute.xlu2 %3396 }
0x43fd   :  { %v3399_v33 = vadd.f32 %v3397_v47, %v3318_v60 }
0x43ff   :  { %3401 = vrot.lane.b32.xlu2 %v3399_v33, %s4141_s16 }
0x4459   :  { %v3402_v37 = vpop.permute.xlu2 %3401 }
0x445a   :  { %v3404_v48 = vsel %vm103_vm0, %v3402_v37, 0.0 }
0x445b   :  { %3405 = vadd.xlane.f32.xlu2 %v3404_v48 }
0x44ce   :  { %v3406_v29 = vpop.xlane.xlu2 %3405 }
0x44cf   :  { %v3407_v31 = vmul.f32 %v3406_v29, %v4207_v14 }
0x44d1   :  { %v3408_v32 = vsub.f32 %v3399_v33, %v3407_v31 }
0x44d3   :  { %v3409_v44 = vmul.f32 %v3408_v32, %v3408_v32 }
0x44d5   :  { %3411 = vrot.lane.b32.xlu0 %v3409_v44, %s4141_s16 }
0x44dd   :  { %3432 = vrot.lane.b32.xlu0 %v3953_v51, %s4142_s25 }
0x44e5   :  { %3438 = vrot.lane.b32.xlu0 %v3954_v30, %s4142_s25  ;;  %s3462_s25 = sshll.u32 %s4144_s6, 4  ;;  %s3463_s25 = int_to_ptr.vmem [resolvable:$true] %s3462_s25 }
0x4547   :  { %v3412_v53 = vpop.permute.xlu0 %3411 }
0x4548   :  { %v3414_v50 = vsel %vm103_vm0, %v3412_v53, 0.0  ;;  %vm3455_vm0 = vcmask 257024  }
0x4549   :  { %3415 = vadd.xlane.f32.xlu1 %v3414_v50 }
0x454f   :  { %v3433_v26 = vpop.permute.xlu0 %3432 }
0x4557   :  { %v3439_v16 = vpop.permute.xlu0 %3438 }
0x45bc   :  { %v3416_v21 = vpop.xlane.xlu1 %3415 }
0x45bd   :  { %v3417_v23 = vmul.f32 %v3416_v21, %v4207_v14 }
0x45bf   :  { %v3418_v49 = vadd.f32 1e-05, %v3417_v23 }
0x45c1   :  { %4099 = vrsqrt.f32 %v3418_v49  ;;  %vm3425_vm15 = vweird.f32 %v3418_v49 }
0x45c7   :  { %v4100_v43 = vpop.eup %4099 }
0x45c8   :  { %v3420_v61 = vmul.f32 %v4100_v43, %v3418_v49  ;;  %vm3426_vm13 = vweird.f32 %v4100_v43 }
0x45c9   :  { %vm3427_vm1 = vmor %vm3425_vm15, %vm3426_vm13 }
0x45ca   :  { %v3421_v4 = vmul.f32 %v4100_v43, %v3420_v61 }
0x45cc   :  { %v3422_v6 = vmul.f32 0.5, %v3421_v4 }
0x45ce   :  { %v3423_v19 = vsub.f32 1.5, %v3422_v6 }
0x45d0   :  { %v3424_v52 = vmul.f32 %v4100_v43, %v3423_v19 }
0x45d2   :  { %v3428_v7 = vsel %vm3427_vm1, %v4100_v43, %v3424_v52 }
0x45d3   :  { %v3429_v17 = vmul.f32 %v3428_v7, %v3408_v32 }
0x45d5   :  { %v3435_v0 = vmul.f32 %v3433_v26, %v3429_v17 }
0x45d7   :  { %v3441_v5 = vadd.f32 %v3439_v16, %v3435_v0 }
0x45d9   :  { %v3443_v42 = vrot.slane %v3441_v5, 4  ;;  %3444 = vst [vmem:[#allocation1] ss:$2 sm:$0xff] %v3441_v5 }
0x45db   :  { %3447 = vst [vmem:[#allocation1 + $0x10] ss:$2 sm:$0xff] %v3443_v42 }
0x45e0   :  { %v3445_v14 = vld.sshfl [vmem:[#allocation1] sm:$0xff pattern:$0x75316420] }
0x45e1   :  { %3449 = vrot.lane.b32.xlu0 %v3445_v14, %s4141_s16 }
0x45e2   :  { %v3448_v57 = vld.sshfl [vmem:[#allocation1 + $0x10] sm:$0xff pattern:$0x75316420] }
0x45e9   :  { %3451 = vrot.lane.b32.xlu0 %v3448_v57, %s4141_s16 }
0x4653   :  { %v3450_v34 = vpop.permute.xlu0 %3449 }
0x4654   :  { %3456 = vst.msk [vmem:[#allocation2] sm:$0xf] %vm3455_vm0, %v3450_v34 }
0x465b   :  { %v3452_v58 = vpop.permute.xlu0 %3451 }
0x465c   :  { %3457 = vst.msk [vmem:[#allocation2 + $0x4] sm:$0xf] %vm3455_vm0, %v3452_v58 }
0x465d   :  { %3470 = dma.vmem_to_hbm [thread:$0]  %s3463_s25, 128, %s3465_s1, [#allocation3], %s4143_s28, %s4143_s28, %s4145_s2  }
0x465e   :  { %4136 = dma.done.wait [#allocation3], 128  }
0x465f   :  { %4137 = vsyncadd [#allocation3], 4294967168 }
0x4660   :  { %3475 = vsyncpa [#allocation3], 1 }

</bundles_post_ra>
